<compile_context>
chip_gen: v5e
topology: v5e:2x2
jax: 0.10.0
libtpu: 0.0.40
codegen_flags: <defaults>
</compile_context>

<pallas_src>
import functools

import jax
import jax.numpy as jnp
from jax.experimental import pallas as pl
from jax.experimental.pallas import tpu as pltpu  # noqa: F401  (kept for TPU-specific tuning hooks)


# ----------------------------------------------------------------------------
# Parameter setup (deterministic, mirrors reset_parameters(stdv=0.1))
# ----------------------------------------------------------------------------
def _param_shapes(x_dim, h_dim, z_dim):
    return [
        # phi_x : Linear(x,h)+ReLU, Linear(h,h)+ReLU
        ("wpx1", (x_dim, h_dim)), ("bpx1", (1, h_dim)),
        ("wpx2", (h_dim, h_dim)), ("bpx2", (1, h_dim)),
        # enc : Linear(2h,h)+ReLU (split into phi_x part / h part), Linear(h,h)+ReLU
        ("we1a", (h_dim, h_dim)), ("we1b", (h_dim, h_dim)), ("be1", (1, h_dim)),
        ("we2", (h_dim, h_dim)), ("be2", (1, h_dim)),
        # enc_mean / enc_std
        ("wem", (h_dim, z_dim)), ("bem", (1, z_dim)),
        ("wes", (h_dim, z_dim)), ("bes", (1, z_dim)),
        # prior / prior_mean / prior_std
        ("wpr", (h_dim, h_dim)), ("bpr", (1, h_dim)),
        ("wprm", (h_dim, z_dim)), ("bprm", (1, z_dim)),
        ("wprs", (h_dim, z_dim)), ("bprs", (1, z_dim)),
        # phi_z : Linear(z,h)+ReLU
        ("wpz", (z_dim, h_dim)), ("bpz", (1, h_dim)),
        # GRU (bias=False), input = cat(phi_x, phi_z) : W_ih split into two halves
        ("wih_a", (h_dim, 3 * h_dim)), ("wih_b", (h_dim, 3 * h_dim)),
        ("whh", (h_dim, 3 * h_dim)),
        # regressor head
        ("wf1", (h_dim, h_dim)), ("bf1", (1, h_dim)),
        ("wf2", (h_dim, h_dim // 2)), ("bf2", (1, h_dim // 2)),
        ("wf3", (h_dim // 2, 1)), ("bf3", (1, 1)),
    ]


def init_params(key, x_dim, h_dim, z_dim, stdv=0.1):
    shapes = _param_shapes(x_dim, h_dim, z_dim)
    keys = jax.random.split(key, len(shapes))
    return {name: stdv * jax.random.normal(k, shape, jnp.float32)
            for (name, shape), k in zip(shapes, keys)}


# ----------------------------------------------------------------------------
# Host-side packing: weights grouped by shared input activation + packed biases
# ----------------------------------------------------------------------------
_W_ORDER = ["wx1", "wx2", "wpx", "wh", "we2", "wems", "wpms", "wpz", "wihb",
            "wf1", "wf2", "wf3"]


def _pack_params(p):
    w = {
        "wx1": p["wpx1"],
        "wx2": p["wpx2"],
        "wpx": jnp.concatenate([p["we1a"], p["wih_a"]], axis=1),          # (H, 4H)
        "wh": jnp.concatenate([p["we1b"], p["wpr"], p["whh"]], axis=1),   # (H, 5H)
        "we2": p["we2"],
        "wems": jnp.concatenate([p["wem"], p["wes"]], axis=1),            # (H, 2Z)
        "wpms": jnp.concatenate([p["wprm"], p["wprs"]], axis=1),          # (H, 2Z)
        "wpz": p["wpz"],
        "wihb": p["wih_b"],
        "wf1": p["wf1"], "wf2": p["wf2"], "wf3": p["wf3"],
    }
    bias_parts = [
        ("bpx1", p["bpx1"]), ("bpx2", p["bpx2"]),
        ("be1", p["be1"]), ("be2", p["be2"]),
        ("bems", jnp.concatenate([p["bem"], p["bes"]], axis=1)),
        ("bpr", p["bpr"]),
        ("bpms", jnp.concatenate([p["bprm"], p["bprs"]], axis=1)),
        ("bpz", p["bpz"]),
        ("bf1", p["bf1"]), ("bf2", p["bf2"]), ("bf3", p["bf3"]),
    ]
    boff, off = {}, 0
    for name, arr in bias_parts:
        width = arr.shape[1]
        boff[name] = (off, width)
        off += width
    b_all = jnp.concatenate([arr for _, arr in bias_parts], axis=1)       # (1, total)
    return w, b_all, boff


# ----------------------------------------------------------------------------
# Pallas kernel: full recurrence + fused regressor head in one invocation
# ----------------------------------------------------------------------------
def _vrnn_kernel(x_ref, eps_ref,
                 wx1_ref, wx2_ref, wpx_ref, wh_ref, we2_ref,
                 wems_ref, wpms_ref, wpz_ref, wihb_ref,
                 wf1_ref, wf2_ref, wf3_ref, b_ref,
                 pred_ref, feat_ref, kld_ref,
                 *, T, H, Z, boff):
    B = feat_ref.shape[0]

    def bias(name):
        off, width = boff[name]
        return b_ref[:, off:off + width]            # (1, width), static slice

    def dot(a, w_ref):
        return jnp.dot(a, w_ref[...], preferred_element_type=jnp.float32)

    def step(t, h, kld_acc):
        x_t = x_ref[t]                              # (B, x_dim)
        e_t = eps_ref[t]                            # (B, Z)

        # phi_x
        a1 = jax.nn.relu(dot(x_t, wx1_ref) + bias("bpx1"))
        phi_x = jax.nn.relu(dot(a1, wx2_ref) + bias("bpx2"))

        # packed matmuls: one on phi_x ([we1a|wih_a]), one on h ([we1b|wpr|whh])
        px_out = dot(phi_x, wpx_ref)                # (B, 4H)
        h_out = dot(h, wh_ref)                      # (B, 5H)

        # encoder (cat([phi_x, h], 1) expressed through the packed split)
        enc1 = jax.nn.relu(px_out[:, :H] + h_out[:, :H] + bias("be1"))
        enc_h = jax.nn.relu(dot(enc1, we2_ref) + bias("be2"))
        ems = dot(enc_h, wems_ref) + bias("bems")   # (B, 2Z)
        enc_mean = ems[:, :Z]
        enc_std = jax.nn.softplus(ems[:, Z:])

        # prior
        prior_h = jax.nn.relu(h_out[:, H:2 * H] + bias("bpr"))
        pms = dot(prior_h, wpms_ref) + bias("bpms")  # (B, 2Z)
        prior_mean = pms[:, :Z]
        prior_std = jax.nn.softplus(pms[:, Z:])

        # reparameterized sample  z = eps * std + mean, then phi_z
        z_t = e_t * enc_std + enc_mean
        phi_z = jax.nn.relu(dot(z_t, wpz_ref) + bias("bpz"))

        # GRU step (bias=False); gi_a / gh already produced by packed matmuls
        gi = px_out[:, H:] + dot(phi_z, wihb_ref)   # (B, 3H)
        gh = h_out[:, 2 * H:]                       # (B, 3H)
        r = jax.nn.sigmoid(gi[:, :H] + gh[:, :H])
        u = jax.nn.sigmoid(gi[:, H:2 * H] + gh[:, H:2 * H])
        n = jnp.tanh(gi[:, 2 * H:] + r * gh[:, 2 * H:])
        h_new = (1.0 - u) * n + u * h

        # KLD: elementwise accumulation only; single reduce deferred to epilogue
        dmean = enc_mean - prior_mean
        inv_ps2 = 1.0 / (prior_std * prior_std)
        kld_el = (2.0 * jnp.log(prior_std / enc_std)
                  + (enc_std * enc_std + dmean * dmean) * inv_ps2 - 1.0)
        return h_new, kld_acc + kld_el, phi_z

    h = jnp.zeros((B, H), jnp.float32)
    kld_acc = jnp.zeros((B, Z), jnp.float32)
    phi_z = jnp.zeros((B, H), jnp.float32)

    # T is small and static: fully unrolled recurrence, state carried in vregs.
    for t in range(T):
        h, kld_acc, phi_z = step(t, h, kld_acc)

    # epilogue: features, fused regressor head, single KLD reduction
    feat_ref[...] = phi_z
    o1 = jax.nn.relu(dot(phi_z, wf1_ref) + bias("bf1"))
    o2 = jax.nn.relu(dot(o1, wf2_ref) + bias("bf2"))
    pred_ref[...] = dot(o2, wf3_ref) + bias("bf3")
    kld_ref[...] = jnp.zeros((1, 1), jnp.float32) + 0.5 * jnp.sum(kld_acc)


# ----------------------------------------------------------------------------
# Wrapper
# ----------------------------------------------------------------------------
@jax.jit
def vrnn_model_forward(x, eps, params):
    """Returns (predictions (B,1), features (B,H), kld_loss (1,1))."""
    B, T, _ = x.shape
    Z = eps.shape[-1]
    H = params["wpx2"].shape[0]

    w, b_all, boff = _pack_params(params)

    # time-major so each timestep reads a leading-axis slice of one VMEM block
    x_tm = jnp.transpose(x, (1, 0, 2))      # (T, B, x_dim)
    eps_tm = jnp.transpose(eps, (1, 0, 2))  # (T, B, Z)

    kernel = functools.partial(_vrnn_kernel, T=T, H=H, Z=Z, boff=boff)
    out_shape = (
        jax.ShapeDtypeStruct((B, 1), jnp.float32),
        jax.ShapeDtypeStruct((B, H), jnp.float32),
        jax.ShapeDtypeStruct((1, 1), jnp.float32),
    )
    # Single invocation, no grid: every operand is one whole-array VMEM block
    # (total footprint ~70 KB), so there is no per-step pipeline overhead.
    pred, feat, kld = pl.pallas_call(kernel, out_shape=out_shape)(
        x_tm, eps_tm, *[w[name] for name in _W_ORDER], b_all)
    return pred, feat, kld


# ----------------------------------------------------------------------------
# Plain-JAX reference (for correctness check) — uses the unpacked params
# ----------------------------------------------------------------------------
def reference_forward(x, eps, p):
    B, T, _ = x.shape
    H = p["wpx2"].shape[0]
    dot = lambda a, w: jnp.dot(a, w, precision=jax.lax.Precision.HIGHEST)
    h = jnp.zeros((B, H), jnp.float32)
    kld = jnp.zeros((1, 1), jnp.float32)
    phi_z = None
    for t in range(T):
        x_t, e_t = x[:, t], eps[:, t]
        phi_x = jax.nn.relu(dot(jax.nn.relu(dot(x_t, p["wpx1"]) + p["bpx1"]),
                                p["wpx2"]) + p["bpx2"])
        enc_h = jax.nn.relu(dot(jax.nn.relu(dot(phi_x, p["we1a"]) + dot(h, p["we1b"])
                                            + p["be1"]), p["we2"]) + p["be2"])
        enc_mean = dot(enc_h, p["wem"]) + p["bem"]
        enc_std = jax.nn.softplus(dot(enc_h, p["wes"]) + p["bes"])
        prior_h = jax.nn.relu(dot(h, p["wpr"]) + p["bpr"])
        prior_mean = dot(prior_h, p["wprm"]) + p["bprm"]
        prior_std = jax.nn.softplus(dot(prior_h, p["wprs"]) + p["bprs"])
        z = e_t * enc_std + enc_mean
        phi_z = jax.nn.relu(dot(z, p["wpz"]) + p["bpz"])
        gi = dot(phi_x, p["wih_a"]) + dot(phi_z, p["wih_b"])
        gh = dot(h, p["whh"])
        r = jax.nn.sigmoid(gi[:, :H] + gh[:, :H])
        u = jax.nn.sigmoid(gi[:, H:2 * H] + gh[:, H:2 * H])
        n = jnp.tanh(gi[:, 2 * H:] + r * gh[:, 2 * H:])
        h = (1.0 - u) * n + u * h
        kld_el = (2 * jnp.log(prior_std) - 2 * jnp.log(enc_std)
                  + (enc_std ** 2 + (enc_mean - prior_mean) ** 2) / prior_std ** 2 - 1)
        kld = kld + 0.5 * jnp.sum(kld_el)
    o1 = jax.nn.relu(dot(phi_z, p["wf1"]) + p["bf1"])
    o2 = jax.nn.relu(dot(o1, p["wf2"]) + p["bf2"])
    pred = dot(o2, p["wf3"]) + p["bf3"]
    return pred, phi_z, kld


# ----------------------------------------------------------------------------
if __name__ == "__main__":
    # small shapes consistent with the module: x_dim=16, h_dim=32, z_dim=8,
    # n_layers=1, batch=4, seq=8
    x_dim, h_dim, z_dim = 16, 32, 8
    B, T = 4, 8

    key = jax.random.PRNGKey(0)
    k_param, k_x, k_eps = jax.random.split(key, 3)

    params = init_params(k_param, x_dim, h_dim, z_dim)
    x = jax.random.normal(k_x, (B, T, x_dim), jnp.float32)
    # reparameterization noise (deterministic stand-in for torch.normal_())
    eps = jax.random.normal(k_eps, (B, T, z_dim), jnp.float32)

    pred, feat, kld = vrnn_model_forward(x, eps, params)
    jax.block_until_ready((pred, feat, kld))

    pred_ref, feat_ref, kld_ref = reference_forward(x, eps, params)

    assert pred.shape == (B, 1) and feat.shape == (B, h_dim) and kld.shape == (1, 1)
    assert bool(jnp.all(jnp.isfinite(pred))) and bool(jnp.all(jnp.isfinite(feat)))
    assert jnp.allclose(pred, pred_ref, atol=1e-3, rtol=1e-3), "pred mismatch"
    assert jnp.allclose(feat, feat_ref, atol=1e-3, rtol=1e-3), "features mismatch"
    assert jnp.allclose(kld, kld_ref, atol=1e-3, rtol=1e-3), "kld mismatch"

    print("KERNEL_OK")
</pallas_src>

<mosaic_0001>
module attributes {stable_mosaic.version = 11 : i64} {
  func.func @_vrnn_kernel(%arg0: memref<8x4x16xf32, #tpu.memory_space<vmem>>, %arg1: memref<8x4x8xf32, #tpu.memory_space<vmem>>, %arg2: memref<16x32xf32, #tpu.memory_space<vmem>>, %arg3: memref<32x32xf32, #tpu.memory_space<vmem>>, %arg4: memref<32x128xf32, #tpu.memory_space<vmem>>, %arg5: memref<32x160xf32, #tpu.memory_space<vmem>>, %arg6: memref<32x32xf32, #tpu.memory_space<vmem>>, %arg7: memref<32x16xf32, #tpu.memory_space<vmem>>, %arg8: memref<32x16xf32, #tpu.memory_space<vmem>>, %arg9: memref<8x32xf32, #tpu.memory_space<vmem>>, %arg10: memref<32x96xf32, #tpu.memory_space<vmem>>, %arg11: memref<32x32xf32, #tpu.memory_space<vmem>>, %arg12: memref<32x16xf32, #tpu.memory_space<vmem>>, %arg13: memref<16x1xf32, #tpu.memory_space<vmem>>, %arg14: memref<1x273xf32, #tpu.memory_space<vmem>>, %arg15: memref<4x1xf32, #tpu.memory_space<vmem>>, %arg16: memref<4x32xf32, #tpu.memory_space<vmem>>, %arg17: memref<1x1xf32, #tpu.memory_space<vmem>>) attributes {dimension_semantics = [], scalar_prefetch = 0 : i64, scratch_operands = 0 : i64, tpu.core_type = #tpu.core_type<tc>} {
    %cst = arith.constant 0.000000e+00 : f32
    %0 = vector.broadcast %cst : f32 to vector<4x32xf32>
    %cst_0 = arith.constant 0.000000e+00 : f32
    %1 = vector.broadcast %cst_0 : f32 to vector<4x8xf32>
    %c0 = arith.constant 0 : index
    %c0_1 = arith.constant 0 : index
    %c0_2 = arith.constant 0 : index
    %2 = vector.load %arg0[%c0, %c0_1, %c0_2] : memref<8x4x16xf32, #tpu.memory_space<vmem>>, vector<1x4x16xf32>
    %3 = vector.shape_cast %2 : vector<1x4x16xf32> to vector<4x16xf32>
    %c0_3 = arith.constant 0 : index
    %c0_4 = arith.constant 0 : index
    %c0_5 = arith.constant 0 : index
    %4 = vector.load %arg1[%c0_3, %c0_4, %c0_5] : memref<8x4x8xf32, #tpu.memory_space<vmem>>, vector<1x4x8xf32>
    %5 = vector.shape_cast %4 : vector<1x4x8xf32> to vector<4x8xf32>
    %c0_6 = arith.constant 0 : index
    %c0_7 = arith.constant 0 : index
    %6 = vector.load %arg2[%c0_6, %c0_7] : memref<16x32xf32, #tpu.memory_space<vmem>>, vector<16x32xf32>
    %cst_8 = arith.constant dense<0.000000e+00> : vector<4x32xf32>
    %7 = tpu.matmul %3, %6, %cst_8 {dimension_numbers = #tpu.dot_dimension_numbers<[1], [0], [0], [1], [0, 0, 1, 1], [], []>} : vector<4x16xf32>, vector<16x32xf32>, vector<4x32xf32> -> vector<4x32xf32>
    %c0_9 = arith.constant 0 : index
    %c0_10 = arith.constant 0 : index
    %8 = vector.load %arg14[%c0_9, %c0_10] : memref<1x273xf32, #tpu.memory_space<vmem>>, vector<1x32xf32>
    %9 = vector.broadcast %8 : vector<1x32xf32> to vector<4x32xf32>
    %10 = arith.addf %7, %9 : vector<4x32xf32>
    %cst_11 = arith.constant 0.000000e+00 : f32
    %11 = vector.broadcast %cst_11 : f32 to vector<4x32xf32>
    %12 = arith.maximumf %10, %11 : vector<4x32xf32>
    %c0_12 = arith.constant 0 : index
    %c0_13 = arith.constant 0 : index
    %13 = vector.load %arg3[%c0_12, %c0_13] : memref<32x32xf32, #tpu.memory_space<vmem>>, vector<32x32xf32>
    %cst_14 = arith.constant dense<0.000000e+00> : vector<4x32xf32>
    %14 = tpu.matmul %12, %13, %cst_14 {dimension_numbers = #tpu.dot_dimension_numbers<[1], [0], [0], [1], [0, 0, 1, 1], [], []>} : vector<4x32xf32>, vector<32x32xf32>, vector<4x32xf32> -> vector<4x32xf32>
    %c0_15 = arith.constant 0 : index
    %c32 = arith.constant 32 : index
    %15 = vector.load %arg14[%c0_15, %c32] : memref<1x273xf32, #tpu.memory_space<vmem>>, vector<1x32xf32>
    %16 = vector.broadcast %15 : vector<1x32xf32> to vector<4x32xf32>
    %17 = arith.addf %14, %16 : vector<4x32xf32>
    %cst_16 = arith.constant 0.000000e+00 : f32
    %18 = vector.broadcast %cst_16 : f32 to vector<4x32xf32>
    %19 = arith.maximumf %17, %18 : vector<4x32xf32>
    %c0_17 = arith.constant 0 : index
    %c0_18 = arith.constant 0 : index
    %20 = vector.load %arg4[%c0_17, %c0_18] : memref<32x128xf32, #tpu.memory_space<vmem>>, vector<32x128xf32>
    %cst_19 = arith.constant dense<0.000000e+00> : vector<4x128xf32>
    %21 = tpu.matmul %19, %20, %cst_19 {dimension_numbers = #tpu.dot_dimension_numbers<[1], [0], [0], [1], [0, 0, 1, 1], [], []>} : vector<4x32xf32>, vector<32x128xf32>, vector<4x128xf32> -> vector<4x128xf32>
    %c0_20 = arith.constant 0 : index
    %c0_21 = arith.constant 0 : index
    %22 = vector.load %arg5[%c0_20, %c0_21] : memref<32x160xf32, #tpu.memory_space<vmem>>, vector<32x160xf32>
    %cst_22 = arith.constant dense<0.000000e+00> : vector<4x160xf32>
    %23 = tpu.matmul %0, %22, %cst_22 {dimension_numbers = #tpu.dot_dimension_numbers<[1], [0], [0], [1], [0, 0, 1, 1], [], []>} : vector<4x32xf32>, vector<32x160xf32>, vector<4x160xf32> -> vector<4x160xf32>
    %24 = vector.extract_strided_slice %21 {offsets = [0, 0], sizes = [4, 32], strides = [1, 1]} : vector<4x128xf32> to vector<4x32xf32>
    %25 = vector.extract_strided_slice %23 {offsets = [0, 0], sizes = [4, 32], strides = [1, 1]} : vector<4x160xf32> to vector<4x32xf32>
    %26 = arith.addf %24, %25 : vector<4x32xf32>
    %c0_23 = arith.constant 0 : index
    %c64 = arith.constant 64 : index
    %27 = vector.load %arg14[%c0_23, %c64] : memref<1x273xf32, #tpu.memory_space<vmem>>, vector<1x32xf32>
    %28 = vector.broadcast %27 : vector<1x32xf32> to vector<4x32xf32>
    %29 = arith.addf %26, %28 : vector<4x32xf32>
    %cst_24 = arith.constant 0.000000e+00 : f32
    %30 = vector.broadcast %cst_24 : f32 to vector<4x32xf32>
    %31 = arith.maximumf %29, %30 : vector<4x32xf32>
    %c0_25 = arith.constant 0 : index
    %c0_26 = arith.constant 0 : index
    %32 = vector.load %arg6[%c0_25, %c0_26] : memref<32x32xf32, #tpu.memory_space<vmem>>, vector<32x32xf32>
    %cst_27 = arith.constant dense<0.000000e+00> : vector<4x32xf32>
    %33 = tpu.matmul %31, %32, %cst_27 {dimension_numbers = #tpu.dot_dimension_numbers<[1], [0], [0], [1], [0, 0, 1, 1], [], []>} : vector<4x32xf32>, vector<32x32xf32>, vector<4x32xf32> -> vector<4x32xf32>
    %c0_28 = arith.constant 0 : index
    %c96 = arith.constant 96 : index
    %34 = vector.load %arg14[%c0_28, %c96] : memref<1x273xf32, #tpu.memory_space<vmem>>, vector<1x32xf32>
    %35 = vector.broadcast %34 : vector<1x32xf32> to vector<4x32xf32>
    %36 = arith.addf %33, %35 : vector<4x32xf32>
    %cst_29 = arith.constant 0.000000e+00 : f32
    %37 = vector.broadcast %cst_29 : f32 to vector<4x32xf32>
    %38 = arith.maximumf %36, %37 : vector<4x32xf32>
    %c0_30 = arith.constant 0 : index
    %c0_31 = arith.constant 0 : index
    %39 = vector.load %arg7[%c0_30, %c0_31] : memref<32x16xf32, #tpu.memory_space<vmem>>, vector<32x16xf32>
    %cst_32 = arith.constant dense<0.000000e+00> : vector<4x16xf32>
    %40 = tpu.matmul %38, %39, %cst_32 {dimension_numbers = #tpu.dot_dimension_numbers<[1], [0], [0], [1], [0, 0, 1, 1], [], []>} : vector<4x32xf32>, vector<32x16xf32>, vector<4x16xf32> -> vector<4x16xf32>
    %c0_33 = arith.constant 0 : index
    %c128 = arith.constant 128 : index
    %41 = vector.load %arg14[%c0_33, %c128] : memref<1x273xf32, #tpu.memory_space<vmem>>, vector<1x16xf32>
    %42 = vector.broadcast %41 : vector<1x16xf32> to vector<4x16xf32>
    %43 = arith.addf %40, %42 : vector<4x16xf32>
    %44 = vector.extract_strided_slice %43 {offsets = [0, 0], sizes = [4, 8], strides = [1, 1]} : vector<4x16xf32> to vector<4x8xf32>
    %45 = vector.extract_strided_slice %43 {offsets = [0, 8], sizes = [4, 8], strides = [1, 1]} : vector<4x16xf32> to vector<4x8xf32>
    %cst_34 = arith.constant 0.000000e+00 : f32
    %46 = vector.broadcast %cst_34 : f32 to vector<4x8xf32>
    %47 = arith.maximumf %45, %46 : vector<4x8xf32>
    %48 = vector.broadcast %cst_34 : f32 to vector<4x8xf32>
    %49 = arith.subf %45, %48 : vector<4x8xf32>
    %50 = arith.cmpf one, %49, %49 : vector<4x8xf32>
    %51 = vector.broadcast %cst_34 : f32 to vector<4x8xf32>
    %52 = arith.addf %45, %51 : vector<4x8xf32>
    %53 = math.absf %49 : vector<4x8xf32>
    %cst_35 = arith.constant 0.000000e+00 : f32
    %54 = vector.broadcast %cst_35 : f32 to vector<4x8xf32>
    %55 = arith.subf %54, %53 : vector<4x8xf32>
    %56 = math.exp %55 : vector<4x8xf32>
    %57 = math.log1p %56 : vector<4x8xf32>
    %58 = arith.addf %47, %57 : vector<4x8xf32>
    %59 = arith.select %50, %52, %58 : vector<4x8xi1>, vector<4x8xf32>
    %60 = vector.extract_strided_slice %23 {offsets = [0, 32], sizes = [4, 32], strides = [1, 1]} : vector<4x160xf32> to vector<4x32xf32>
    %c0_36 = arith.constant 0 : index
    %c144 = arith.constant 144 : index
    %61 = vector.load %arg14[%c0_36, %c144] : memref<1x273xf32, #tpu.memory_space<vmem>>, vector<1x32xf32>
    %62 = vector.broadcast %61 : vector<1x32xf32> to vector<4x32xf32>
    %63 = arith.addf %60, %62 : vector<4x32xf32>
    %cst_37 = arith.constant 0.000000e+00 : f32
    %64 = vector.broadcast %cst_37 : f32 to vector<4x32xf32>
    %65 = arith.maximumf %63, %64 : vector<4x32xf32>
    %c0_38 = arith.constant 0 : index
    %c0_39 = arith.constant 0 : index
    %66 = vector.load %arg8[%c0_38, %c0_39] : memref<32x16xf32, #tpu.memory_space<vmem>>, vector<32x16xf32>
    %cst_40 = arith.constant dense<0.000000e+00> : vector<4x16xf32>
    %67 = tpu.matmul %65, %66, %cst_40 {dimension_numbers = #tpu.dot_dimension_numbers<[1], [0], [0], [1], [0, 0, 1, 1], [], []>} : vector<4x32xf32>, vector<32x16xf32>, vector<4x16xf32> -> vector<4x16xf32>
    %c0_41 = arith.constant 0 : index
    %c176 = arith.constant 176 : index
    %68 = vector.load %arg14[%c0_41, %c176] : memref<1x273xf32, #tpu.memory_space<vmem>>, vector<1x16xf32>
    %69 = vector.broadcast %68 : vector<1x16xf32> to vector<4x16xf32>
    %70 = arith.addf %67, %69 : vector<4x16xf32>
    %71 = vector.extract_strided_slice %70 {offsets = [0, 0], sizes = [4, 8], strides = [1, 1]} : vector<4x16xf32> to vector<4x8xf32>
    %72 = vector.extract_strided_slice %70 {offsets = [0, 8], sizes = [4, 8], strides = [1, 1]} : vector<4x16xf32> to vector<4x8xf32>
    %cst_42 = arith.constant 0.000000e+00 : f32
    %73 = vector.broadcast %cst_42 : f32 to vector<4x8xf32>
    %74 = arith.maximumf %72, %73 : vector<4x8xf32>
    %75 = vector.broadcast %cst_42 : f32 to vector<4x8xf32>
    %76 = arith.subf %72, %75 : vector<4x8xf32>
    %77 = arith.cmpf one, %76, %76 : vector<4x8xf32>
    %78 = vector.broadcast %cst_42 : f32 to vector<4x8xf32>
    %79 = arith.addf %72, %78 : vector<4x8xf32>
    %80 = math.absf %76 : vector<4x8xf32>
    %cst_43 = arith.constant 0.000000e+00 : f32
    %81 = vector.broadcast %cst_43 : f32 to vector<4x8xf32>
    %82 = arith.subf %81, %80 : vector<4x8xf32>
    %83 = math.exp %82 : vector<4x8xf32>
    %84 = math.log1p %83 : vector<4x8xf32>
    %85 = arith.addf %74, %84 : vector<4x8xf32>
    %86 = arith.select %77, %79, %85 : vector<4x8xi1>, vector<4x8xf32>
    %87 = arith.mulf %5, %59 : vector<4x8xf32>
    %88 = arith.addf %87, %44 : vector<4x8xf32>
    %c0_44 = arith.constant 0 : index
    %c0_45 = arith.constant 0 : index
    %89 = vector.load %arg9[%c0_44, %c0_45] : memref<8x32xf32, #tpu.memory_space<vmem>>, vector<8x32xf32>
    %cst_46 = arith.constant dense<0.000000e+00> : vector<4x32xf32>
    %90 = tpu.matmul %88, %89, %cst_46 {dimension_numbers = #tpu.dot_dimension_numbers<[1], [0], [0], [1], [0, 0, 1, 1], [], []>} : vector<4x8xf32>, vector<8x32xf32>, vector<4x32xf32> -> vector<4x32xf32>
    %c0_47 = arith.constant 0 : index
    %c192 = arith.constant 192 : index
    %91 = vector.load %arg14[%c0_47, %c192] : memref<1x273xf32, #tpu.memory_space<vmem>>, vector<1x32xf32>
    %92 = vector.broadcast %91 : vector<1x32xf32> to vector<4x32xf32>
    %93 = arith.addf %90, %92 : vector<4x32xf32>
    %cst_48 = arith.constant 0.000000e+00 : f32
    %94 = vector.broadcast %cst_48 : f32 to vector<4x32xf32>
    %95 = arith.maximumf %93, %94 : vector<4x32xf32>
    %96 = vector.extract_strided_slice %21 {offsets = [0, 32], sizes = [4, 96], strides = [1, 1]} : vector<4x128xf32> to vector<4x96xf32>
    %c0_49 = arith.constant 0 : index
    %c0_50 = arith.constant 0 : index
    %97 = vector.load %arg10[%c0_49, %c0_50] : memref<32x96xf32, #tpu.memory_space<vmem>>, vector<32x96xf32>
    %cst_51 = arith.constant dense<0.000000e+00> : vector<4x96xf32>
    %98 = tpu.matmul %95, %97, %cst_51 {dimension_numbers = #tpu.dot_dimension_numbers<[1], [0], [0], [1], [0, 0, 1, 1], [], []>} : vector<4x32xf32>, vector<32x96xf32>, vector<4x96xf32> -> vector<4x96xf32>
    %99 = arith.addf %96, %98 : vector<4x96xf32>
    %100 = vector.extract_strided_slice %23 {offsets = [0, 64], sizes = [4, 96], strides = [1, 1]} : vector<4x160xf32> to vector<4x96xf32>
    %101 = vector.extract_strided_slice %99 {offsets = [0, 0], sizes = [4, 32], strides = [1, 1]} : vector<4x96xf32> to vector<4x32xf32>
    %102 = vector.extract_strided_slice %100 {offsets = [0, 0], sizes = [4, 32], strides = [1, 1]} : vector<4x96xf32> to vector<4x32xf32>
    %103 = arith.addf %101, %102 : vector<4x32xf32>
    %104 = arith.negf %103 : vector<4x32xf32>
    %105 = math.exp %104 : vector<4x32xf32>
    %cst_52 = arith.constant 1.000000e+00 : f32
    %106 = vector.broadcast %cst_52 : f32 to vector<4x32xf32>
    %107 = arith.addf %106, %105 : vector<4x32xf32>
    %108 = arith.divf %106, %107 : vector<4x32xf32>
    %109 = vector.extract_strided_slice %99 {offsets = [0, 32], sizes = [4, 32], strides = [1, 1]} : vector<4x96xf32> to vector<4x32xf32>
    %110 = vector.extract_strided_slice %100 {offsets = [0, 32], sizes = [4, 32], strides = [1, 1]} : vector<4x96xf32> to vector<4x32xf32>
    %111 = arith.addf %109, %110 : vector<4x32xf32>
    %112 = arith.negf %111 : vector<4x32xf32>
    %113 = math.exp %112 : vector<4x32xf32>
    %cst_53 = arith.constant 1.000000e+00 : f32
    %114 = vector.broadcast %cst_53 : f32 to vector<4x32xf32>
    %115 = arith.addf %114, %113 : vector<4x32xf32>
    %116 = arith.divf %114, %115 : vector<4x32xf32>
    %117 = vector.extract_strided_slice %99 {offsets = [0, 64], sizes = [4, 32], strides = [1, 1]} : vector<4x96xf32> to vector<4x32xf32>
    %118 = vector.extract_strided_slice %100 {offsets = [0, 64], sizes = [4, 32], strides = [1, 1]} : vector<4x96xf32> to vector<4x32xf32>
    %119 = arith.mulf %108, %118 : vector<4x32xf32>
    %120 = arith.addf %117, %119 : vector<4x32xf32>
    %121 = math.tanh %120 : vector<4x32xf32>
    %cst_54 = arith.constant 1.000000e+00 : f32
    %122 = vector.broadcast %cst_54 : f32 to vector<4x32xf32>
    %123 = arith.subf %122, %116 : vector<4x32xf32>
    %124 = arith.mulf %123, %121 : vector<4x32xf32>
    %125 = arith.mulf %116, %0 : vector<4x32xf32>
    %126 = arith.addf %124, %125 : vector<4x32xf32>
    %127 = arith.subf %44, %71 : vector<4x8xf32>
    %128 = arith.mulf %86, %86 : vector<4x8xf32>
    %cst_55 = arith.constant 1.000000e+00 : f32
    %129 = vector.broadcast %cst_55 : f32 to vector<4x8xf32>
    %130 = arith.divf %129, %128 : vector<4x8xf32>
    %131 = arith.divf %86, %59 : vector<4x8xf32>
    %132 = math.log %131 : vector<4x8xf32>
    %cst_56 = arith.constant 2.000000e+00 : f32
    %133 = vector.broadcast %cst_56 : f32 to vector<4x8xf32>
    %134 = arith.mulf %133, %132 : vector<4x8xf32>
    %135 = arith.mulf %59, %59 : vector<4x8xf32>
    %136 = arith.mulf %127, %127 : vector<4x8xf32>
    %137 = arith.addf %135, %136 : vector<4x8xf32>
    %138 = arith.mulf %137, %130 : vector<4x8xf32>
    %139 = arith.addf %134, %138 : vector<4x8xf32>
    %cst_57 = arith.constant 1.000000e+00 : f32
    %140 = vector.broadcast %cst_57 : f32 to vector<4x8xf32>
    %141 = arith.subf %139, %140 : vector<4x8xf32>
    %142 = arith.addf %1, %141 : vector<4x8xf32>
    %c1 = arith.constant 1 : index
    %c0_58 = arith.constant 0 : index
    %c0_59 = arith.constant 0 : index
    %143 = vector.load %arg0[%c1, %c0_58, %c0_59] : memref<8x4x16xf32, #tpu.memory_space<vmem>>, vector<1x4x16xf32>
    %144 = vector.shape_cast %143 : vector<1x4x16xf32> to vector<4x16xf32>
    %c1_60 = arith.constant 1 : index
    %c0_61 = arith.constant 0 : index
    %c0_62 = arith.constant 0 : index
    %145 = vector.load %arg1[%c1_60, %c0_61, %c0_62] : memref<8x4x8xf32, #tpu.memory_space<vmem>>, vector<1x4x8xf32>
    %146 = vector.shape_cast %145 : vector<1x4x8xf32> to vector<4x8xf32>
    %c0_63 = arith.constant 0 : index
    %c0_64 = arith.constant 0 : index
    %147 = vector.load %arg2[%c0_63, %c0_64] : memref<16x32xf32, #tpu.memory_space<vmem>>, vector<16x32xf32>
    %cst_65 = arith.constant dense<0.000000e+00> : vector<4x32xf32>
    %148 = tpu.matmul %144, %147, %cst_65 {dimension_numbers = #tpu.dot_dimension_numbers<[1], [0], [0], [1], [0, 0, 1, 1], [], []>} : vector<4x16xf32>, vector<16x32xf32>, vector<4x32xf32> -> vector<4x32xf32>
    %c0_66 = arith.constant 0 : index
    %c0_67 = arith.constant 0 : index
    %149 = vector.load %arg14[%c0_66, %c0_67] : memref<1x273xf32, #tpu.memory_space<vmem>>, vector<1x32xf32>
    %150 = vector.broadcast %149 : vector<1x32xf32> to vector<4x32xf32>
    %151 = arith.addf %148, %150 : vector<4x32xf32>
    %cst_68 = arith.constant 0.000000e+00 : f32
    %152 = vector.broadcast %cst_68 : f32 to vector<4x32xf32>
    %153 = arith.maximumf %151, %152 : vector<4x32xf32>
    %c0_69 = arith.constant 0 : index
    %c0_70 = arith.constant 0 : index
    %154 = vector.load %arg3[%c0_69, %c0_70] : memref<32x32xf32, #tpu.memory_space<vmem>>, vector<32x32xf32>
    %cst_71 = arith.constant dense<0.000000e+00> : vector<4x32xf32>
    %155 = tpu.matmul %153, %154, %cst_71 {dimension_numbers = #tpu.dot_dimension_numbers<[1], [0], [0], [1], [0, 0, 1, 1], [], []>} : vector<4x32xf32>, vector<32x32xf32>, vector<4x32xf32> -> vector<4x32xf32>
    %c0_72 = arith.constant 0 : index
    %c32_73 = arith.constant 32 : index
    %156 = vector.load %arg14[%c0_72, %c32_73] : memref<1x273xf32, #tpu.memory_space<vmem>>, vector<1x32xf32>
    %157 = vector.broadcast %156 : vector<1x32xf32> to vector<4x32xf32>
    %158 = arith.addf %155, %157 : vector<4x32xf32>
    %cst_74 = arith.constant 0.000000e+00 : f32
    %159 = vector.broadcast %cst_74 : f32 to vector<4x32xf32>
    %160 = arith.maximumf %158, %159 : vector<4x32xf32>
    %c0_75 = arith.constant 0 : index
    %c0_76 = arith.constant 0 : index
    %161 = vector.load %arg4[%c0_75, %c0_76] : memref<32x128xf32, #tpu.memory_space<vmem>>, vector<32x128xf32>
    %cst_77 = arith.constant dense<0.000000e+00> : vector<4x128xf32>
    %162 = tpu.matmul %160, %161, %cst_77 {dimension_numbers = #tpu.dot_dimension_numbers<[1], [0], [0], [1], [0, 0, 1, 1], [], []>} : vector<4x32xf32>, vector<32x128xf32>, vector<4x128xf32> -> vector<4x128xf32>
    %c0_78 = arith.constant 0 : index
    %c0_79 = arith.constant 0 : index
    %163 = vector.load %arg5[%c0_78, %c0_79] : memref<32x160xf32, #tpu.memory_space<vmem>>, vector<32x160xf32>
    %cst_80 = arith.constant dense<0.000000e+00> : vector<4x160xf32>
    %164 = tpu.matmul %126, %163, %cst_80 {dimension_numbers = #tpu.dot_dimension_numbers<[1], [0], [0], [1], [0, 0, 1, 1], [], []>} : vector<4x32xf32>, vector<32x160xf32>, vector<4x160xf32> -> vector<4x160xf32>
    %165 = vector.extract_strided_slice %162 {offsets = [0, 0], sizes = [4, 32], strides = [1, 1]} : vector<4x128xf32> to vector<4x32xf32>
    %166 = vector.extract_strided_slice %164 {offsets = [0, 0], sizes = [4, 32], strides = [1, 1]} : vector<4x160xf32> to vector<4x32xf32>
    %167 = arith.addf %165, %166 : vector<4x32xf32>
    %c0_81 = arith.constant 0 : index
    %c64_82 = arith.constant 64 : index
    %168 = vector.load %arg14[%c0_81, %c64_82] : memref<1x273xf32, #tpu.memory_space<vmem>>, vector<1x32xf32>
    %169 = vector.broadcast %168 : vector<1x32xf32> to vector<4x32xf32>
    %170 = arith.addf %167, %169 : vector<4x32xf32>
    %cst_83 = arith.constant 0.000000e+00 : f32
    %171 = vector.broadcast %cst_83 : f32 to vector<4x32xf32>
    %172 = arith.maximumf %170, %171 : vector<4x32xf32>
    %c0_84 = arith.constant 0 : index
    %c0_85 = arith.constant 0 : index
    %173 = vector.load %arg6[%c0_84, %c0_85] : memref<32x32xf32, #tpu.memory_space<vmem>>, vector<32x32xf32>
    %cst_86 = arith.constant dense<0.000000e+00> : vector<4x32xf32>
    %174 = tpu.matmul %172, %173, %cst_86 {dimension_numbers = #tpu.dot_dimension_numbers<[1], [0], [0], [1], [0, 0, 1, 1], [], []>} : vector<4x32xf32>, vector<32x32xf32>, vector<4x32xf32> -> vector<4x32xf32>
    %c0_87 = arith.constant 0 : index
    %c96_88 = arith.constant 96 : index
    %175 = vector.load %arg14[%c0_87, %c96_88] : memref<1x273xf32, #tpu.memory_space<vmem>>, vector<1x32xf32>
    %176 = vector.broadcast %175 : vector<1x32xf32> to vector<4x32xf32>
    %177 = arith.addf %174, %176 : vector<4x32xf32>
    %cst_89 = arith.constant 0.000000e+00 : f32
    %178 = vector.broadcast %cst_89 : f32 to vector<4x32xf32>
    %179 = arith.maximumf %177, %178 : vector<4x32xf32>
    %c0_90 = arith.constant 0 : index
    %c0_91 = arith.constant 0 : index
    %180 = vector.load %arg7[%c0_90, %c0_91] : memref<32x16xf32, #tpu.memory_space<vmem>>, vector<32x16xf32>
    %cst_92 = arith.constant dense<0.000000e+00> : vector<4x16xf32>
    %181 = tpu.matmul %179, %180, %cst_92 {dimension_numbers = #tpu.dot_dimension_numbers<[1], [0], [0], [1], [0, 0, 1, 1], [], []>} : vector<4x32xf32>, vector<32x16xf32>, vector<4x16xf32> -> vector<4x16xf32>
    %c0_93 = arith.constant 0 : index
    %c128_94 = arith.constant 128 : index
    %182 = vector.load %arg14[%c0_93, %c128_94] : memref<1x273xf32, #tpu.memory_space<vmem>>, vector<1x16xf32>
    %183 = vector.broadcast %182 : vector<1x16xf32> to vector<4x16xf32>
    %184 = arith.addf %181, %183 : vector<4x16xf32>
    %185 = vector.extract_strided_slice %184 {offsets = [0, 0], sizes = [4, 8], strides = [1, 1]} : vector<4x16xf32> to vector<4x8xf32>
    %186 = vector.extract_strided_slice %184 {offsets = [0, 8], sizes = [4, 8], strides = [1, 1]} : vector<4x16xf32> to vector<4x8xf32>
    %cst_95 = arith.constant 0.000000e+00 : f32
    %187 = vector.broadcast %cst_95 : f32 to vector<4x8xf32>
    %188 = arith.maximumf %186, %187 : vector<4x8xf32>
    %189 = vector.broadcast %cst_95 : f32 to vector<4x8xf32>
    %190 = arith.subf %186, %189 : vector<4x8xf32>
    %191 = arith.cmpf one, %190, %190 : vector<4x8xf32>
    %192 = vector.broadcast %cst_95 : f32 to vector<4x8xf32>
    %193 = arith.addf %186, %192 : vector<4x8xf32>
    %194 = math.absf %190 : vector<4x8xf32>
    %cst_96 = arith.constant 0.000000e+00 : f32
    %195 = vector.broadcast %cst_96 : f32 to vector<4x8xf32>
    %196 = arith.subf %195, %194 : vector<4x8xf32>
    %197 = math.exp %196 : vector<4x8xf32>
    %198 = math.log1p %197 : vector<4x8xf32>
    %199 = arith.addf %188, %198 : vector<4x8xf32>
    %200 = arith.select %191, %193, %199 : vector<4x8xi1>, vector<4x8xf32>
    %201 = vector.extract_strided_slice %164 {offsets = [0, 32], sizes = [4, 32], strides = [1, 1]} : vector<4x160xf32> to vector<4x32xf32>
    %c0_97 = arith.constant 0 : index
    %c144_98 = arith.constant 144 : index
    %202 = vector.load %arg14[%c0_97, %c144_98] : memref<1x273xf32, #tpu.memory_space<vmem>>, vector<1x32xf32>
    %203 = vector.broadcast %202 : vector<1x32xf32> to vector<4x32xf32>
    %204 = arith.addf %201, %203 : vector<4x32xf32>
    %cst_99 = arith.constant 0.000000e+00 : f32
    %205 = vector.broadcast %cst_99 : f32 to vector<4x32xf32>
    %206 = arith.maximumf %204, %205 : vector<4x32xf32>
    %c0_100 = arith.constant 0 : index
    %c0_101 = arith.constant 0 : index
    %207 = vector.load %arg8[%c0_100, %c0_101] : memref<32x16xf32, #tpu.memory_space<vmem>>, vector<32x16xf32>
    %cst_102 = arith.constant dense<0.000000e+00> : vector<4x16xf32>
    %208 = tpu.matmul %206, %207, %cst_102 {dimension_numbers = #tpu.dot_dimension_numbers<[1], [0], [0], [1], [0, 0, 1, 1], [], []>} : vector<4x32xf32>, vector<32x16xf32>, vector<4x16xf32> -> vector<4x16xf32>
    %c0_103 = arith.constant 0 : index
    %c176_104 = arith.constant 176 : index
    %209 = vector.load %arg14[%c0_103, %c176_104] : memref<1x273xf32, #tpu.memory_space<vmem>>, vector<1x16xf32>
    %210 = vector.broadcast %209 : vector<1x16xf32> to vector<4x16xf32>
    %211 = arith.addf %208, %210 : vector<4x16xf32>
    %212 = vector.extract_strided_slice %211 {offsets = [0, 0], sizes = [4, 8], strides = [1, 1]} : vector<4x16xf32> to vector<4x8xf32>
    %213 = vector.extract_strided_slice %211 {offsets = [0, 8], sizes = [4, 8], strides = [1, 1]} : vector<4x16xf32> to vector<4x8xf32>
    %cst_105 = arith.constant 0.000000e+00 : f32
    %214 = vector.broadcast %cst_105 : f32 to vector<4x8xf32>
    %215 = arith.maximumf %213, %214 : vector<4x8xf32>
    %216 = vector.broadcast %cst_105 : f32 to vector<4x8xf32>
    %217 = arith.subf %213, %216 : vector<4x8xf32>
    %218 = arith.cmpf one, %217, %217 : vector<4x8xf32>
    %219 = vector.broadcast %cst_105 : f32 to vector<4x8xf32>
    %220 = arith.addf %213, %219 : vector<4x8xf32>
    %221 = math.absf %217 : vector<4x8xf32>
    %cst_106 = arith.constant 0.000000e+00 : f32
    %222 = vector.broadcast %cst_106 : f32 to vector<4x8xf32>
    %223 = arith.subf %222, %221 : vector<4x8xf32>
    %224 = math.exp %223 : vector<4x8xf32>
    %225 = math.log1p %224 : vector<4x8xf32>
    %226 = arith.addf %215, %225 : vector<4x8xf32>
    %227 = arith.select %218, %220, %226 : vector<4x8xi1>, vector<4x8xf32>
    %228 = arith.mulf %146, %200 : vector<4x8xf32>
    %229 = arith.addf %228, %185 : vector<4x8xf32>
    %c0_107 = arith.constant 0 : index
    %c0_108 = arith.constant 0 : index
    %230 = vector.load %arg9[%c0_107, %c0_108] : memref<8x32xf32, #tpu.memory_space<vmem>>, vector<8x32xf32>
    %cst_109 = arith.constant dense<0.000000e+00> : vector<4x32xf32>
    %231 = tpu.matmul %229, %230, %cst_109 {dimension_numbers = #tpu.dot_dimension_numbers<[1], [0], [0], [1], [0, 0, 1, 1], [], []>} : vector<4x8xf32>, vector<8x32xf32>, vector<4x32xf32> -> vector<4x32xf32>
    %c0_110 = arith.constant 0 : index
    %c192_111 = arith.constant 192 : index
    %232 = vector.load %arg14[%c0_110, %c192_111] : memref<1x273xf32, #tpu.memory_space<vmem>>, vector<1x32xf32>
    %233 = vector.broadcast %232 : vector<1x32xf32> to vector<4x32xf32>
    %234 = arith.addf %231, %233 : vector<4x32xf32>
    %cst_112 = arith.constant 0.000000e+00 : f32
    %235 = vector.broadcast %cst_112 : f32 to vector<4x32xf32>
    %236 = arith.maximumf %234, %235 : vector<4x32xf32>
    %237 = vector.extract_strided_slice %162 {offsets = [0, 32], sizes = [4, 96], strides = [1, 1]} : vector<4x128xf32> to vector<4x96xf32>
    %c0_113 = arith.constant 0 : index
    %c0_114 = arith.constant 0 : index
    %238 = vector.load %arg10[%c0_113, %c0_114] : memref<32x96xf32, #tpu.memory_space<vmem>>, vector<32x96xf32>
    %cst_115 = arith.constant dense<0.000000e+00> : vector<4x96xf32>
    %239 = tpu.matmul %236, %238, %cst_115 {dimension_numbers = #tpu.dot_dimension_numbers<[1], [0], [0], [1], [0, 0, 1, 1], [], []>} : vector<4x32xf32>, vector<32x96xf32>, vector<4x96xf32> -> vector<4x96xf32>
    %240 = arith.addf %237, %239 : vector<4x96xf32>
    %241 = vector.extract_strided_slice %164 {offsets = [0, 64], sizes = [4, 96], strides = [1, 1]} : vector<4x160xf32> to vector<4x96xf32>
    %242 = vector.extract_strided_slice %240 {offsets = [0, 0], sizes = [4, 32], strides = [1, 1]} : vector<4x96xf32> to vector<4x32xf32>
    %243 = vector.extract_strided_slice %241 {offsets = [0, 0], sizes = [4, 32], strides = [1, 1]} : vector<4x96xf32> to vector<4x32xf32>
    %244 = arith.addf %242, %243 : vector<4x32xf32>
    %245 = arith.negf %244 : vector<4x32xf32>
    %246 = math.exp %245 : vector<4x32xf32>
    %cst_116 = arith.constant 1.000000e+00 : f32
    %247 = vector.broadcast %cst_116 : f32 to vector<4x32xf32>
    %248 = arith.addf %247, %246 : vector<4x32xf32>
    %249 = arith.divf %247, %248 : vector<4x32xf32>
    %250 = vector.extract_strided_slice %240 {offsets = [0, 32], sizes = [4, 32], strides = [1, 1]} : vector<4x96xf32> to vector<4x32xf32>
    %251 = vector.extract_strided_slice %241 {offsets = [0, 32], sizes = [4, 32], strides = [1, 1]} : vector<4x96xf32> to vector<4x32xf32>
    %252 = arith.addf %250, %251 : vector<4x32xf32>
    %253 = arith.negf %252 : vector<4x32xf32>
    %254 = math.exp %253 : vector<4x32xf32>
    %cst_117 = arith.constant 1.000000e+00 : f32
    %255 = vector.broadcast %cst_117 : f32 to vector<4x32xf32>
    %256 = arith.addf %255, %254 : vector<4x32xf32>
    %257 = arith.divf %255, %256 : vector<4x32xf32>
    %258 = vector.extract_strided_slice %240 {offsets = [0, 64], sizes = [4, 32], strides = [1, 1]} : vector<4x96xf32> to vector<4x32xf32>
    %259 = vector.extract_strided_slice %241 {offsets = [0, 64], sizes = [4, 32], strides = [1, 1]} : vector<4x96xf32> to vector<4x32xf32>
    %260 = arith.mulf %249, %259 : vector<4x32xf32>
    %261 = arith.addf %258, %260 : vector<4x32xf32>
    %262 = math.tanh %261 : vector<4x32xf32>
    %cst_118 = arith.constant 1.000000e+00 : f32
    %263 = vector.broadcast %cst_118 : f32 to vector<4x32xf32>
    %264 = arith.subf %263, %257 : vector<4x32xf32>
    %265 = arith.mulf %264, %262 : vector<4x32xf32>
    %266 = arith.mulf %257, %126 : vector<4x32xf32>
    %267 = arith.addf %265, %266 : vector<4x32xf32>
    %268 = arith.subf %185, %212 : vector<4x8xf32>
    %269 = arith.mulf %227, %227 : vector<4x8xf32>
    %cst_119 = arith.constant 1.000000e+00 : f32
    %270 = vector.broadcast %cst_119 : f32 to vector<4x8xf32>
    %271 = arith.divf %270, %269 : vector<4x8xf32>
    %272 = arith.divf %227, %200 : vector<4x8xf32>
    %273 = math.log %272 : vector<4x8xf32>
    %cst_120 = arith.constant 2.000000e+00 : f32
    %274 = vector.broadcast %cst_120 : f32 to vector<4x8xf32>
    %275 = arith.mulf %274, %273 : vector<4x8xf32>
    %276 = arith.mulf %200, %200 : vector<4x8xf32>
    %277 = arith.mulf %268, %268 : vector<4x8xf32>
    %278 = arith.addf %276, %277 : vector<4x8xf32>
    %279 = arith.mulf %278, %271 : vector<4x8xf32>
    %280 = arith.addf %275, %279 : vector<4x8xf32>
    %cst_121 = arith.constant 1.000000e+00 : f32
    %281 = vector.broadcast %cst_121 : f32 to vector<4x8xf32>
    %282 = arith.subf %280, %281 : vector<4x8xf32>
    %283 = arith.addf %142, %282 : vector<4x8xf32>
    %c2 = arith.constant 2 : index
    %c0_122 = arith.constant 0 : index
    %c0_123 = arith.constant 0 : index
    %284 = vector.load %arg0[%c2, %c0_122, %c0_123] : memref<8x4x16xf32, #tpu.memory_space<vmem>>, vector<1x4x16xf32>
    %285 = vector.shape_cast %284 : vector<1x4x16xf32> to vector<4x16xf32>
    %c2_124 = arith.constant 2 : index
    %c0_125 = arith.constant 0 : index
    %c0_126 = arith.constant 0 : index
    %286 = vector.load %arg1[%c2_124, %c0_125, %c0_126] : memref<8x4x8xf32, #tpu.memory_space<vmem>>, vector<1x4x8xf32>
    %287 = vector.shape_cast %286 : vector<1x4x8xf32> to vector<4x8xf32>
    %c0_127 = arith.constant 0 : index
    %c0_128 = arith.constant 0 : index
    %288 = vector.load %arg2[%c0_127, %c0_128] : memref<16x32xf32, #tpu.memory_space<vmem>>, vector<16x32xf32>
    %cst_129 = arith.constant dense<0.000000e+00> : vector<4x32xf32>
    %289 = tpu.matmul %285, %288, %cst_129 {dimension_numbers = #tpu.dot_dimension_numbers<[1], [0], [0], [1], [0, 0, 1, 1], [], []>} : vector<4x16xf32>, vector<16x32xf32>, vector<4x32xf32> -> vector<4x32xf32>
    %c0_130 = arith.constant 0 : index
    %c0_131 = arith.constant 0 : index
    %290 = vector.load %arg14[%c0_130, %c0_131] : memref<1x273xf32, #tpu.memory_space<vmem>>, vector<1x32xf32>
    %291 = vector.broadcast %290 : vector<1x32xf32> to vector<4x32xf32>
    %292 = arith.addf %289, %291 : vector<4x32xf32>
    %cst_132 = arith.constant 0.000000e+00 : f32
    %293 = vector.broadcast %cst_132 : f32 to vector<4x32xf32>
    %294 = arith.maximumf %292, %293 : vector<4x32xf32>
    %c0_133 = arith.constant 0 : index
    %c0_134 = arith.constant 0 : index
    %295 = vector.load %arg3[%c0_133, %c0_134] : memref<32x32xf32, #tpu.memory_space<vmem>>, vector<32x32xf32>
    %cst_135 = arith.constant dense<0.000000e+00> : vector<4x32xf32>
    %296 = tpu.matmul %294, %295, %cst_135 {dimension_numbers = #tpu.dot_dimension_numbers<[1], [0], [0], [1], [0, 0, 1, 1], [], []>} : vector<4x32xf32>, vector<32x32xf32>, vector<4x32xf32> -> vector<4x32xf32>
    %c0_136 = arith.constant 0 : index
    %c32_137 = arith.constant 32 : index
    %297 = vector.load %arg14[%c0_136, %c32_137] : memref<1x273xf32, #tpu.memory_space<vmem>>, vector<1x32xf32>
    %298 = vector.broadcast %297 : vector<1x32xf32> to vector<4x32xf32>
    %299 = arith.addf %296, %298 : vector<4x32xf32>
    %cst_138 = arith.constant 0.000000e+00 : f32
    %300 = vector.broadcast %cst_138 : f32 to vector<4x32xf32>
    %301 = arith.maximumf %299, %300 : vector<4x32xf32>
    %c0_139 = arith.constant 0 : index
    %c0_140 = arith.constant 0 : index
    %302 = vector.load %arg4[%c0_139, %c0_140] : memref<32x128xf32, #tpu.memory_space<vmem>>, vector<32x128xf32>
    %cst_141 = arith.constant dense<0.000000e+00> : vector<4x128xf32>
    %303 = tpu.matmul %301, %302, %cst_141 {dimension_numbers = #tpu.dot_dimension_numbers<[1], [0], [0], [1], [0, 0, 1, 1], [], []>} : vector<4x32xf32>, vector<32x128xf32>, vector<4x128xf32> -> vector<4x128xf32>
    %c0_142 = arith.constant 0 : index
    %c0_143 = arith.constant 0 : index
    %304 = vector.load %arg5[%c0_142, %c0_143] : memref<32x160xf32, #tpu.memory_space<vmem>>, vector<32x160xf32>
    %cst_144 = arith.constant dense<0.000000e+00> : vector<4x160xf32>
    %305 = tpu.matmul %267, %304, %cst_144 {dimension_numbers = #tpu.dot_dimension_numbers<[1], [0], [0], [1], [0, 0, 1, 1], [], []>} : vector<4x32xf32>, vector<32x160xf32>, vector<4x160xf32> -> vector<4x160xf32>
    %306 = vector.extract_strided_slice %303 {offsets = [0, 0], sizes = [4, 32], strides = [1, 1]} : vector<4x128xf32> to vector<4x32xf32>
    %307 = vector.extract_strided_slice %305 {offsets = [0, 0], sizes = [4, 32], strides = [1, 1]} : vector<4x160xf32> to vector<4x32xf32>
    %308 = arith.addf %306, %307 : vector<4x32xf32>
    %c0_145 = arith.constant 0 : index
    %c64_146 = arith.constant 64 : index
    %309 = vector.load %arg14[%c0_145, %c64_146] : memref<1x273xf32, #tpu.memory_space<vmem>>, vector<1x32xf32>
    %310 = vector.broadcast %309 : vector<1x32xf32> to vector<4x32xf32>
    %311 = arith.addf %308, %310 : vector<4x32xf32>
    %cst_147 = arith.constant 0.000000e+00 : f32
    %312 = vector.broadcast %cst_147 : f32 to vector<4x32xf32>
    %313 = arith.maximumf %311, %312 : vector<4x32xf32>
    %c0_148 = arith.constant 0 : index
    %c0_149 = arith.constant 0 : index
    %314 = vector.load %arg6[%c0_148, %c0_149] : memref<32x32xf32, #tpu.memory_space<vmem>>, vector<32x32xf32>
    %cst_150 = arith.constant dense<0.000000e+00> : vector<4x32xf32>
    %315 = tpu.matmul %313, %314, %cst_150 {dimension_numbers = #tpu.dot_dimension_numbers<[1], [0], [0], [1], [0, 0, 1, 1], [], []>} : vector<4x32xf32>, vector<32x32xf32>, vector<4x32xf32> -> vector<4x32xf32>
    %c0_151 = arith.constant 0 : index
    %c96_152 = arith.constant 96 : index
    %316 = vector.load %arg14[%c0_151, %c96_152] : memref<1x273xf32, #tpu.memory_space<vmem>>, vector<1x32xf32>
    %317 = vector.broadcast %316 : vector<1x32xf32> to vector<4x32xf32>
    %318 = arith.addf %315, %317 : vector<4x32xf32>
    %cst_153 = arith.constant 0.000000e+00 : f32
    %319 = vector.broadcast %cst_153 : f32 to vector<4x32xf32>
    %320 = arith.maximumf %318, %319 : vector<4x32xf32>
    %c0_154 = arith.constant 0 : index
    %c0_155 = arith.constant 0 : index
    %321 = vector.load %arg7[%c0_154, %c0_155] : memref<32x16xf32, #tpu.memory_space<vmem>>, vector<32x16xf32>
    %cst_156 = arith.constant dense<0.000000e+00> : vector<4x16xf32>
    %322 = tpu.matmul %320, %321, %cst_156 {dimension_numbers = #tpu.dot_dimension_numbers<[1], [0], [0], [1], [0, 0, 1, 1], [], []>} : vector<4x32xf32>, vector<32x16xf32>, vector<4x16xf32> -> vector<4x16xf32>
    %c0_157 = arith.constant 0 : index
    %c128_158 = arith.constant 128 : index
    %323 = vector.load %arg14[%c0_157, %c128_158] : memref<1x273xf32, #tpu.memory_space<vmem>>, vector<1x16xf32>
    %324 = vector.broadcast %323 : vector<1x16xf32> to vector<4x16xf32>
    %325 = arith.addf %322, %324 : vector<4x16xf32>
    %326 = vector.extract_strided_slice %325 {offsets = [0, 0], sizes = [4, 8], strides = [1, 1]} : vector<4x16xf32> to vector<4x8xf32>
    %327 = vector.extract_strided_slice %325 {offsets = [0, 8], sizes = [4, 8], strides = [1, 1]} : vector<4x16xf32> to vector<4x8xf32>
    %cst_159 = arith.constant 0.000000e+00 : f32
    %328 = vector.broadcast %cst_159 : f32 to vector<4x8xf32>
    %329 = arith.maximumf %327, %328 : vector<4x8xf32>
    %330 = vector.broadcast %cst_159 : f32 to vector<4x8xf32>
    %331 = arith.subf %327, %330 : vector<4x8xf32>
    %332 = arith.cmpf one, %331, %331 : vector<4x8xf32>
    %333 = vector.broadcast %cst_159 : f32 to vector<4x8xf32>
    %334 = arith.addf %327, %333 : vector<4x8xf32>
    %335 = math.absf %331 : vector<4x8xf32>
    %cst_160 = arith.constant 0.000000e+00 : f32
    %336 = vector.broadcast %cst_160 : f32 to vector<4x8xf32>
    %337 = arith.subf %336, %335 : vector<4x8xf32>
    %338 = math.exp %337 : vector<4x8xf32>
    %339 = math.log1p %338 : vector<4x8xf32>
    %340 = arith.addf %329, %339 : vector<4x8xf32>
    %341 = arith.select %332, %334, %340 : vector<4x8xi1>, vector<4x8xf32>
    %342 = vector.extract_strided_slice %305 {offsets = [0, 32], sizes = [4, 32], strides = [1, 1]} : vector<4x160xf32> to vector<4x32xf32>
    %c0_161 = arith.constant 0 : index
    %c144_162 = arith.constant 144 : index
    %343 = vector.load %arg14[%c0_161, %c144_162] : memref<1x273xf32, #tpu.memory_space<vmem>>, vector<1x32xf32>
    %344 = vector.broadcast %343 : vector<1x32xf32> to vector<4x32xf32>
    %345 = arith.addf %342, %344 : vector<4x32xf32>
    %cst_163 = arith.constant 0.000000e+00 : f32
    %346 = vector.broadcast %cst_163 : f32 to vector<4x32xf32>
    %347 = arith.maximumf %345, %346 : vector<4x32xf32>
    %c0_164 = arith.constant 0 : index
    %c0_165 = arith.constant 0 : index
    %348 = vector.load %arg8[%c0_164, %c0_165] : memref<32x16xf32, #tpu.memory_space<vmem>>, vector<32x16xf32>
    %cst_166 = arith.constant dense<0.000000e+00> : vector<4x16xf32>
    %349 = tpu.matmul %347, %348, %cst_166 {dimension_numbers = #tpu.dot_dimension_numbers<[1], [0], [0], [1], [0, 0, 1, 1], [], []>} : vector<4x32xf32>, vector<32x16xf32>, vector<4x16xf32> -> vector<4x16xf32>
    %c0_167 = arith.constant 0 : index
    %c176_168 = arith.constant 176 : index
    %350 = vector.load %arg14[%c0_167, %c176_168] : memref<1x273xf32, #tpu.memory_space<vmem>>, vector<1x16xf32>
    %351 = vector.broadcast %350 : vector<1x16xf32> to vector<4x16xf32>
    %352 = arith.addf %349, %351 : vector<4x16xf32>
    %353 = vector.extract_strided_slice %352 {offsets = [0, 0], sizes = [4, 8], strides = [1, 1]} : vector<4x16xf32> to vector<4x8xf32>
    %354 = vector.extract_strided_slice %352 {offsets = [0, 8], sizes = [4, 8], strides = [1, 1]} : vector<4x16xf32> to vector<4x8xf32>
    %cst_169 = arith.constant 0.000000e+00 : f32
    %355 = vector.broadcast %cst_169 : f32 to vector<4x8xf32>
    %356 = arith.maximumf %354, %355 : vector<4x8xf32>
    %357 = vector.broadcast %cst_169 : f32 to vector<4x8xf32>
    %358 = arith.subf %354, %357 : vector<4x8xf32>
    %359 = arith.cmpf one, %358, %358 : vector<4x8xf32>
    %360 = vector.broadcast %cst_169 : f32 to vector<4x8xf32>
    %361 = arith.addf %354, %360 : vector<4x8xf32>
    %362 = math.absf %358 : vector<4x8xf32>
    %cst_170 = arith.constant 0.000000e+00 : f32
    %363 = vector.broadcast %cst_170 : f32 to vector<4x8xf32>
    %364 = arith.subf %363, %362 : vector<4x8xf32>
    %365 = math.exp %364 : vector<4x8xf32>
    %366 = math.log1p %365 : vector<4x8xf32>
    %367 = arith.addf %356, %366 : vector<4x8xf32>
    %368 = arith.select %359, %361, %367 : vector<4x8xi1>, vector<4x8xf32>
    %369 = arith.mulf %287, %341 : vector<4x8xf32>
    %370 = arith.addf %369, %326 : vector<4x8xf32>
    %c0_171 = arith.constant 0 : index
    %c0_172 = arith.constant 0 : index
    %371 = vector.load %arg9[%c0_171, %c0_172] : memref<8x32xf32, #tpu.memory_space<vmem>>, vector<8x32xf32>
    %cst_173 = arith.constant dense<0.000000e+00> : vector<4x32xf32>
    %372 = tpu.matmul %370, %371, %cst_173 {dimension_numbers = #tpu.dot_dimension_numbers<[1], [0], [0], [1], [0, 0, 1, 1], [], []>} : vector<4x8xf32>, vector<8x32xf32>, vector<4x32xf32> -> vector<4x32xf32>
    %c0_174 = arith.constant 0 : index
    %c192_175 = arith.constant 192 : index
    %373 = vector.load %arg14[%c0_174, %c192_175] : memref<1x273xf32, #tpu.memory_space<vmem>>, vector<1x32xf32>
    %374 = vector.broadcast %373 : vector<1x32xf32> to vector<4x32xf32>
    %375 = arith.addf %372, %374 : vector<4x32xf32>
    %cst_176 = arith.constant 0.000000e+00 : f32
    %376 = vector.broadcast %cst_176 : f32 to vector<4x32xf32>
    %377 = arith.maximumf %375, %376 : vector<4x32xf32>
    %378 = vector.extract_strided_slice %303 {offsets = [0, 32], sizes = [4, 96], strides = [1, 1]} : vector<4x128xf32> to vector<4x96xf32>
    %c0_177 = arith.constant 0 : index
    %c0_178 = arith.constant 0 : index
    %379 = vector.load %arg10[%c0_177, %c0_178] : memref<32x96xf32, #tpu.memory_space<vmem>>, vector<32x96xf32>
    %cst_179 = arith.constant dense<0.000000e+00> : vector<4x96xf32>
    %380 = tpu.matmul %377, %379, %cst_179 {dimension_numbers = #tpu.dot_dimension_numbers<[1], [0], [0], [1], [0, 0, 1, 1], [], []>} : vector<4x32xf32>, vector<32x96xf32>, vector<4x96xf32> -> vector<4x96xf32>
    %381 = arith.addf %378, %380 : vector<4x96xf32>
    %382 = vector.extract_strided_slice %305 {offsets = [0, 64], sizes = [4, 96], strides = [1, 1]} : vector<4x160xf32> to vector<4x96xf32>
    %383 = vector.extract_strided_slice %381 {offsets = [0, 0], sizes = [4, 32], strides = [1, 1]} : vector<4x96xf32> to vector<4x32xf32>
    %384 = vector.extract_strided_slice %382 {offsets = [0, 0], sizes = [4, 32], strides = [1, 1]} : vector<4x96xf32> to vector<4x32xf32>
    %385 = arith.addf %383, %384 : vector<4x32xf32>
    %386 = arith.negf %385 : vector<4x32xf32>
    %387 = math.exp %386 : vector<4x32xf32>
    %cst_180 = arith.constant 1.000000e+00 : f32
    %388 = vector.broadcast %cst_180 : f32 to vector<4x32xf32>
    %389 = arith.addf %388, %387 : vector<4x32xf32>
    %390 = arith.divf %388, %389 : vector<4x32xf32>
    %391 = vector.extract_strided_slice %381 {offsets = [0, 32], sizes = [4, 32], strides = [1, 1]} : vector<4x96xf32> to vector<4x32xf32>
    %392 = vector.extract_strided_slice %382 {offsets = [0, 32], sizes = [4, 32], strides = [1, 1]} : vector<4x96xf32> to vector<4x32xf32>
    %393 = arith.addf %391, %392 : vector<4x32xf32>
    %394 = arith.negf %393 : vector<4x32xf32>
    %395 = math.exp %394 : vector<4x32xf32>
    %cst_181 = arith.constant 1.000000e+00 : f32
    %396 = vector.broadcast %cst_181 : f32 to vector<4x32xf32>
    %397 = arith.addf %396, %395 : vector<4x32xf32>
    %398 = arith.divf %396, %397 : vector<4x32xf32>
    %399 = vector.extract_strided_slice %381 {offsets = [0, 64], sizes = [4, 32], strides = [1, 1]} : vector<4x96xf32> to vector<4x32xf32>
    %400 = vector.extract_strided_slice %382 {offsets = [0, 64], sizes = [4, 32], strides = [1, 1]} : vector<4x96xf32> to vector<4x32xf32>
    %401 = arith.mulf %390, %400 : vector<4x32xf32>
    %402 = arith.addf %399, %401 : vector<4x32xf32>
    %403 = math.tanh %402 : vector<4x32xf32>
    %cst_182 = arith.constant 1.000000e+00 : f32
    %404 = vector.broadcast %cst_182 : f32 to vector<4x32xf32>
    %405 = arith.subf %404, %398 : vector<4x32xf32>
    %406 = arith.mulf %405, %403 : vector<4x32xf32>
    %407 = arith.mulf %398, %267 : vector<4x32xf32>
    %408 = arith.addf %406, %407 : vector<4x32xf32>
    %409 = arith.subf %326, %353 : vector<4x8xf32>
    %410 = arith.mulf %368, %368 : vector<4x8xf32>
    %cst_183 = arith.constant 1.000000e+00 : f32
    %411 = vector.broadcast %cst_183 : f32 to vector<4x8xf32>
    %412 = arith.divf %411, %410 : vector<4x8xf32>
    %413 = arith.divf %368, %341 : vector<4x8xf32>
    %414 = math.log %413 : vector<4x8xf32>
    %cst_184 = arith.constant 2.000000e+00 : f32
    %415 = vector.broadcast %cst_184 : f32 to vector<4x8xf32>
    %416 = arith.mulf %415, %414 : vector<4x8xf32>
    %417 = arith.mulf %341, %341 : vector<4x8xf32>
    %418 = arith.mulf %409, %409 : vector<4x8xf32>
    %419 = arith.addf %417, %418 : vector<4x8xf32>
    %420 = arith.mulf %419, %412 : vector<4x8xf32>
    %421 = arith.addf %416, %420 : vector<4x8xf32>
    %cst_185 = arith.constant 1.000000e+00 : f32
    %422 = vector.broadcast %cst_185 : f32 to vector<4x8xf32>
    %423 = arith.subf %421, %422 : vector<4x8xf32>
    %424 = arith.addf %283, %423 : vector<4x8xf32>
    %c3 = arith.constant 3 : index
    %c0_186 = arith.constant 0 : index
    %c0_187 = arith.constant 0 : index
    %425 = vector.load %arg0[%c3, %c0_186, %c0_187] : memref<8x4x16xf32, #tpu.memory_space<vmem>>, vector<1x4x16xf32>
    %426 = vector.shape_cast %425 : vector<1x4x16xf32> to vector<4x16xf32>
    %c3_188 = arith.constant 3 : index
    %c0_189 = arith.constant 0 : index
    %c0_190 = arith.constant 0 : index
    %427 = vector.load %arg1[%c3_188, %c0_189, %c0_190] : memref<8x4x8xf32, #tpu.memory_space<vmem>>, vector<1x4x8xf32>
    %428 = vector.shape_cast %427 : vector<1x4x8xf32> to vector<4x8xf32>
    %c0_191 = arith.constant 0 : index
    %c0_192 = arith.constant 0 : index
    %429 = vector.load %arg2[%c0_191, %c0_192] : memref<16x32xf32, #tpu.memory_space<vmem>>, vector<16x32xf32>
    %cst_193 = arith.constant dense<0.000000e+00> : vector<4x32xf32>
    %430 = tpu.matmul %426, %429, %cst_193 {dimension_numbers = #tpu.dot_dimension_numbers<[1], [0], [0], [1], [0, 0, 1, 1], [], []>} : vector<4x16xf32>, vector<16x32xf32>, vector<4x32xf32> -> vector<4x32xf32>
    %c0_194 = arith.constant 0 : index
    %c0_195 = arith.constant 0 : index
    %431 = vector.load %arg14[%c0_194, %c0_195] : memref<1x273xf32, #tpu.memory_space<vmem>>, vector<1x32xf32>
    %432 = vector.broadcast %431 : vector<1x32xf32> to vector<4x32xf32>
    %433 = arith.addf %430, %432 : vector<4x32xf32>
    %cst_196 = arith.constant 0.000000e+00 : f32
    %434 = vector.broadcast %cst_196 : f32 to vector<4x32xf32>
    %435 = arith.maximumf %433, %434 : vector<4x32xf32>
    %c0_197 = arith.constant 0 : index
    %c0_198 = arith.constant 0 : index
    %436 = vector.load %arg3[%c0_197, %c0_198] : memref<32x32xf32, #tpu.memory_space<vmem>>, vector<32x32xf32>
    %cst_199 = arith.constant dense<0.000000e+00> : vector<4x32xf32>
    %437 = tpu.matmul %435, %436, %cst_199 {dimension_numbers = #tpu.dot_dimension_numbers<[1], [0], [0], [1], [0, 0, 1, 1], [], []>} : vector<4x32xf32>, vector<32x32xf32>, vector<4x32xf32> -> vector<4x32xf32>
    %c0_200 = arith.constant 0 : index
    %c32_201 = arith.constant 32 : index
    %438 = vector.load %arg14[%c0_200, %c32_201] : memref<1x273xf32, #tpu.memory_space<vmem>>, vector<1x32xf32>
    %439 = vector.broadcast %438 : vector<1x32xf32> to vector<4x32xf32>
    %440 = arith.addf %437, %439 : vector<4x32xf32>
    %cst_202 = arith.constant 0.000000e+00 : f32
    %441 = vector.broadcast %cst_202 : f32 to vector<4x32xf32>
    %442 = arith.maximumf %440, %441 : vector<4x32xf32>
    %c0_203 = arith.constant 0 : index
    %c0_204 = arith.constant 0 : index
    %443 = vector.load %arg4[%c0_203, %c0_204] : memref<32x128xf32, #tpu.memory_space<vmem>>, vector<32x128xf32>
    %cst_205 = arith.constant dense<0.000000e+00> : vector<4x128xf32>
    %444 = tpu.matmul %442, %443, %cst_205 {dimension_numbers = #tpu.dot_dimension_numbers<[1], [0], [0], [1], [0, 0, 1, 1], [], []>} : vector<4x32xf32>, vector<32x128xf32>, vector<4x128xf32> -> vector<4x128xf32>
    %c0_206 = arith.constant 0 : index
    %c0_207 = arith.constant 0 : index
    %445 = vector.load %arg5[%c0_206, %c0_207] : memref<32x160xf32, #tpu.memory_space<vmem>>, vector<32x160xf32>
    %cst_208 = arith.constant dense<0.000000e+00> : vector<4x160xf32>
    %446 = tpu.matmul %408, %445, %cst_208 {dimension_numbers = #tpu.dot_dimension_numbers<[1], [0], [0], [1], [0, 0, 1, 1], [], []>} : vector<4x32xf32>, vector<32x160xf32>, vector<4x160xf32> -> vector<4x160xf32>
    %447 = vector.extract_strided_slice %444 {offsets = [0, 0], sizes = [4, 32], strides = [1, 1]} : vector<4x128xf32> to vector<4x32xf32>
    %448 = vector.extract_strided_slice %446 {offsets = [0, 0], sizes = [4, 32], strides = [1, 1]} : vector<4x160xf32> to vector<4x32xf32>
    %449 = arith.addf %447, %448 : vector<4x32xf32>
    %c0_209 = arith.constant 0 : index
    %c64_210 = arith.constant 64 : index
    %450 = vector.load %arg14[%c0_209, %c64_210] : memref<1x273xf32, #tpu.memory_space<vmem>>, vector<1x32xf32>
    %451 = vector.broadcast %450 : vector<1x32xf32> to vector<4x32xf32>
    %452 = arith.addf %449, %451 : vector<4x32xf32>
    %cst_211 = arith.constant 0.000000e+00 : f32
    %453 = vector.broadcast %cst_211 : f32 to vector<4x32xf32>
    %454 = arith.maximumf %452, %453 : vector<4x32xf32>
    %c0_212 = arith.constant 0 : index
    %c0_213 = arith.constant 0 : index
    %455 = vector.load %arg6[%c0_212, %c0_213] : memref<32x32xf32, #tpu.memory_space<vmem>>, vector<32x32xf32>
    %cst_214 = arith.constant dense<0.000000e+00> : vector<4x32xf32>
    %456 = tpu.matmul %454, %455, %cst_214 {dimension_numbers = #tpu.dot_dimension_numbers<[1], [0], [0], [1], [0, 0, 1, 1], [], []>} : vector<4x32xf32>, vector<32x32xf32>, vector<4x32xf32> -> vector<4x32xf32>
    %c0_215 = arith.constant 0 : index
    %c96_216 = arith.constant 96 : index
    %457 = vector.load %arg14[%c0_215, %c96_216] : memref<1x273xf32, #tpu.memory_space<vmem>>, vector<1x32xf32>
    %458 = vector.broadcast %457 : vector<1x32xf32> to vector<4x32xf32>
    %459 = arith.addf %456, %458 : vector<4x32xf32>
    %cst_217 = arith.constant 0.000000e+00 : f32
    %460 = vector.broadcast %cst_217 : f32 to vector<4x32xf32>
    %461 = arith.maximumf %459, %460 : vector<4x32xf32>
    %c0_218 = arith.constant 0 : index
    %c0_219 = arith.constant 0 : index
    %462 = vector.load %arg7[%c0_218, %c0_219] : memref<32x16xf32, #tpu.memory_space<vmem>>, vector<32x16xf32>
    %cst_220 = arith.constant dense<0.000000e+00> : vector<4x16xf32>
    %463 = tpu.matmul %461, %462, %cst_220 {dimension_numbers = #tpu.dot_dimension_numbers<[1], [0], [0], [1], [0, 0, 1, 1], [], []>} : vector<4x32xf32>, vector<32x16xf32>, vector<4x16xf32> -> vector<4x16xf32>
    %c0_221 = arith.constant 0 : index
    %c128_222 = arith.constant 128 : index
    %464 = vector.load %arg14[%c0_221, %c128_222] : memref<1x273xf32, #tpu.memory_space<vmem>>, vector<1x16xf32>
    %465 = vector.broadcast %464 : vector<1x16xf32> to vector<4x16xf32>
    %466 = arith.addf %463, %465 : vector<4x16xf32>
    %467 = vector.extract_strided_slice %466 {offsets = [0, 0], sizes = [4, 8], strides = [1, 1]} : vector<4x16xf32> to vector<4x8xf32>
    %468 = vector.extract_strided_slice %466 {offsets = [0, 8], sizes = [4, 8], strides = [1, 1]} : vector<4x16xf32> to vector<4x8xf32>
    %cst_223 = arith.constant 0.000000e+00 : f32
    %469 = vector.broadcast %cst_223 : f32 to vector<4x8xf32>
    %470 = arith.maximumf %468, %469 : vector<4x8xf32>
    %471 = vector.broadcast %cst_223 : f32 to vector<4x8xf32>
    %472 = arith.subf %468, %471 : vector<4x8xf32>
    %473 = arith.cmpf one, %472, %472 : vector<4x8xf32>
    %474 = vector.broadcast %cst_223 : f32 to vector<4x8xf32>
    %475 = arith.addf %468, %474 : vector<4x8xf32>
    %476 = math.absf %472 : vector<4x8xf32>
    %cst_224 = arith.constant 0.000000e+00 : f32
    %477 = vector.broadcast %cst_224 : f32 to vector<4x8xf32>
    %478 = arith.subf %477, %476 : vector<4x8xf32>
    %479 = math.exp %478 : vector<4x8xf32>
    %480 = math.log1p %479 : vector<4x8xf32>
    %481 = arith.addf %470, %480 : vector<4x8xf32>
    %482 = arith.select %473, %475, %481 : vector<4x8xi1>, vector<4x8xf32>
    %483 = vector.extract_strided_slice %446 {offsets = [0, 32], sizes = [4, 32], strides = [1, 1]} : vector<4x160xf32> to vector<4x32xf32>
    %c0_225 = arith.constant 0 : index
    %c144_226 = arith.constant 144 : index
    %484 = vector.load %arg14[%c0_225, %c144_226] : memref<1x273xf32, #tpu.memory_space<vmem>>, vector<1x32xf32>
    %485 = vector.broadcast %484 : vector<1x32xf32> to vector<4x32xf32>
    %486 = arith.addf %483, %485 : vector<4x32xf32>
    %cst_227 = arith.constant 0.000000e+00 : f32
    %487 = vector.broadcast %cst_227 : f32 to vector<4x32xf32>
    %488 = arith.maximumf %486, %487 : vector<4x32xf32>
    %c0_228 = arith.constant 0 : index
    %c0_229 = arith.constant 0 : index
    %489 = vector.load %arg8[%c0_228, %c0_229] : memref<32x16xf32, #tpu.memory_space<vmem>>, vector<32x16xf32>
    %cst_230 = arith.constant dense<0.000000e+00> : vector<4x16xf32>
    %490 = tpu.matmul %488, %489, %cst_230 {dimension_numbers = #tpu.dot_dimension_numbers<[1], [0], [0], [1], [0, 0, 1, 1], [], []>} : vector<4x32xf32>, vector<32x16xf32>, vector<4x16xf32> -> vector<4x16xf32>
    %c0_231 = arith.constant 0 : index
    %c176_232 = arith.constant 176 : index
    %491 = vector.load %arg14[%c0_231, %c176_232] : memref<1x273xf32, #tpu.memory_space<vmem>>, vector<1x16xf32>
    %492 = vector.broadcast %491 : vector<1x16xf32> to vector<4x16xf32>
    %493 = arith.addf %490, %492 : vector<4x16xf32>
    %494 = vector.extract_strided_slice %493 {offsets = [0, 0], sizes = [4, 8], strides = [1, 1]} : vector<4x16xf32> to vector<4x8xf32>
    %495 = vector.extract_strided_slice %493 {offsets = [0, 8], sizes = [4, 8], strides = [1, 1]} : vector<4x16xf32> to vector<4x8xf32>
    %cst_233 = arith.constant 0.000000e+00 : f32
    %496 = vector.broadcast %cst_233 : f32 to vector<4x8xf32>
    %497 = arith.maximumf %495, %496 : vector<4x8xf32>
    %498 = vector.broadcast %cst_233 : f32 to vector<4x8xf32>
    %499 = arith.subf %495, %498 : vector<4x8xf32>
    %500 = arith.cmpf one, %499, %499 : vector<4x8xf32>
    %501 = vector.broadcast %cst_233 : f32 to vector<4x8xf32>
    %502 = arith.addf %495, %501 : vector<4x8xf32>
    %503 = math.absf %499 : vector<4x8xf32>
    %cst_234 = arith.constant 0.000000e+00 : f32
    %504 = vector.broadcast %cst_234 : f32 to vector<4x8xf32>
    %505 = arith.subf %504, %503 : vector<4x8xf32>
    %506 = math.exp %505 : vector<4x8xf32>
    %507 = math.log1p %506 : vector<4x8xf32>
    %508 = arith.addf %497, %507 : vector<4x8xf32>
    %509 = arith.select %500, %502, %508 : vector<4x8xi1>, vector<4x8xf32>
    %510 = arith.mulf %428, %482 : vector<4x8xf32>
    %511 = arith.addf %510, %467 : vector<4x8xf32>
    %c0_235 = arith.constant 0 : index
    %c0_236 = arith.constant 0 : index
    %512 = vector.load %arg9[%c0_235, %c0_236] : memref<8x32xf32, #tpu.memory_space<vmem>>, vector<8x32xf32>
    %cst_237 = arith.constant dense<0.000000e+00> : vector<4x32xf32>
    %513 = tpu.matmul %511, %512, %cst_237 {dimension_numbers = #tpu.dot_dimension_numbers<[1], [0], [0], [1], [0, 0, 1, 1], [], []>} : vector<4x8xf32>, vector<8x32xf32>, vector<4x32xf32> -> vector<4x32xf32>
    %c0_238 = arith.constant 0 : index
    %c192_239 = arith.constant 192 : index
    %514 = vector.load %arg14[%c0_238, %c192_239] : memref<1x273xf32, #tpu.memory_space<vmem>>, vector<1x32xf32>
    %515 = vector.broadcast %514 : vector<1x32xf32> to vector<4x32xf32>
    %516 = arith.addf %513, %515 : vector<4x32xf32>
    %cst_240 = arith.constant 0.000000e+00 : f32
    %517 = vector.broadcast %cst_240 : f32 to vector<4x32xf32>
    %518 = arith.maximumf %516, %517 : vector<4x32xf32>
    %519 = vector.extract_strided_slice %444 {offsets = [0, 32], sizes = [4, 96], strides = [1, 1]} : vector<4x128xf32> to vector<4x96xf32>
    %c0_241 = arith.constant 0 : index
    %c0_242 = arith.constant 0 : index
    %520 = vector.load %arg10[%c0_241, %c0_242] : memref<32x96xf32, #tpu.memory_space<vmem>>, vector<32x96xf32>
    %cst_243 = arith.constant dense<0.000000e+00> : vector<4x96xf32>
    %521 = tpu.matmul %518, %520, %cst_243 {dimension_numbers = #tpu.dot_dimension_numbers<[1], [0], [0], [1], [0, 0, 1, 1], [], []>} : vector<4x32xf32>, vector<32x96xf32>, vector<4x96xf32> -> vector<4x96xf32>
    %522 = arith.addf %519, %521 : vector<4x96xf32>
    %523 = vector.extract_strided_slice %446 {offsets = [0, 64], sizes = [4, 96], strides = [1, 1]} : vector<4x160xf32> to vector<4x96xf32>
    %524 = vector.extract_strided_slice %522 {offsets = [0, 0], sizes = [4, 32], strides = [1, 1]} : vector<4x96xf32> to vector<4x32xf32>
    %525 = vector.extract_strided_slice %523 {offsets = [0, 0], sizes = [4, 32], strides = [1, 1]} : vector<4x96xf32> to vector<4x32xf32>
    %526 = arith.addf %524, %525 : vector<4x32xf32>
    %527 = arith.negf %526 : vector<4x32xf32>
    %528 = math.exp %527 : vector<4x32xf32>
    %cst_244 = arith.constant 1.000000e+00 : f32
    %529 = vector.broadcast %cst_244 : f32 to vector<4x32xf32>
    %530 = arith.addf %529, %528 : vector<4x32xf32>
    %531 = arith.divf %529, %530 : vector<4x32xf32>
    %532 = vector.extract_strided_slice %522 {offsets = [0, 32], sizes = [4, 32], strides = [1, 1]} : vector<4x96xf32> to vector<4x32xf32>
    %533 = vector.extract_strided_slice %523 {offsets = [0, 32], sizes = [4, 32], strides = [1, 1]} : vector<4x96xf32> to vector<4x32xf32>
    %534 = arith.addf %532, %533 : vector<4x32xf32>
    %535 = arith.negf %534 : vector<4x32xf32>
    %536 = math.exp %535 : vector<4x32xf32>
    %cst_245 = arith.constant 1.000000e+00 : f32
    %537 = vector.broadcast %cst_245 : f32 to vector<4x32xf32>
    %538 = arith.addf %537, %536 : vector<4x32xf32>
    %539 = arith.divf %537, %538 : vector<4x32xf32>
    %540 = vector.extract_strided_slice %522 {offsets = [0, 64], sizes = [4, 32], strides = [1, 1]} : vector<4x96xf32> to vector<4x32xf32>
    %541 = vector.extract_strided_slice %523 {offsets = [0, 64], sizes = [4, 32], strides = [1, 1]} : vector<4x96xf32> to vector<4x32xf32>
    %542 = arith.mulf %531, %541 : vector<4x32xf32>
    %543 = arith.addf %540, %542 : vector<4x32xf32>
    %544 = math.tanh %543 : vector<4x32xf32>
    %cst_246 = arith.constant 1.000000e+00 : f32
    %545 = vector.broadcast %cst_246 : f32 to vector<4x32xf32>
    %546 = arith.subf %545, %539 : vector<4x32xf32>
    %547 = arith.mulf %546, %544 : vector<4x32xf32>
    %548 = arith.mulf %539, %408 : vector<4x32xf32>
    %549 = arith.addf %547, %548 : vector<4x32xf32>
    %550 = arith.subf %467, %494 : vector<4x8xf32>
    %551 = arith.mulf %509, %509 : vector<4x8xf32>
    %cst_247 = arith.constant 1.000000e+00 : f32
    %552 = vector.broadcast %cst_247 : f32 to vector<4x8xf32>
    %553 = arith.divf %552, %551 : vector<4x8xf32>
    %554 = arith.divf %509, %482 : vector<4x8xf32>
    %555 = math.log %554 : vector<4x8xf32>
    %cst_248 = arith.constant 2.000000e+00 : f32
    %556 = vector.broadcast %cst_248 : f32 to vector<4x8xf32>
    %557 = arith.mulf %556, %555 : vector<4x8xf32>
    %558 = arith.mulf %482, %482 : vector<4x8xf32>
    %559 = arith.mulf %550, %550 : vector<4x8xf32>
    %560 = arith.addf %558, %559 : vector<4x8xf32>
    %561 = arith.mulf %560, %553 : vector<4x8xf32>
    %562 = arith.addf %557, %561 : vector<4x8xf32>
    %cst_249 = arith.constant 1.000000e+00 : f32
    %563 = vector.broadcast %cst_249 : f32 to vector<4x8xf32>
    %564 = arith.subf %562, %563 : vector<4x8xf32>
    %565 = arith.addf %424, %564 : vector<4x8xf32>
    %c4 = arith.constant 4 : index
    %c0_250 = arith.constant 0 : index
    %c0_251 = arith.constant 0 : index
    %566 = vector.load %arg0[%c4, %c0_250, %c0_251] : memref<8x4x16xf32, #tpu.memory_space<vmem>>, vector<1x4x16xf32>
    %567 = vector.shape_cast %566 : vector<1x4x16xf32> to vector<4x16xf32>
    %c4_252 = arith.constant 4 : index
    %c0_253 = arith.constant 0 : index
    %c0_254 = arith.constant 0 : index
    %568 = vector.load %arg1[%c4_252, %c0_253, %c0_254] : memref<8x4x8xf32, #tpu.memory_space<vmem>>, vector<1x4x8xf32>
    %569 = vector.shape_cast %568 : vector<1x4x8xf32> to vector<4x8xf32>
    %c0_255 = arith.constant 0 : index
    %c0_256 = arith.constant 0 : index
    %570 = vector.load %arg2[%c0_255, %c0_256] : memref<16x32xf32, #tpu.memory_space<vmem>>, vector<16x32xf32>
    %cst_257 = arith.constant dense<0.000000e+00> : vector<4x32xf32>
    %571 = tpu.matmul %567, %570, %cst_257 {dimension_numbers = #tpu.dot_dimension_numbers<[1], [0], [0], [1], [0, 0, 1, 1], [], []>} : vector<4x16xf32>, vector<16x32xf32>, vector<4x32xf32> -> vector<4x32xf32>
    %c0_258 = arith.constant 0 : index
    %c0_259 = arith.constant 0 : index
    %572 = vector.load %arg14[%c0_258, %c0_259] : memref<1x273xf32, #tpu.memory_space<vmem>>, vector<1x32xf32>
    %573 = vector.broadcast %572 : vector<1x32xf32> to vector<4x32xf32>
    %574 = arith.addf %571, %573 : vector<4x32xf32>
    %cst_260 = arith.constant 0.000000e+00 : f32
    %575 = vector.broadcast %cst_260 : f32 to vector<4x32xf32>
    %576 = arith.maximumf %574, %575 : vector<4x32xf32>
    %c0_261 = arith.constant 0 : index
    %c0_262 = arith.constant 0 : index
    %577 = vector.load %arg3[%c0_261, %c0_262] : memref<32x32xf32, #tpu.memory_space<vmem>>, vector<32x32xf32>
    %cst_263 = arith.constant dense<0.000000e+00> : vector<4x32xf32>
    %578 = tpu.matmul %576, %577, %cst_263 {dimension_numbers = #tpu.dot_dimension_numbers<[1], [0], [0], [1], [0, 0, 1, 1], [], []>} : vector<4x32xf32>, vector<32x32xf32>, vector<4x32xf32> -> vector<4x32xf32>
    %c0_264 = arith.constant 0 : index
    %c32_265 = arith.constant 32 : index
    %579 = vector.load %arg14[%c0_264, %c32_265] : memref<1x273xf32, #tpu.memory_space<vmem>>, vector<1x32xf32>
    %580 = vector.broadcast %579 : vector<1x32xf32> to vector<4x32xf32>
    %581 = arith.addf %578, %580 : vector<4x32xf32>
    %cst_266 = arith.constant 0.000000e+00 : f32
    %582 = vector.broadcast %cst_266 : f32 to vector<4x32xf32>
    %583 = arith.maximumf %581, %582 : vector<4x32xf32>
    %c0_267 = arith.constant 0 : index
    %c0_268 = arith.constant 0 : index
    %584 = vector.load %arg4[%c0_267, %c0_268] : memref<32x128xf32, #tpu.memory_space<vmem>>, vector<32x128xf32>
    %cst_269 = arith.constant dense<0.000000e+00> : vector<4x128xf32>
    %585 = tpu.matmul %583, %584, %cst_269 {dimension_numbers = #tpu.dot_dimension_numbers<[1], [0], [0], [1], [0, 0, 1, 1], [], []>} : vector<4x32xf32>, vector<32x128xf32>, vector<4x128xf32> -> vector<4x128xf32>
    %c0_270 = arith.constant 0 : index
    %c0_271 = arith.constant 0 : index
    %586 = vector.load %arg5[%c0_270, %c0_271] : memref<32x160xf32, #tpu.memory_space<vmem>>, vector<32x160xf32>
    %cst_272 = arith.constant dense<0.000000e+00> : vector<4x160xf32>
    %587 = tpu.matmul %549, %586, %cst_272 {dimension_numbers = #tpu.dot_dimension_numbers<[1], [0], [0], [1], [0, 0, 1, 1], [], []>} : vector<4x32xf32>, vector<32x160xf32>, vector<4x160xf32> -> vector<4x160xf32>
    %588 = vector.extract_strided_slice %585 {offsets = [0, 0], sizes = [4, 32], strides = [1, 1]} : vector<4x128xf32> to vector<4x32xf32>
    %589 = vector.extract_strided_slice %587 {offsets = [0, 0], sizes = [4, 32], strides = [1, 1]} : vector<4x160xf32> to vector<4x32xf32>
    %590 = arith.addf %588, %589 : vector<4x32xf32>
    %c0_273 = arith.constant 0 : index
    %c64_274 = arith.constant 64 : index
    %591 = vector.load %arg14[%c0_273, %c64_274] : memref<1x273xf32, #tpu.memory_space<vmem>>, vector<1x32xf32>
    %592 = vector.broadcast %591 : vector<1x32xf32> to vector<4x32xf32>
    %593 = arith.addf %590, %592 : vector<4x32xf32>
    %cst_275 = arith.constant 0.000000e+00 : f32
    %594 = vector.broadcast %cst_275 : f32 to vector<4x32xf32>
    %595 = arith.maximumf %593, %594 : vector<4x32xf32>
    %c0_276 = arith.constant 0 : index
    %c0_277 = arith.constant 0 : index
    %596 = vector.load %arg6[%c0_276, %c0_277] : memref<32x32xf32, #tpu.memory_space<vmem>>, vector<32x32xf32>
    %cst_278 = arith.constant dense<0.000000e+00> : vector<4x32xf32>
    %597 = tpu.matmul %595, %596, %cst_278 {dimension_numbers = #tpu.dot_dimension_numbers<[1], [0], [0], [1], [0, 0, 1, 1], [], []>} : vector<4x32xf32>, vector<32x32xf32>, vector<4x32xf32> -> vector<4x32xf32>
    %c0_279 = arith.constant 0 : index
    %c96_280 = arith.constant 96 : index
    %598 = vector.load %arg14[%c0_279, %c96_280] : memref<1x273xf32, #tpu.memory_space<vmem>>, vector<1x32xf32>
    %599 = vector.broadcast %598 : vector<1x32xf32> to vector<4x32xf32>
    %600 = arith.addf %597, %599 : vector<4x32xf32>
    %cst_281 = arith.constant 0.000000e+00 : f32
    %601 = vector.broadcast %cst_281 : f32 to vector<4x32xf32>
    %602 = arith.maximumf %600, %601 : vector<4x32xf32>
    %c0_282 = arith.constant 0 : index
    %c0_283 = arith.constant 0 : index
    %603 = vector.load %arg7[%c0_282, %c0_283] : memref<32x16xf32, #tpu.memory_space<vmem>>, vector<32x16xf32>
    %cst_284 = arith.constant dense<0.000000e+00> : vector<4x16xf32>
    %604 = tpu.matmul %602, %603, %cst_284 {dimension_numbers = #tpu.dot_dimension_numbers<[1], [0], [0], [1], [0, 0, 1, 1], [], []>} : vector<4x32xf32>, vector<32x16xf32>, vector<4x16xf32> -> vector<4x16xf32>
    %c0_285 = arith.constant 0 : index
    %c128_286 = arith.constant 128 : index
    %605 = vector.load %arg14[%c0_285, %c128_286] : memref<1x273xf32, #tpu.memory_space<vmem>>, vector<1x16xf32>
    %606 = vector.broadcast %605 : vector<1x16xf32> to vector<4x16xf32>
    %607 = arith.addf %604, %606 : vector<4x16xf32>
    %608 = vector.extract_strided_slice %607 {offsets = [0, 0], sizes = [4, 8], strides = [1, 1]} : vector<4x16xf32> to vector<4x8xf32>
    %609 = vector.extract_strided_slice %607 {offsets = [0, 8], sizes = [4, 8], strides = [1, 1]} : vector<4x16xf32> to vector<4x8xf32>
    %cst_287 = arith.constant 0.000000e+00 : f32
    %610 = vector.broadcast %cst_287 : f32 to vector<4x8xf32>
    %611 = arith.maximumf %609, %610 : vector<4x8xf32>
    %612 = vector.broadcast %cst_287 : f32 to vector<4x8xf32>
    %613 = arith.subf %609, %612 : vector<4x8xf32>
    %614 = arith.cmpf one, %613, %613 : vector<4x8xf32>
    %615 = vector.broadcast %cst_287 : f32 to vector<4x8xf32>
    %616 = arith.addf %609, %615 : vector<4x8xf32>
    %617 = math.absf %613 : vector<4x8xf32>
    %cst_288 = arith.constant 0.000000e+00 : f32
    %618 = vector.broadcast %cst_288 : f32 to vector<4x8xf32>
    %619 = arith.subf %618, %617 : vector<4x8xf32>
    %620 = math.exp %619 : vector<4x8xf32>
    %621 = math.log1p %620 : vector<4x8xf32>
    %622 = arith.addf %611, %621 : vector<4x8xf32>
    %623 = arith.select %614, %616, %622 : vector<4x8xi1>, vector<4x8xf32>
    %624 = vector.extract_strided_slice %587 {offsets = [0, 32], sizes = [4, 32], strides = [1, 1]} : vector<4x160xf32> to vector<4x32xf32>
    %c0_289 = arith.constant 0 : index
    %c144_290 = arith.constant 144 : index
    %625 = vector.load %arg14[%c0_289, %c144_290] : memref<1x273xf32, #tpu.memory_space<vmem>>, vector<1x32xf32>
    %626 = vector.broadcast %625 : vector<1x32xf32> to vector<4x32xf32>
    %627 = arith.addf %624, %626 : vector<4x32xf32>
    %cst_291 = arith.constant 0.000000e+00 : f32
    %628 = vector.broadcast %cst_291 : f32 to vector<4x32xf32>
    %629 = arith.maximumf %627, %628 : vector<4x32xf32>
    %c0_292 = arith.constant 0 : index
    %c0_293 = arith.constant 0 : index
    %630 = vector.load %arg8[%c0_292, %c0_293] : memref<32x16xf32, #tpu.memory_space<vmem>>, vector<32x16xf32>
    %cst_294 = arith.constant dense<0.000000e+00> : vector<4x16xf32>
    %631 = tpu.matmul %629, %630, %cst_294 {dimension_numbers = #tpu.dot_dimension_numbers<[1], [0], [0], [1], [0, 0, 1, 1], [], []>} : vector<4x32xf32>, vector<32x16xf32>, vector<4x16xf32> -> vector<4x16xf32>
    %c0_295 = arith.constant 0 : index
    %c176_296 = arith.constant 176 : index
    %632 = vector.load %arg14[%c0_295, %c176_296] : memref<1x273xf32, #tpu.memory_space<vmem>>, vector<1x16xf32>
    %633 = vector.broadcast %632 : vector<1x16xf32> to vector<4x16xf32>
    %634 = arith.addf %631, %633 : vector<4x16xf32>
    %635 = vector.extract_strided_slice %634 {offsets = [0, 0], sizes = [4, 8], strides = [1, 1]} : vector<4x16xf32> to vector<4x8xf32>
    %636 = vector.extract_strided_slice %634 {offsets = [0, 8], sizes = [4, 8], strides = [1, 1]} : vector<4x16xf32> to vector<4x8xf32>
    %cst_297 = arith.constant 0.000000e+00 : f32
    %637 = vector.broadcast %cst_297 : f32 to vector<4x8xf32>
    %638 = arith.maximumf %636, %637 : vector<4x8xf32>
    %639 = vector.broadcast %cst_297 : f32 to vector<4x8xf32>
    %640 = arith.subf %636, %639 : vector<4x8xf32>
    %641 = arith.cmpf one, %640, %640 : vector<4x8xf32>
    %642 = vector.broadcast %cst_297 : f32 to vector<4x8xf32>
    %643 = arith.addf %636, %642 : vector<4x8xf32>
    %644 = math.absf %640 : vector<4x8xf32>
    %cst_298 = arith.constant 0.000000e+00 : f32
    %645 = vector.broadcast %cst_298 : f32 to vector<4x8xf32>
    %646 = arith.subf %645, %644 : vector<4x8xf32>
    %647 = math.exp %646 : vector<4x8xf32>
    %648 = math.log1p %647 : vector<4x8xf32>
    %649 = arith.addf %638, %648 : vector<4x8xf32>
    %650 = arith.select %641, %643, %649 : vector<4x8xi1>, vector<4x8xf32>
    %651 = arith.mulf %569, %623 : vector<4x8xf32>
    %652 = arith.addf %651, %608 : vector<4x8xf32>
    %c0_299 = arith.constant 0 : index
    %c0_300 = arith.constant 0 : index
    %653 = vector.load %arg9[%c0_299, %c0_300] : memref<8x32xf32, #tpu.memory_space<vmem>>, vector<8x32xf32>
    %cst_301 = arith.constant dense<0.000000e+00> : vector<4x32xf32>
    %654 = tpu.matmul %652, %653, %cst_301 {dimension_numbers = #tpu.dot_dimension_numbers<[1], [0], [0], [1], [0, 0, 1, 1], [], []>} : vector<4x8xf32>, vector<8x32xf32>, vector<4x32xf32> -> vector<4x32xf32>
    %c0_302 = arith.constant 0 : index
    %c192_303 = arith.constant 192 : index
    %655 = vector.load %arg14[%c0_302, %c192_303] : memref<1x273xf32, #tpu.memory_space<vmem>>, vector<1x32xf32>
    %656 = vector.broadcast %655 : vector<1x32xf32> to vector<4x32xf32>
    %657 = arith.addf %654, %656 : vector<4x32xf32>
    %cst_304 = arith.constant 0.000000e+00 : f32
    %658 = vector.broadcast %cst_304 : f32 to vector<4x32xf32>
    %659 = arith.maximumf %657, %658 : vector<4x32xf32>
    %660 = vector.extract_strided_slice %585 {offsets = [0, 32], sizes = [4, 96], strides = [1, 1]} : vector<4x128xf32> to vector<4x96xf32>
    %c0_305 = arith.constant 0 : index
    %c0_306 = arith.constant 0 : index
    %661 = vector.load %arg10[%c0_305, %c0_306] : memref<32x96xf32, #tpu.memory_space<vmem>>, vector<32x96xf32>
    %cst_307 = arith.constant dense<0.000000e+00> : vector<4x96xf32>
    %662 = tpu.matmul %659, %661, %cst_307 {dimension_numbers = #tpu.dot_dimension_numbers<[1], [0], [0], [1], [0, 0, 1, 1], [], []>} : vector<4x32xf32>, vector<32x96xf32>, vector<4x96xf32> -> vector<4x96xf32>
    %663 = arith.addf %660, %662 : vector<4x96xf32>
    %664 = vector.extract_strided_slice %587 {offsets = [0, 64], sizes = [4, 96], strides = [1, 1]} : vector<4x160xf32> to vector<4x96xf32>
    %665 = vector.extract_strided_slice %663 {offsets = [0, 0], sizes = [4, 32], strides = [1, 1]} : vector<4x96xf32> to vector<4x32xf32>
    %666 = vector.extract_strided_slice %664 {offsets = [0, 0], sizes = [4, 32], strides = [1, 1]} : vector<4x96xf32> to vector<4x32xf32>
    %667 = arith.addf %665, %666 : vector<4x32xf32>
    %668 = arith.negf %667 : vector<4x32xf32>
    %669 = math.exp %668 : vector<4x32xf32>
    %cst_308 = arith.constant 1.000000e+00 : f32
    %670 = vector.broadcast %cst_308 : f32 to vector<4x32xf32>
    %671 = arith.addf %670, %669 : vector<4x32xf32>
    %672 = arith.divf %670, %671 : vector<4x32xf32>
    %673 = vector.extract_strided_slice %663 {offsets = [0, 32], sizes = [4, 32], strides = [1, 1]} : vector<4x96xf32> to vector<4x32xf32>
    %674 = vector.extract_strided_slice %664 {offsets = [0, 32], sizes = [4, 32], strides = [1, 1]} : vector<4x96xf32> to vector<4x32xf32>
    %675 = arith.addf %673, %674 : vector<4x32xf32>
    %676 = arith.negf %675 : vector<4x32xf32>
    %677 = math.exp %676 : vector<4x32xf32>
    %cst_309 = arith.constant 1.000000e+00 : f32
    %678 = vector.broadcast %cst_309 : f32 to vector<4x32xf32>
    %679 = arith.addf %678, %677 : vector<4x32xf32>
    %680 = arith.divf %678, %679 : vector<4x32xf32>
    %681 = vector.extract_strided_slice %663 {offsets = [0, 64], sizes = [4, 32], strides = [1, 1]} : vector<4x96xf32> to vector<4x32xf32>
    %682 = vector.extract_strided_slice %664 {offsets = [0, 64], sizes = [4, 32], strides = [1, 1]} : vector<4x96xf32> to vector<4x32xf32>
    %683 = arith.mulf %672, %682 : vector<4x32xf32>
    %684 = arith.addf %681, %683 : vector<4x32xf32>
    %685 = math.tanh %684 : vector<4x32xf32>
    %cst_310 = arith.constant 1.000000e+00 : f32
    %686 = vector.broadcast %cst_310 : f32 to vector<4x32xf32>
    %687 = arith.subf %686, %680 : vector<4x32xf32>
    %688 = arith.mulf %687, %685 : vector<4x32xf32>
    %689 = arith.mulf %680, %549 : vector<4x32xf32>
    %690 = arith.addf %688, %689 : vector<4x32xf32>
    %691 = arith.subf %608, %635 : vector<4x8xf32>
    %692 = arith.mulf %650, %650 : vector<4x8xf32>
    %cst_311 = arith.constant 1.000000e+00 : f32
    %693 = vector.broadcast %cst_311 : f32 to vector<4x8xf32>
    %694 = arith.divf %693, %692 : vector<4x8xf32>
    %695 = arith.divf %650, %623 : vector<4x8xf32>
    %696 = math.log %695 : vector<4x8xf32>
    %cst_312 = arith.constant 2.000000e+00 : f32
    %697 = vector.broadcast %cst_312 : f32 to vector<4x8xf32>
    %698 = arith.mulf %697, %696 : vector<4x8xf32>
    %699 = arith.mulf %623, %623 : vector<4x8xf32>
    %700 = arith.mulf %691, %691 : vector<4x8xf32>
    %701 = arith.addf %699, %700 : vector<4x8xf32>
    %702 = arith.mulf %701, %694 : vector<4x8xf32>
    %703 = arith.addf %698, %702 : vector<4x8xf32>
    %cst_313 = arith.constant 1.000000e+00 : f32
    %704 = vector.broadcast %cst_313 : f32 to vector<4x8xf32>
    %705 = arith.subf %703, %704 : vector<4x8xf32>
    %706 = arith.addf %565, %705 : vector<4x8xf32>
    %c5 = arith.constant 5 : index
    %c0_314 = arith.constant 0 : index
    %c0_315 = arith.constant 0 : index
    %707 = vector.load %arg0[%c5, %c0_314, %c0_315] : memref<8x4x16xf32, #tpu.memory_space<vmem>>, vector<1x4x16xf32>
    %708 = vector.shape_cast %707 : vector<1x4x16xf32> to vector<4x16xf32>
    %c5_316 = arith.constant 5 : index
    %c0_317 = arith.constant 0 : index
    %c0_318 = arith.constant 0 : index
    %709 = vector.load %arg1[%c5_316, %c0_317, %c0_318] : memref<8x4x8xf32, #tpu.memory_space<vmem>>, vector<1x4x8xf32>
    %710 = vector.shape_cast %709 : vector<1x4x8xf32> to vector<4x8xf32>
    %c0_319 = arith.constant 0 : index
    %c0_320 = arith.constant 0 : index
    %711 = vector.load %arg2[%c0_319, %c0_320] : memref<16x32xf32, #tpu.memory_space<vmem>>, vector<16x32xf32>
    %cst_321 = arith.constant dense<0.000000e+00> : vector<4x32xf32>
    %712 = tpu.matmul %708, %711, %cst_321 {dimension_numbers = #tpu.dot_dimension_numbers<[1], [0], [0], [1], [0, 0, 1, 1], [], []>} : vector<4x16xf32>, vector<16x32xf32>, vector<4x32xf32> -> vector<4x32xf32>
    %c0_322 = arith.constant 0 : index
    %c0_323 = arith.constant 0 : index
    %713 = vector.load %arg14[%c0_322, %c0_323] : memref<1x273xf32, #tpu.memory_space<vmem>>, vector<1x32xf32>
    %714 = vector.broadcast %713 : vector<1x32xf32> to vector<4x32xf32>
    %715 = arith.addf %712, %714 : vector<4x32xf32>
    %cst_324 = arith.constant 0.000000e+00 : f32
    %716 = vector.broadcast %cst_324 : f32 to vector<4x32xf32>
    %717 = arith.maximumf %715, %716 : vector<4x32xf32>
    %c0_325 = arith.constant 0 : index
    %c0_326 = arith.constant 0 : index
    %718 = vector.load %arg3[%c0_325, %c0_326] : memref<32x32xf32, #tpu.memory_space<vmem>>, vector<32x32xf32>
    %cst_327 = arith.constant dense<0.000000e+00> : vector<4x32xf32>
    %719 = tpu.matmul %717, %718, %cst_327 {dimension_numbers = #tpu.dot_dimension_numbers<[1], [0], [0], [1], [0, 0, 1, 1], [], []>} : vector<4x32xf32>, vector<32x32xf32>, vector<4x32xf32> -> vector<4x32xf32>
    %c0_328 = arith.constant 0 : index
    %c32_329 = arith.constant 32 : index
    %720 = vector.load %arg14[%c0_328, %c32_329] : memref<1x273xf32, #tpu.memory_space<vmem>>, vector<1x32xf32>
    %721 = vector.broadcast %720 : vector<1x32xf32> to vector<4x32xf32>
    %722 = arith.addf %719, %721 : vector<4x32xf32>
    %cst_330 = arith.constant 0.000000e+00 : f32
    %723 = vector.broadcast %cst_330 : f32 to vector<4x32xf32>
    %724 = arith.maximumf %722, %723 : vector<4x32xf32>
    %c0_331 = arith.constant 0 : index
    %c0_332 = arith.constant 0 : index
    %725 = vector.load %arg4[%c0_331, %c0_332] : memref<32x128xf32, #tpu.memory_space<vmem>>, vector<32x128xf32>
    %cst_333 = arith.constant dense<0.000000e+00> : vector<4x128xf32>
    %726 = tpu.matmul %724, %725, %cst_333 {dimension_numbers = #tpu.dot_dimension_numbers<[1], [0], [0], [1], [0, 0, 1, 1], [], []>} : vector<4x32xf32>, vector<32x128xf32>, vector<4x128xf32> -> vector<4x128xf32>
    %c0_334 = arith.constant 0 : index
    %c0_335 = arith.constant 0 : index
    %727 = vector.load %arg5[%c0_334, %c0_335] : memref<32x160xf32, #tpu.memory_space<vmem>>, vector<32x160xf32>
    %cst_336 = arith.constant dense<0.000000e+00> : vector<4x160xf32>
    %728 = tpu.matmul %690, %727, %cst_336 {dimension_numbers = #tpu.dot_dimension_numbers<[1], [0], [0], [1], [0, 0, 1, 1], [], []>} : vector<4x32xf32>, vector<32x160xf32>, vector<4x160xf32> -> vector<4x160xf32>
    %729 = vector.extract_strided_slice %726 {offsets = [0, 0], sizes = [4, 32], strides = [1, 1]} : vector<4x128xf32> to vector<4x32xf32>
    %730 = vector.extract_strided_slice %728 {offsets = [0, 0], sizes = [4, 32], strides = [1, 1]} : vector<4x160xf32> to vector<4x32xf32>
    %731 = arith.addf %729, %730 : vector<4x32xf32>
    %c0_337 = arith.constant 0 : index
    %c64_338 = arith.constant 64 : index
    %732 = vector.load %arg14[%c0_337, %c64_338] : memref<1x273xf32, #tpu.memory_space<vmem>>, vector<1x32xf32>
    %733 = vector.broadcast %732 : vector<1x32xf32> to vector<4x32xf32>
    %734 = arith.addf %731, %733 : vector<4x32xf32>
    %cst_339 = arith.constant 0.000000e+00 : f32
    %735 = vector.broadcast %cst_339 : f32 to vector<4x32xf32>
    %736 = arith.maximumf %734, %735 : vector<4x32xf32>
    %c0_340 = arith.constant 0 : index
    %c0_341 = arith.constant 0 : index
    %737 = vector.load %arg6[%c0_340, %c0_341] : memref<32x32xf32, #tpu.memory_space<vmem>>, vector<32x32xf32>
    %cst_342 = arith.constant dense<0.000000e+00> : vector<4x32xf32>
    %738 = tpu.matmul %736, %737, %cst_342 {dimension_numbers = #tpu.dot_dimension_numbers<[1], [0], [0], [1], [0, 0, 1, 1], [], []>} : vector<4x32xf32>, vector<32x32xf32>, vector<4x32xf32> -> vector<4x32xf32>
    %c0_343 = arith.constant 0 : index
    %c96_344 = arith.constant 96 : index
    %739 = vector.load %arg14[%c0_343, %c96_344] : memref<1x273xf32, #tpu.memory_space<vmem>>, vector<1x32xf32>
    %740 = vector.broadcast %739 : vector<1x32xf32> to vector<4x32xf32>
    %741 = arith.addf %738, %740 : vector<4x32xf32>
    %cst_345 = arith.constant 0.000000e+00 : f32
    %742 = vector.broadcast %cst_345 : f32 to vector<4x32xf32>
    %743 = arith.maximumf %741, %742 : vector<4x32xf32>
    %c0_346 = arith.constant 0 : index
    %c0_347 = arith.constant 0 : index
    %744 = vector.load %arg7[%c0_346, %c0_347] : memref<32x16xf32, #tpu.memory_space<vmem>>, vector<32x16xf32>
    %cst_348 = arith.constant dense<0.000000e+00> : vector<4x16xf32>
    %745 = tpu.matmul %743, %744, %cst_348 {dimension_numbers = #tpu.dot_dimension_numbers<[1], [0], [0], [1], [0, 0, 1, 1], [], []>} : vector<4x32xf32>, vector<32x16xf32>, vector<4x16xf32> -> vector<4x16xf32>
    %c0_349 = arith.constant 0 : index
    %c128_350 = arith.constant 128 : index
    %746 = vector.load %arg14[%c0_349, %c128_350] : memref<1x273xf32, #tpu.memory_space<vmem>>, vector<1x16xf32>
    %747 = vector.broadcast %746 : vector<1x16xf32> to vector<4x16xf32>
    %748 = arith.addf %745, %747 : vector<4x16xf32>
    %749 = vector.extract_strided_slice %748 {offsets = [0, 0], sizes = [4, 8], strides = [1, 1]} : vector<4x16xf32> to vector<4x8xf32>
    %750 = vector.extract_strided_slice %748 {offsets = [0, 8], sizes = [4, 8], strides = [1, 1]} : vector<4x16xf32> to vector<4x8xf32>
    %cst_351 = arith.constant 0.000000e+00 : f32
    %751 = vector.broadcast %cst_351 : f32 to vector<4x8xf32>
    %752 = arith.maximumf %750, %751 : vector<4x8xf32>
    %753 = vector.broadcast %cst_351 : f32 to vector<4x8xf32>
    %754 = arith.subf %750, %753 : vector<4x8xf32>
    %755 = arith.cmpf one, %754, %754 : vector<4x8xf32>
    %756 = vector.broadcast %cst_351 : f32 to vector<4x8xf32>
    %757 = arith.addf %750, %756 : vector<4x8xf32>
    %758 = math.absf %754 : vector<4x8xf32>
    %cst_352 = arith.constant 0.000000e+00 : f32
    %759 = vector.broadcast %cst_352 : f32 to vector<4x8xf32>
    %760 = arith.subf %759, %758 : vector<4x8xf32>
    %761 = math.exp %760 : vector<4x8xf32>
    %762 = math.log1p %761 : vector<4x8xf32>
    %763 = arith.addf %752, %762 : vector<4x8xf32>
    %764 = arith.select %755, %757, %763 : vector<4x8xi1>, vector<4x8xf32>
    %765 = vector.extract_strided_slice %728 {offsets = [0, 32], sizes = [4, 32], strides = [1, 1]} : vector<4x160xf32> to vector<4x32xf32>
    %c0_353 = arith.constant 0 : index
    %c144_354 = arith.constant 144 : index
    %766 = vector.load %arg14[%c0_353, %c144_354] : memref<1x273xf32, #tpu.memory_space<vmem>>, vector<1x32xf32>
    %767 = vector.broadcast %766 : vector<1x32xf32> to vector<4x32xf32>
    %768 = arith.addf %765, %767 : vector<4x32xf32>
    %cst_355 = arith.constant 0.000000e+00 : f32
    %769 = vector.broadcast %cst_355 : f32 to vector<4x32xf32>
    %770 = arith.maximumf %768, %769 : vector<4x32xf32>
    %c0_356 = arith.constant 0 : index
    %c0_357 = arith.constant 0 : index
    %771 = vector.load %arg8[%c0_356, %c0_357] : memref<32x16xf32, #tpu.memory_space<vmem>>, vector<32x16xf32>
    %cst_358 = arith.constant dense<0.000000e+00> : vector<4x16xf32>
    %772 = tpu.matmul %770, %771, %cst_358 {dimension_numbers = #tpu.dot_dimension_numbers<[1], [0], [0], [1], [0, 0, 1, 1], [], []>} : vector<4x32xf32>, vector<32x16xf32>, vector<4x16xf32> -> vector<4x16xf32>
    %c0_359 = arith.constant 0 : index
    %c176_360 = arith.constant 176 : index
    %773 = vector.load %arg14[%c0_359, %c176_360] : memref<1x273xf32, #tpu.memory_space<vmem>>, vector<1x16xf32>
    %774 = vector.broadcast %773 : vector<1x16xf32> to vector<4x16xf32>
    %775 = arith.addf %772, %774 : vector<4x16xf32>
    %776 = vector.extract_strided_slice %775 {offsets = [0, 0], sizes = [4, 8], strides = [1, 1]} : vector<4x16xf32> to vector<4x8xf32>
    %777 = vector.extract_strided_slice %775 {offsets = [0, 8], sizes = [4, 8], strides = [1, 1]} : vector<4x16xf32> to vector<4x8xf32>
    %cst_361 = arith.constant 0.000000e+00 : f32
    %778 = vector.broadcast %cst_361 : f32 to vector<4x8xf32>
    %779 = arith.maximumf %777, %778 : vector<4x8xf32>
    %780 = vector.broadcast %cst_361 : f32 to vector<4x8xf32>
    %781 = arith.subf %777, %780 : vector<4x8xf32>
    %782 = arith.cmpf one, %781, %781 : vector<4x8xf32>
    %783 = vector.broadcast %cst_361 : f32 to vector<4x8xf32>
    %784 = arith.addf %777, %783 : vector<4x8xf32>
    %785 = math.absf %781 : vector<4x8xf32>
    %cst_362 = arith.constant 0.000000e+00 : f32
    %786 = vector.broadcast %cst_362 : f32 to vector<4x8xf32>
    %787 = arith.subf %786, %785 : vector<4x8xf32>
    %788 = math.exp %787 : vector<4x8xf32>
    %789 = math.log1p %788 : vector<4x8xf32>
    %790 = arith.addf %779, %789 : vector<4x8xf32>
    %791 = arith.select %782, %784, %790 : vector<4x8xi1>, vector<4x8xf32>
    %792 = arith.mulf %710, %764 : vector<4x8xf32>
    %793 = arith.addf %792, %749 : vector<4x8xf32>
    %c0_363 = arith.constant 0 : index
    %c0_364 = arith.constant 0 : index
    %794 = vector.load %arg9[%c0_363, %c0_364] : memref<8x32xf32, #tpu.memory_space<vmem>>, vector<8x32xf32>
    %cst_365 = arith.constant dense<0.000000e+00> : vector<4x32xf32>
    %795 = tpu.matmul %793, %794, %cst_365 {dimension_numbers = #tpu.dot_dimension_numbers<[1], [0], [0], [1], [0, 0, 1, 1], [], []>} : vector<4x8xf32>, vector<8x32xf32>, vector<4x32xf32> -> vector<4x32xf32>
    %c0_366 = arith.constant 0 : index
    %c192_367 = arith.constant 192 : index
    %796 = vector.load %arg14[%c0_366, %c192_367] : memref<1x273xf32, #tpu.memory_space<vmem>>, vector<1x32xf32>
    %797 = vector.broadcast %796 : vector<1x32xf32> to vector<4x32xf32>
    %798 = arith.addf %795, %797 : vector<4x32xf32>
    %cst_368 = arith.constant 0.000000e+00 : f32
    %799 = vector.broadcast %cst_368 : f32 to vector<4x32xf32>
    %800 = arith.maximumf %798, %799 : vector<4x32xf32>
    %801 = vector.extract_strided_slice %726 {offsets = [0, 32], sizes = [4, 96], strides = [1, 1]} : vector<4x128xf32> to vector<4x96xf32>
    %c0_369 = arith.constant 0 : index
    %c0_370 = arith.constant 0 : index
    %802 = vector.load %arg10[%c0_369, %c0_370] : memref<32x96xf32, #tpu.memory_space<vmem>>, vector<32x96xf32>
    %cst_371 = arith.constant dense<0.000000e+00> : vector<4x96xf32>
    %803 = tpu.matmul %800, %802, %cst_371 {dimension_numbers = #tpu.dot_dimension_numbers<[1], [0], [0], [1], [0, 0, 1, 1], [], []>} : vector<4x32xf32>, vector<32x96xf32>, vector<4x96xf32> -> vector<4x96xf32>
    %804 = arith.addf %801, %803 : vector<4x96xf32>
    %805 = vector.extract_strided_slice %728 {offsets = [0, 64], sizes = [4, 96], strides = [1, 1]} : vector<4x160xf32> to vector<4x96xf32>
    %806 = vector.extract_strided_slice %804 {offsets = [0, 0], sizes = [4, 32], strides = [1, 1]} : vector<4x96xf32> to vector<4x32xf32>
    %807 = vector.extract_strided_slice %805 {offsets = [0, 0], sizes = [4, 32], strides = [1, 1]} : vector<4x96xf32> to vector<4x32xf32>
    %808 = arith.addf %806, %807 : vector<4x32xf32>
    %809 = arith.negf %808 : vector<4x32xf32>
    %810 = math.exp %809 : vector<4x32xf32>
    %cst_372 = arith.constant 1.000000e+00 : f32
    %811 = vector.broadcast %cst_372 : f32 to vector<4x32xf32>
    %812 = arith.addf %811, %810 : vector<4x32xf32>
    %813 = arith.divf %811, %812 : vector<4x32xf32>
    %814 = vector.extract_strided_slice %804 {offsets = [0, 32], sizes = [4, 32], strides = [1, 1]} : vector<4x96xf32> to vector<4x32xf32>
    %815 = vector.extract_strided_slice %805 {offsets = [0, 32], sizes = [4, 32], strides = [1, 1]} : vector<4x96xf32> to vector<4x32xf32>
    %816 = arith.addf %814, %815 : vector<4x32xf32>
    %817 = arith.negf %816 : vector<4x32xf32>
    %818 = math.exp %817 : vector<4x32xf32>
    %cst_373 = arith.constant 1.000000e+00 : f32
    %819 = vector.broadcast %cst_373 : f32 to vector<4x32xf32>
    %820 = arith.addf %819, %818 : vector<4x32xf32>
    %821 = arith.divf %819, %820 : vector<4x32xf32>
    %822 = vector.extract_strided_slice %804 {offsets = [0, 64], sizes = [4, 32], strides = [1, 1]} : vector<4x96xf32> to vector<4x32xf32>
    %823 = vector.extract_strided_slice %805 {offsets = [0, 64], sizes = [4, 32], strides = [1, 1]} : vector<4x96xf32> to vector<4x32xf32>
    %824 = arith.mulf %813, %823 : vector<4x32xf32>
    %825 = arith.addf %822, %824 : vector<4x32xf32>
    %826 = math.tanh %825 : vector<4x32xf32>
    %cst_374 = arith.constant 1.000000e+00 : f32
    %827 = vector.broadcast %cst_374 : f32 to vector<4x32xf32>
    %828 = arith.subf %827, %821 : vector<4x32xf32>
    %829 = arith.mulf %828, %826 : vector<4x32xf32>
    %830 = arith.mulf %821, %690 : vector<4x32xf32>
    %831 = arith.addf %829, %830 : vector<4x32xf32>
    %832 = arith.subf %749, %776 : vector<4x8xf32>
    %833 = arith.mulf %791, %791 : vector<4x8xf32>
    %cst_375 = arith.constant 1.000000e+00 : f32
    %834 = vector.broadcast %cst_375 : f32 to vector<4x8xf32>
    %835 = arith.divf %834, %833 : vector<4x8xf32>
    %836 = arith.divf %791, %764 : vector<4x8xf32>
    %837 = math.log %836 : vector<4x8xf32>
    %cst_376 = arith.constant 2.000000e+00 : f32
    %838 = vector.broadcast %cst_376 : f32 to vector<4x8xf32>
    %839 = arith.mulf %838, %837 : vector<4x8xf32>
    %840 = arith.mulf %764, %764 : vector<4x8xf32>
    %841 = arith.mulf %832, %832 : vector<4x8xf32>
    %842 = arith.addf %840, %841 : vector<4x8xf32>
    %843 = arith.mulf %842, %835 : vector<4x8xf32>
    %844 = arith.addf %839, %843 : vector<4x8xf32>
    %cst_377 = arith.constant 1.000000e+00 : f32
    %845 = vector.broadcast %cst_377 : f32 to vector<4x8xf32>
    %846 = arith.subf %844, %845 : vector<4x8xf32>
    %847 = arith.addf %706, %846 : vector<4x8xf32>
    %c6 = arith.constant 6 : index
    %c0_378 = arith.constant 0 : index
    %c0_379 = arith.constant 0 : index
    %848 = vector.load %arg0[%c6, %c0_378, %c0_379] : memref<8x4x16xf32, #tpu.memory_space<vmem>>, vector<1x4x16xf32>
    %849 = vector.shape_cast %848 : vector<1x4x16xf32> to vector<4x16xf32>
    %c6_380 = arith.constant 6 : index
    %c0_381 = arith.constant 0 : index
    %c0_382 = arith.constant 0 : index
    %850 = vector.load %arg1[%c6_380, %c0_381, %c0_382] : memref<8x4x8xf32, #tpu.memory_space<vmem>>, vector<1x4x8xf32>
    %851 = vector.shape_cast %850 : vector<1x4x8xf32> to vector<4x8xf32>
    %c0_383 = arith.constant 0 : index
    %c0_384 = arith.constant 0 : index
    %852 = vector.load %arg2[%c0_383, %c0_384] : memref<16x32xf32, #tpu.memory_space<vmem>>, vector<16x32xf32>
    %cst_385 = arith.constant dense<0.000000e+00> : vector<4x32xf32>
    %853 = tpu.matmul %849, %852, %cst_385 {dimension_numbers = #tpu.dot_dimension_numbers<[1], [0], [0], [1], [0, 0, 1, 1], [], []>} : vector<4x16xf32>, vector<16x32xf32>, vector<4x32xf32> -> vector<4x32xf32>
    %c0_386 = arith.constant 0 : index
    %c0_387 = arith.constant 0 : index
    %854 = vector.load %arg14[%c0_386, %c0_387] : memref<1x273xf32, #tpu.memory_space<vmem>>, vector<1x32xf32>
    %855 = vector.broadcast %854 : vector<1x32xf32> to vector<4x32xf32>
    %856 = arith.addf %853, %855 : vector<4x32xf32>
    %cst_388 = arith.constant 0.000000e+00 : f32
    %857 = vector.broadcast %cst_388 : f32 to vector<4x32xf32>
    %858 = arith.maximumf %856, %857 : vector<4x32xf32>
    %c0_389 = arith.constant 0 : index
    %c0_390 = arith.constant 0 : index
    %859 = vector.load %arg3[%c0_389, %c0_390] : memref<32x32xf32, #tpu.memory_space<vmem>>, vector<32x32xf32>
    %cst_391 = arith.constant dense<0.000000e+00> : vector<4x32xf32>
    %860 = tpu.matmul %858, %859, %cst_391 {dimension_numbers = #tpu.dot_dimension_numbers<[1], [0], [0], [1], [0, 0, 1, 1], [], []>} : vector<4x32xf32>, vector<32x32xf32>, vector<4x32xf32> -> vector<4x32xf32>
    %c0_392 = arith.constant 0 : index
    %c32_393 = arith.constant 32 : index
    %861 = vector.load %arg14[%c0_392, %c32_393] : memref<1x273xf32, #tpu.memory_space<vmem>>, vector<1x32xf32>
    %862 = vector.broadcast %861 : vector<1x32xf32> to vector<4x32xf32>
    %863 = arith.addf %860, %862 : vector<4x32xf32>
    %cst_394 = arith.constant 0.000000e+00 : f32
    %864 = vector.broadcast %cst_394 : f32 to vector<4x32xf32>
    %865 = arith.maximumf %863, %864 : vector<4x32xf32>
    %c0_395 = arith.constant 0 : index
    %c0_396 = arith.constant 0 : index
    %866 = vector.load %arg4[%c0_395, %c0_396] : memref<32x128xf32, #tpu.memory_space<vmem>>, vector<32x128xf32>
    %cst_397 = arith.constant dense<0.000000e+00> : vector<4x128xf32>
    %867 = tpu.matmul %865, %866, %cst_397 {dimension_numbers = #tpu.dot_dimension_numbers<[1], [0], [0], [1], [0, 0, 1, 1], [], []>} : vector<4x32xf32>, vector<32x128xf32>, vector<4x128xf32> -> vector<4x128xf32>
    %c0_398 = arith.constant 0 : index
    %c0_399 = arith.constant 0 : index
    %868 = vector.load %arg5[%c0_398, %c0_399] : memref<32x160xf32, #tpu.memory_space<vmem>>, vector<32x160xf32>
    %cst_400 = arith.constant dense<0.000000e+00> : vector<4x160xf32>
    %869 = tpu.matmul %831, %868, %cst_400 {dimension_numbers = #tpu.dot_dimension_numbers<[1], [0], [0], [1], [0, 0, 1, 1], [], []>} : vector<4x32xf32>, vector<32x160xf32>, vector<4x160xf32> -> vector<4x160xf32>
    %870 = vector.extract_strided_slice %867 {offsets = [0, 0], sizes = [4, 32], strides = [1, 1]} : vector<4x128xf32> to vector<4x32xf32>
    %871 = vector.extract_strided_slice %869 {offsets = [0, 0], sizes = [4, 32], strides = [1, 1]} : vector<4x160xf32> to vector<4x32xf32>
    %872 = arith.addf %870, %871 : vector<4x32xf32>
    %c0_401 = arith.constant 0 : index
    %c64_402 = arith.constant 64 : index
    %873 = vector.load %arg14[%c0_401, %c64_402] : memref<1x273xf32, #tpu.memory_space<vmem>>, vector<1x32xf32>
    %874 = vector.broadcast %873 : vector<1x32xf32> to vector<4x32xf32>
    %875 = arith.addf %872, %874 : vector<4x32xf32>
    %cst_403 = arith.constant 0.000000e+00 : f32
    %876 = vector.broadcast %cst_403 : f32 to vector<4x32xf32>
    %877 = arith.maximumf %875, %876 : vector<4x32xf32>
    %c0_404 = arith.constant 0 : index
    %c0_405 = arith.constant 0 : index
    %878 = vector.load %arg6[%c0_404, %c0_405] : memref<32x32xf32, #tpu.memory_space<vmem>>, vector<32x32xf32>
    %cst_406 = arith.constant dense<0.000000e+00> : vector<4x32xf32>
    %879 = tpu.matmul %877, %878, %cst_406 {dimension_numbers = #tpu.dot_dimension_numbers<[1], [0], [0], [1], [0, 0, 1, 1], [], []>} : vector<4x32xf32>, vector<32x32xf32>, vector<4x32xf32> -> vector<4x32xf32>
    %c0_407 = arith.constant 0 : index
    %c96_408 = arith.constant 96 : index
    %880 = vector.load %arg14[%c0_407, %c96_408] : memref<1x273xf32, #tpu.memory_space<vmem>>, vector<1x32xf32>
    %881 = vector.broadcast %880 : vector<1x32xf32> to vector<4x32xf32>
    %882 = arith.addf %879, %881 : vector<4x32xf32>
    %cst_409 = arith.constant 0.000000e+00 : f32
    %883 = vector.broadcast %cst_409 : f32 to vector<4x32xf32>
    %884 = arith.maximumf %882, %883 : vector<4x32xf32>
    %c0_410 = arith.constant 0 : index
    %c0_411 = arith.constant 0 : index
    %885 = vector.load %arg7[%c0_410, %c0_411] : memref<32x16xf32, #tpu.memory_space<vmem>>, vector<32x16xf32>
    %cst_412 = arith.constant dense<0.000000e+00> : vector<4x16xf32>
    %886 = tpu.matmul %884, %885, %cst_412 {dimension_numbers = #tpu.dot_dimension_numbers<[1], [0], [0], [1], [0, 0, 1, 1], [], []>} : vector<4x32xf32>, vector<32x16xf32>, vector<4x16xf32> -> vector<4x16xf32>
    %c0_413 = arith.constant 0 : index
    %c128_414 = arith.constant 128 : index
    %887 = vector.load %arg14[%c0_413, %c128_414] : memref<1x273xf32, #tpu.memory_space<vmem>>, vector<1x16xf32>
    %888 = vector.broadcast %887 : vector<1x16xf32> to vector<4x16xf32>
    %889 = arith.addf %886, %888 : vector<4x16xf32>
    %890 = vector.extract_strided_slice %889 {offsets = [0, 0], sizes = [4, 8], strides = [1, 1]} : vector<4x16xf32> to vector<4x8xf32>
    %891 = vector.extract_strided_slice %889 {offsets = [0, 8], sizes = [4, 8], strides = [1, 1]} : vector<4x16xf32> to vector<4x8xf32>
    %cst_415 = arith.constant 0.000000e+00 : f32
    %892 = vector.broadcast %cst_415 : f32 to vector<4x8xf32>
    %893 = arith.maximumf %891, %892 : vector<4x8xf32>
    %894 = vector.broadcast %cst_415 : f32 to vector<4x8xf32>
    %895 = arith.subf %891, %894 : vector<4x8xf32>
    %896 = arith.cmpf one, %895, %895 : vector<4x8xf32>
    %897 = vector.broadcast %cst_415 : f32 to vector<4x8xf32>
    %898 = arith.addf %891, %897 : vector<4x8xf32>
    %899 = math.absf %895 : vector<4x8xf32>
    %cst_416 = arith.constant 0.000000e+00 : f32
    %900 = vector.broadcast %cst_416 : f32 to vector<4x8xf32>
    %901 = arith.subf %900, %899 : vector<4x8xf32>
    %902 = math.exp %901 : vector<4x8xf32>
    %903 = math.log1p %902 : vector<4x8xf32>
    %904 = arith.addf %893, %903 : vector<4x8xf32>
    %905 = arith.select %896, %898, %904 : vector<4x8xi1>, vector<4x8xf32>
    %906 = vector.extract_strided_slice %869 {offsets = [0, 32], sizes = [4, 32], strides = [1, 1]} : vector<4x160xf32> to vector<4x32xf32>
    %c0_417 = arith.constant 0 : index
    %c144_418 = arith.constant 144 : index
    %907 = vector.load %arg14[%c0_417, %c144_418] : memref<1x273xf32, #tpu.memory_space<vmem>>, vector<1x32xf32>
    %908 = vector.broadcast %907 : vector<1x32xf32> to vector<4x32xf32>
    %909 = arith.addf %906, %908 : vector<4x32xf32>
    %cst_419 = arith.constant 0.000000e+00 : f32
    %910 = vector.broadcast %cst_419 : f32 to vector<4x32xf32>
    %911 = arith.maximumf %909, %910 : vector<4x32xf32>
    %c0_420 = arith.constant 0 : index
    %c0_421 = arith.constant 0 : index
    %912 = vector.load %arg8[%c0_420, %c0_421] : memref<32x16xf32, #tpu.memory_space<vmem>>, vector<32x16xf32>
    %cst_422 = arith.constant dense<0.000000e+00> : vector<4x16xf32>
    %913 = tpu.matmul %911, %912, %cst_422 {dimension_numbers = #tpu.dot_dimension_numbers<[1], [0], [0], [1], [0, 0, 1, 1], [], []>} : vector<4x32xf32>, vector<32x16xf32>, vector<4x16xf32> -> vector<4x16xf32>
    %c0_423 = arith.constant 0 : index
    %c176_424 = arith.constant 176 : index
    %914 = vector.load %arg14[%c0_423, %c176_424] : memref<1x273xf32, #tpu.memory_space<vmem>>, vector<1x16xf32>
    %915 = vector.broadcast %914 : vector<1x16xf32> to vector<4x16xf32>
    %916 = arith.addf %913, %915 : vector<4x16xf32>
    %917 = vector.extract_strided_slice %916 {offsets = [0, 0], sizes = [4, 8], strides = [1, 1]} : vector<4x16xf32> to vector<4x8xf32>
    %918 = vector.extract_strided_slice %916 {offsets = [0, 8], sizes = [4, 8], strides = [1, 1]} : vector<4x16xf32> to vector<4x8xf32>
    %cst_425 = arith.constant 0.000000e+00 : f32
    %919 = vector.broadcast %cst_425 : f32 to vector<4x8xf32>
    %920 = arith.maximumf %918, %919 : vector<4x8xf32>
    %921 = vector.broadcast %cst_425 : f32 to vector<4x8xf32>
    %922 = arith.subf %918, %921 : vector<4x8xf32>
    %923 = arith.cmpf one, %922, %922 : vector<4x8xf32>
    %924 = vector.broadcast %cst_425 : f32 to vector<4x8xf32>
    %925 = arith.addf %918, %924 : vector<4x8xf32>
    %926 = math.absf %922 : vector<4x8xf32>
    %cst_426 = arith.constant 0.000000e+00 : f32
    %927 = vector.broadcast %cst_426 : f32 to vector<4x8xf32>
    %928 = arith.subf %927, %926 : vector<4x8xf32>
    %929 = math.exp %928 : vector<4x8xf32>
    %930 = math.log1p %929 : vector<4x8xf32>
    %931 = arith.addf %920, %930 : vector<4x8xf32>
    %932 = arith.select %923, %925, %931 : vector<4x8xi1>, vector<4x8xf32>
    %933 = arith.mulf %851, %905 : vector<4x8xf32>
    %934 = arith.addf %933, %890 : vector<4x8xf32>
    %c0_427 = arith.constant 0 : index
    %c0_428 = arith.constant 0 : index
    %935 = vector.load %arg9[%c0_427, %c0_428] : memref<8x32xf32, #tpu.memory_space<vmem>>, vector<8x32xf32>
    %cst_429 = arith.constant dense<0.000000e+00> : vector<4x32xf32>
    %936 = tpu.matmul %934, %935, %cst_429 {dimension_numbers = #tpu.dot_dimension_numbers<[1], [0], [0], [1], [0, 0, 1, 1], [], []>} : vector<4x8xf32>, vector<8x32xf32>, vector<4x32xf32> -> vector<4x32xf32>
    %c0_430 = arith.constant 0 : index
    %c192_431 = arith.constant 192 : index
    %937 = vector.load %arg14[%c0_430, %c192_431] : memref<1x273xf32, #tpu.memory_space<vmem>>, vector<1x32xf32>
    %938 = vector.broadcast %937 : vector<1x32xf32> to vector<4x32xf32>
    %939 = arith.addf %936, %938 : vector<4x32xf32>
    %cst_432 = arith.constant 0.000000e+00 : f32
    %940 = vector.broadcast %cst_432 : f32 to vector<4x32xf32>
    %941 = arith.maximumf %939, %940 : vector<4x32xf32>
    %942 = vector.extract_strided_slice %867 {offsets = [0, 32], sizes = [4, 96], strides = [1, 1]} : vector<4x128xf32> to vector<4x96xf32>
    %c0_433 = arith.constant 0 : index
    %c0_434 = arith.constant 0 : index
    %943 = vector.load %arg10[%c0_433, %c0_434] : memref<32x96xf32, #tpu.memory_space<vmem>>, vector<32x96xf32>
    %cst_435 = arith.constant dense<0.000000e+00> : vector<4x96xf32>
    %944 = tpu.matmul %941, %943, %cst_435 {dimension_numbers = #tpu.dot_dimension_numbers<[1], [0], [0], [1], [0, 0, 1, 1], [], []>} : vector<4x32xf32>, vector<32x96xf32>, vector<4x96xf32> -> vector<4x96xf32>
    %945 = arith.addf %942, %944 : vector<4x96xf32>
    %946 = vector.extract_strided_slice %869 {offsets = [0, 64], sizes = [4, 96], strides = [1, 1]} : vector<4x160xf32> to vector<4x96xf32>
    %947 = vector.extract_strided_slice %945 {offsets = [0, 0], sizes = [4, 32], strides = [1, 1]} : vector<4x96xf32> to vector<4x32xf32>
    %948 = vector.extract_strided_slice %946 {offsets = [0, 0], sizes = [4, 32], strides = [1, 1]} : vector<4x96xf32> to vector<4x32xf32>
    %949 = arith.addf %947, %948 : vector<4x32xf32>
    %950 = arith.negf %949 : vector<4x32xf32>
    %951 = math.exp %950 : vector<4x32xf32>
    %cst_436 = arith.constant 1.000000e+00 : f32
    %952 = vector.broadcast %cst_436 : f32 to vector<4x32xf32>
    %953 = arith.addf %952, %951 : vector<4x32xf32>
    %954 = arith.divf %952, %953 : vector<4x32xf32>
    %955 = vector.extract_strided_slice %945 {offsets = [0, 32], sizes = [4, 32], strides = [1, 1]} : vector<4x96xf32> to vector<4x32xf32>
    %956 = vector.extract_strided_slice %946 {offsets = [0, 32], sizes = [4, 32], strides = [1, 1]} : vector<4x96xf32> to vector<4x32xf32>
    %957 = arith.addf %955, %956 : vector<4x32xf32>
    %958 = arith.negf %957 : vector<4x32xf32>
    %959 = math.exp %958 : vector<4x32xf32>
    %cst_437 = arith.constant 1.000000e+00 : f32
    %960 = vector.broadcast %cst_437 : f32 to vector<4x32xf32>
    %961 = arith.addf %960, %959 : vector<4x32xf32>
    %962 = arith.divf %960, %961 : vector<4x32xf32>
    %963 = vector.extract_strided_slice %945 {offsets = [0, 64], sizes = [4, 32], strides = [1, 1]} : vector<4x96xf32> to vector<4x32xf32>
    %964 = vector.extract_strided_slice %946 {offsets = [0, 64], sizes = [4, 32], strides = [1, 1]} : vector<4x96xf32> to vector<4x32xf32>
    %965 = arith.mulf %954, %964 : vector<4x32xf32>
    %966 = arith.addf %963, %965 : vector<4x32xf32>
    %967 = math.tanh %966 : vector<4x32xf32>
    %cst_438 = arith.constant 1.000000e+00 : f32
    %968 = vector.broadcast %cst_438 : f32 to vector<4x32xf32>
    %969 = arith.subf %968, %962 : vector<4x32xf32>
    %970 = arith.mulf %969, %967 : vector<4x32xf32>
    %971 = arith.mulf %962, %831 : vector<4x32xf32>
    %972 = arith.addf %970, %971 : vector<4x32xf32>
    %973 = arith.subf %890, %917 : vector<4x8xf32>
    %974 = arith.mulf %932, %932 : vector<4x8xf32>
    %cst_439 = arith.constant 1.000000e+00 : f32
    %975 = vector.broadcast %cst_439 : f32 to vector<4x8xf32>
    %976 = arith.divf %975, %974 : vector<4x8xf32>
    %977 = arith.divf %932, %905 : vector<4x8xf32>
    %978 = math.log %977 : vector<4x8xf32>
    %cst_440 = arith.constant 2.000000e+00 : f32
    %979 = vector.broadcast %cst_440 : f32 to vector<4x8xf32>
    %980 = arith.mulf %979, %978 : vector<4x8xf32>
    %981 = arith.mulf %905, %905 : vector<4x8xf32>
    %982 = arith.mulf %973, %973 : vector<4x8xf32>
    %983 = arith.addf %981, %982 : vector<4x8xf32>
    %984 = arith.mulf %983, %976 : vector<4x8xf32>
    %985 = arith.addf %980, %984 : vector<4x8xf32>
    %cst_441 = arith.constant 1.000000e+00 : f32
    %986 = vector.broadcast %cst_441 : f32 to vector<4x8xf32>
    %987 = arith.subf %985, %986 : vector<4x8xf32>
    %988 = arith.addf %847, %987 : vector<4x8xf32>
    %c7 = arith.constant 7 : index
    %c0_442 = arith.constant 0 : index
    %c0_443 = arith.constant 0 : index
    %989 = vector.load %arg0[%c7, %c0_442, %c0_443] : memref<8x4x16xf32, #tpu.memory_space<vmem>>, vector<1x4x16xf32>
    %990 = vector.shape_cast %989 : vector<1x4x16xf32> to vector<4x16xf32>
    %c7_444 = arith.constant 7 : index
    %c0_445 = arith.constant 0 : index
    %c0_446 = arith.constant 0 : index
    %991 = vector.load %arg1[%c7_444, %c0_445, %c0_446] : memref<8x4x8xf32, #tpu.memory_space<vmem>>, vector<1x4x8xf32>
    %992 = vector.shape_cast %991 : vector<1x4x8xf32> to vector<4x8xf32>
    %c0_447 = arith.constant 0 : index
    %c0_448 = arith.constant 0 : index
    %993 = vector.load %arg2[%c0_447, %c0_448] : memref<16x32xf32, #tpu.memory_space<vmem>>, vector<16x32xf32>
    %cst_449 = arith.constant dense<0.000000e+00> : vector<4x32xf32>
    %994 = tpu.matmul %990, %993, %cst_449 {dimension_numbers = #tpu.dot_dimension_numbers<[1], [0], [0], [1], [0, 0, 1, 1], [], []>} : vector<4x16xf32>, vector<16x32xf32>, vector<4x32xf32> -> vector<4x32xf32>
    %c0_450 = arith.constant 0 : index
    %c0_451 = arith.constant 0 : index
    %995 = vector.load %arg14[%c0_450, %c0_451] : memref<1x273xf32, #tpu.memory_space<vmem>>, vector<1x32xf32>
    %996 = vector.broadcast %995 : vector<1x32xf32> to vector<4x32xf32>
    %997 = arith.addf %994, %996 : vector<4x32xf32>
    %cst_452 = arith.constant 0.000000e+00 : f32
    %998 = vector.broadcast %cst_452 : f32 to vector<4x32xf32>
    %999 = arith.maximumf %997, %998 : vector<4x32xf32>
    %c0_453 = arith.constant 0 : index
    %c0_454 = arith.constant 0 : index
    %1000 = vector.load %arg3[%c0_453, %c0_454] : memref<32x32xf32, #tpu.memory_space<vmem>>, vector<32x32xf32>
    %cst_455 = arith.constant dense<0.000000e+00> : vector<4x32xf32>
    %1001 = tpu.matmul %999, %1000, %cst_455 {dimension_numbers = #tpu.dot_dimension_numbers<[1], [0], [0], [1], [0, 0, 1, 1], [], []>} : vector<4x32xf32>, vector<32x32xf32>, vector<4x32xf32> -> vector<4x32xf32>
    %c0_456 = arith.constant 0 : index
    %c32_457 = arith.constant 32 : index
    %1002 = vector.load %arg14[%c0_456, %c32_457] : memref<1x273xf32, #tpu.memory_space<vmem>>, vector<1x32xf32>
    %1003 = vector.broadcast %1002 : vector<1x32xf32> to vector<4x32xf32>
    %1004 = arith.addf %1001, %1003 : vector<4x32xf32>
    %cst_458 = arith.constant 0.000000e+00 : f32
    %1005 = vector.broadcast %cst_458 : f32 to vector<4x32xf32>
    %1006 = arith.maximumf %1004, %1005 : vector<4x32xf32>
    %c0_459 = arith.constant 0 : index
    %c0_460 = arith.constant 0 : index
    %1007 = vector.load %arg4[%c0_459, %c0_460] : memref<32x128xf32, #tpu.memory_space<vmem>>, vector<32x128xf32>
    %cst_461 = arith.constant dense<0.000000e+00> : vector<4x128xf32>
    %1008 = tpu.matmul %1006, %1007, %cst_461 {dimension_numbers = #tpu.dot_dimension_numbers<[1], [0], [0], [1], [0, 0, 1, 1], [], []>} : vector<4x32xf32>, vector<32x128xf32>, vector<4x128xf32> -> vector<4x128xf32>
    %c0_462 = arith.constant 0 : index
    %c0_463 = arith.constant 0 : index
    %1009 = vector.load %arg5[%c0_462, %c0_463] : memref<32x160xf32, #tpu.memory_space<vmem>>, vector<32x160xf32>
    %cst_464 = arith.constant dense<0.000000e+00> : vector<4x160xf32>
    %1010 = tpu.matmul %972, %1009, %cst_464 {dimension_numbers = #tpu.dot_dimension_numbers<[1], [0], [0], [1], [0, 0, 1, 1], [], []>} : vector<4x32xf32>, vector<32x160xf32>, vector<4x160xf32> -> vector<4x160xf32>
    %1011 = vector.extract_strided_slice %1008 {offsets = [0, 0], sizes = [4, 32], strides = [1, 1]} : vector<4x128xf32> to vector<4x32xf32>
    %1012 = vector.extract_strided_slice %1010 {offsets = [0, 0], sizes = [4, 32], strides = [1, 1]} : vector<4x160xf32> to vector<4x32xf32>
    %1013 = arith.addf %1011, %1012 : vector<4x32xf32>
    %c0_465 = arith.constant 0 : index
    %c64_466 = arith.constant 64 : index
    %1014 = vector.load %arg14[%c0_465, %c64_466] : memref<1x273xf32, #tpu.memory_space<vmem>>, vector<1x32xf32>
    %1015 = vector.broadcast %1014 : vector<1x32xf32> to vector<4x32xf32>
    %1016 = arith.addf %1013, %1015 : vector<4x32xf32>
    %cst_467 = arith.constant 0.000000e+00 : f32
    %1017 = vector.broadcast %cst_467 : f32 to vector<4x32xf32>
    %1018 = arith.maximumf %1016, %1017 : vector<4x32xf32>
    %c0_468 = arith.constant 0 : index
    %c0_469 = arith.constant 0 : index
    %1019 = vector.load %arg6[%c0_468, %c0_469] : memref<32x32xf32, #tpu.memory_space<vmem>>, vector<32x32xf32>
    %cst_470 = arith.constant dense<0.000000e+00> : vector<4x32xf32>
    %1020 = tpu.matmul %1018, %1019, %cst_470 {dimension_numbers = #tpu.dot_dimension_numbers<[1], [0], [0], [1], [0, 0, 1, 1], [], []>} : vector<4x32xf32>, vector<32x32xf32>, vector<4x32xf32> -> vector<4x32xf32>
    %c0_471 = arith.constant 0 : index
    %c96_472 = arith.constant 96 : index
    %1021 = vector.load %arg14[%c0_471, %c96_472] : memref<1x273xf32, #tpu.memory_space<vmem>>, vector<1x32xf32>
    %1022 = vector.broadcast %1021 : vector<1x32xf32> to vector<4x32xf32>
    %1023 = arith.addf %1020, %1022 : vector<4x32xf32>
    %cst_473 = arith.constant 0.000000e+00 : f32
    %1024 = vector.broadcast %cst_473 : f32 to vector<4x32xf32>
    %1025 = arith.maximumf %1023, %1024 : vector<4x32xf32>
    %c0_474 = arith.constant 0 : index
    %c0_475 = arith.constant 0 : index
    %1026 = vector.load %arg7[%c0_474, %c0_475] : memref<32x16xf32, #tpu.memory_space<vmem>>, vector<32x16xf32>
    %cst_476 = arith.constant dense<0.000000e+00> : vector<4x16xf32>
    %1027 = tpu.matmul %1025, %1026, %cst_476 {dimension_numbers = #tpu.dot_dimension_numbers<[1], [0], [0], [1], [0, 0, 1, 1], [], []>} : vector<4x32xf32>, vector<32x16xf32>, vector<4x16xf32> -> vector<4x16xf32>
    %c0_477 = arith.constant 0 : index
    %c128_478 = arith.constant 128 : index
    %1028 = vector.load %arg14[%c0_477, %c128_478] : memref<1x273xf32, #tpu.memory_space<vmem>>, vector<1x16xf32>
    %1029 = vector.broadcast %1028 : vector<1x16xf32> to vector<4x16xf32>
    %1030 = arith.addf %1027, %1029 : vector<4x16xf32>
    %1031 = vector.extract_strided_slice %1030 {offsets = [0, 0], sizes = [4, 8], strides = [1, 1]} : vector<4x16xf32> to vector<4x8xf32>
    %1032 = vector.extract_strided_slice %1030 {offsets = [0, 8], sizes = [4, 8], strides = [1, 1]} : vector<4x16xf32> to vector<4x8xf32>
    %cst_479 = arith.constant 0.000000e+00 : f32
    %1033 = vector.broadcast %cst_479 : f32 to vector<4x8xf32>
    %1034 = arith.maximumf %1032, %1033 : vector<4x8xf32>
    %1035 = vector.broadcast %cst_479 : f32 to vector<4x8xf32>
    %1036 = arith.subf %1032, %1035 : vector<4x8xf32>
    %1037 = arith.cmpf one, %1036, %1036 : vector<4x8xf32>
    %1038 = vector.broadcast %cst_479 : f32 to vector<4x8xf32>
    %1039 = arith.addf %1032, %1038 : vector<4x8xf32>
    %1040 = math.absf %1036 : vector<4x8xf32>
    %cst_480 = arith.constant 0.000000e+00 : f32
    %1041 = vector.broadcast %cst_480 : f32 to vector<4x8xf32>
    %1042 = arith.subf %1041, %1040 : vector<4x8xf32>
    %1043 = math.exp %1042 : vector<4x8xf32>
    %1044 = math.log1p %1043 : vector<4x8xf32>
    %1045 = arith.addf %1034, %1044 : vector<4x8xf32>
    %1046 = arith.select %1037, %1039, %1045 : vector<4x8xi1>, vector<4x8xf32>
    %1047 = vector.extract_strided_slice %1010 {offsets = [0, 32], sizes = [4, 32], strides = [1, 1]} : vector<4x160xf32> to vector<4x32xf32>
    %c0_481 = arith.constant 0 : index
    %c144_482 = arith.constant 144 : index
    %1048 = vector.load %arg14[%c0_481, %c144_482] : memref<1x273xf32, #tpu.memory_space<vmem>>, vector<1x32xf32>
    %1049 = vector.broadcast %1048 : vector<1x32xf32> to vector<4x32xf32>
    %1050 = arith.addf %1047, %1049 : vector<4x32xf32>
    %cst_483 = arith.constant 0.000000e+00 : f32
    %1051 = vector.broadcast %cst_483 : f32 to vector<4x32xf32>
    %1052 = arith.maximumf %1050, %1051 : vector<4x32xf32>
    %c0_484 = arith.constant 0 : index
    %c0_485 = arith.constant 0 : index
    %1053 = vector.load %arg8[%c0_484, %c0_485] : memref<32x16xf32, #tpu.memory_space<vmem>>, vector<32x16xf32>
    %cst_486 = arith.constant dense<0.000000e+00> : vector<4x16xf32>
    %1054 = tpu.matmul %1052, %1053, %cst_486 {dimension_numbers = #tpu.dot_dimension_numbers<[1], [0], [0], [1], [0, 0, 1, 1], [], []>} : vector<4x32xf32>, vector<32x16xf32>, vector<4x16xf32> -> vector<4x16xf32>
    %c0_487 = arith.constant 0 : index
    %c176_488 = arith.constant 176 : index
    %1055 = vector.load %arg14[%c0_487, %c176_488] : memref<1x273xf32, #tpu.memory_space<vmem>>, vector<1x16xf32>
    %1056 = vector.broadcast %1055 : vector<1x16xf32> to vector<4x16xf32>
    %1057 = arith.addf %1054, %1056 : vector<4x16xf32>
    %1058 = vector.extract_strided_slice %1057 {offsets = [0, 0], sizes = [4, 8], strides = [1, 1]} : vector<4x16xf32> to vector<4x8xf32>
    %1059 = vector.extract_strided_slice %1057 {offsets = [0, 8], sizes = [4, 8], strides = [1, 1]} : vector<4x16xf32> to vector<4x8xf32>
    %cst_489 = arith.constant 0.000000e+00 : f32
    %1060 = vector.broadcast %cst_489 : f32 to vector<4x8xf32>
    %1061 = arith.maximumf %1059, %1060 : vector<4x8xf32>
    %1062 = vector.broadcast %cst_489 : f32 to vector<4x8xf32>
    %1063 = arith.subf %1059, %1062 : vector<4x8xf32>
    %1064 = arith.cmpf one, %1063, %1063 : vector<4x8xf32>
    %1065 = vector.broadcast %cst_489 : f32 to vector<4x8xf32>
    %1066 = arith.addf %1059, %1065 : vector<4x8xf32>
    %1067 = math.absf %1063 : vector<4x8xf32>
    %cst_490 = arith.constant 0.000000e+00 : f32
    %1068 = vector.broadcast %cst_490 : f32 to vector<4x8xf32>
    %1069 = arith.subf %1068, %1067 : vector<4x8xf32>
    %1070 = math.exp %1069 : vector<4x8xf32>
    %1071 = math.log1p %1070 : vector<4x8xf32>
    %1072 = arith.addf %1061, %1071 : vector<4x8xf32>
    %1073 = arith.select %1064, %1066, %1072 : vector<4x8xi1>, vector<4x8xf32>
    %1074 = arith.mulf %992, %1046 : vector<4x8xf32>
    %1075 = arith.addf %1074, %1031 : vector<4x8xf32>
    %c0_491 = arith.constant 0 : index
    %c0_492 = arith.constant 0 : index
    %1076 = vector.load %arg9[%c0_491, %c0_492] : memref<8x32xf32, #tpu.memory_space<vmem>>, vector<8x32xf32>
    %cst_493 = arith.constant dense<0.000000e+00> : vector<4x32xf32>
    %1077 = tpu.matmul %1075, %1076, %cst_493 {dimension_numbers = #tpu.dot_dimension_numbers<[1], [0], [0], [1], [0, 0, 1, 1], [], []>} : vector<4x8xf32>, vector<8x32xf32>, vector<4x32xf32> -> vector<4x32xf32>
    %c0_494 = arith.constant 0 : index
    %c192_495 = arith.constant 192 : index
    %1078 = vector.load %arg14[%c0_494, %c192_495] : memref<1x273xf32, #tpu.memory_space<vmem>>, vector<1x32xf32>
    %1079 = vector.broadcast %1078 : vector<1x32xf32> to vector<4x32xf32>
    %1080 = arith.addf %1077, %1079 : vector<4x32xf32>
    %cst_496 = arith.constant 0.000000e+00 : f32
    %1081 = vector.broadcast %cst_496 : f32 to vector<4x32xf32>
    %1082 = arith.maximumf %1080, %1081 : vector<4x32xf32>
    %1083 = arith.subf %1031, %1058 : vector<4x8xf32>
    %1084 = arith.mulf %1073, %1073 : vector<4x8xf32>
    %cst_497 = arith.constant 1.000000e+00 : f32
    %1085 = vector.broadcast %cst_497 : f32 to vector<4x8xf32>
    %1086 = arith.divf %1085, %1084 : vector<4x8xf32>
    %1087 = arith.divf %1073, %1046 : vector<4x8xf32>
    %1088 = math.log %1087 : vector<4x8xf32>
    %cst_498 = arith.constant 2.000000e+00 : f32
    %1089 = vector.broadcast %cst_498 : f32 to vector<4x8xf32>
    %1090 = arith.mulf %1089, %1088 : vector<4x8xf32>
    %1091 = arith.mulf %1046, %1046 : vector<4x8xf32>
    %1092 = arith.mulf %1083, %1083 : vector<4x8xf32>
    %1093 = arith.addf %1091, %1092 : vector<4x8xf32>
    %1094 = arith.mulf %1093, %1086 : vector<4x8xf32>
    %1095 = arith.addf %1090, %1094 : vector<4x8xf32>
    %cst_499 = arith.constant 1.000000e+00 : f32
    %1096 = vector.broadcast %cst_499 : f32 to vector<4x8xf32>
    %1097 = arith.subf %1095, %1096 : vector<4x8xf32>
    %1098 = arith.addf %988, %1097 : vector<4x8xf32>
    %c0_500 = arith.constant 0 : index
    %c0_501 = arith.constant 0 : index
    %1099 = vector.load %arg16[%c0_500, %c0_501] : memref<4x32xf32, #tpu.memory_space<vmem>>, vector<4x32xf32>
    tpu.vector_store %arg16[%c0_500, %c0_501], %1082 {strides = array<i32>} : memref<4x32xf32, #tpu.memory_space<vmem>>, vector<4x32xf32>,
    %c0_502 = arith.constant 0 : index
    %c0_503 = arith.constant 0 : index
    %1100 = vector.load %arg11[%c0_502, %c0_503] : memref<32x32xf32, #tpu.memory_space<vmem>>, vector<32x32xf32>
    %cst_504 = arith.constant dense<0.000000e+00> : vector<4x32xf32>
    %1101 = tpu.matmul %1082, %1100, %cst_504 {dimension_numbers = #tpu.dot_dimension_numbers<[1], [0], [0], [1], [0, 0, 1, 1], [], []>} : vector<4x32xf32>, vector<32x32xf32>, vector<4x32xf32> -> vector<4x32xf32>
    %c0_505 = arith.constant 0 : index
    %c224 = arith.constant 224 : index
    %1102 = vector.load %arg14[%c0_505, %c224] : memref<1x273xf32, #tpu.memory_space<vmem>>, vector<1x32xf32>
    %1103 = vector.broadcast %1102 : vector<1x32xf32> to vector<4x32xf32>
    %1104 = arith.addf %1101, %1103 : vector<4x32xf32>
    %cst_506 = arith.constant 0.000000e+00 : f32
    %1105 = vector.broadcast %cst_506 : f32 to vector<4x32xf32>
    %1106 = arith.maximumf %1104, %1105 : vector<4x32xf32>
    %c0_507 = arith.constant 0 : index
    %c0_508 = arith.constant 0 : index
    %1107 = vector.load %arg12[%c0_507, %c0_508] : memref<32x16xf32, #tpu.memory_space<vmem>>, vector<32x16xf32>
    %cst_509 = arith.constant dense<0.000000e+00> : vector<4x16xf32>
    %1108 = tpu.matmul %1106, %1107, %cst_509 {dimension_numbers = #tpu.dot_dimension_numbers<[1], [0], [0], [1], [0, 0, 1, 1], [], []>} : vector<4x32xf32>, vector<32x16xf32>, vector<4x16xf32> -> vector<4x16xf32>
    %c0_510 = arith.constant 0 : index
    %c256 = arith.constant 256 : index
    %1109 = vector.load %arg14[%c0_510, %c256] : memref<1x273xf32, #tpu.memory_space<vmem>>, vector<1x16xf32>
    %1110 = vector.broadcast %1109 : vector<1x16xf32> to vector<4x16xf32>
    %1111 = arith.addf %1108, %1110 : vector<4x16xf32>
    %cst_511 = arith.constant 0.000000e+00 : f32
    %1112 = vector.broadcast %cst_511 : f32 to vector<4x16xf32>
    %1113 = arith.maximumf %1111, %1112 : vector<4x16xf32>
    %c0_512 = arith.constant 0 : index
    %c0_513 = arith.constant 0 : index
    %1114 = vector.load %arg13[%c0_512, %c0_513] : memref<16x1xf32, #tpu.memory_space<vmem>>, vector<16x1xf32>
    %cst_514 = arith.constant dense<0.000000e+00> : vector<4x1xf32>
    %1115 = tpu.matmul %1113, %1114, %cst_514 {dimension_numbers = #tpu.dot_dimension_numbers<[1], [0], [0], [1], [0, 0, 1, 1], [], []>} : vector<4x16xf32>, vector<16x1xf32>, vector<4x1xf32> -> vector<4x1xf32>
    %c0_515 = arith.constant 0 : index
    %c272 = arith.constant 272 : index
    %1116 = vector.load %arg14[%c0_515, %c272] : memref<1x273xf32, #tpu.memory_space<vmem>>, vector<1x1xf32>
    %1117 = vector.broadcast %1116 : vector<1x1xf32> to vector<4x1xf32>
    %1118 = arith.addf %1115, %1117 : vector<4x1xf32>
    %c0_516 = arith.constant 0 : index
    %c0_517 = arith.constant 0 : index
    %1119 = vector.load %arg15[%c0_516, %c0_517] : memref<4x1xf32, #tpu.memory_space<vmem>>, vector<4x1xf32>
    tpu.vector_store %arg15[%c0_516, %c0_517], %1118 {strides = array<i32>} : memref<4x1xf32, #tpu.memory_space<vmem>>, vector<4x1xf32>,
    %cst_518 = arith.constant 0.000000e+00 : f32
    %1120 = vector.broadcast %cst_518 : f32 to vector<1x1xf32>
    %1121 = vector.shape_cast %1098 : vector<4x8xf32> to vector<1x4x8xf32>
    %cst_519 = arith.constant dense<0.000000e+00> : vector<1xf32>
    %1122 = vector.multi_reduction <add>, %1121, %cst_519 [1, 2] : vector<1x4x8xf32> to vector<1xf32>
    %1123 = vector.shape_cast %1122 : vector<1xf32> to vector<1x1x1xf32>
    %1124 = vector.extract %1123[0, 0, 0] : f32 from vector<1x1x1xf32>
    %cst_520 = arith.constant 5.000000e-01 : f32
    %1125 = arith.mulf %cst_520, %1124 : f32
    %1126 = vector.broadcast %1125 : f32 to vector<1x1xf32>
    %1127 = arith.addf %1120, %1126 : vector<1x1xf32>
    %c0_521 = arith.constant 0 : index
    %c0_522 = arith.constant 0 : index
    %1128 = vector.load %arg17[%c0_521, %c0_522] : memref<1x1xf32, #tpu.memory_space<vmem>>, vector<1x1xf32>
    tpu.vector_store %arg17[%c0_521, %c0_522], %1127 {strides = array<i32>} : memref<1x1xf32, #tpu.memory_space<vmem>>, vector<1x1xf32>,
    return
  }
}

</mosaic_0001>

<bundles_post_ra>
// kernel: vrnn_model_forward.1
= control target key start
LH: loop header
LB: loop body
LE: loop exit
PB: predicated region body
PF: predicated region fallthrough
CT: control target
= control target key end

     0   :  { %s5363_s0 = inlined_call_operand.vmem [shape: f32[8,4,16], index: 0, kind: input, shape index: {}]   ;;  %s5364_s1 = inlined_call_operand.vmem [shape: f32[8,4,8], index: 1, kind: input, shape index: {}]   ;;  %s5365_s2 = inlined_call_operand.vmem [shape: f32[16,32], index: 2, kind: input, shape index: {}]   ;;  %s5366_s3 = inlined_call_operand.vmem [shape: f32[32,32], index: 3, kind: input, shape index: {}]   ;;  %s5367_s4 = inlined_call_operand.vmem [shape: f32[32,128], index: 4, kind: input, shape index: {}]   ;;  %s5368_s5 = inlined_call_operand.vmem [shape: f32[32,160], index: 5, kind: input, shape index: {}]   ;;  %s5369_s6 = inlined_call_operand.vmem [shape: f32[32,32], index: 6, kind: input, shape index: {}]   ;;  %s5370_s7 = inlined_call_operand.vmem [shape: f32[32,16], index: 7, kind: input, shape index: {}]   ;;  %s5371_s8 = inlined_call_operand.vmem [shape: f32[32,16], index: 8, kind: input, shape index: {}]   ;;  %s5372_s9 = inlined_call_operand.vmem [shape: f32[8,32], index: 9, kind: input, shape index: {}]   ;;  %s5373_s10 = inlined_call_operand.vmem [shape: f32[32,96], index: 10, kind: input, shape index: {}]   ;;  %s5374_s11 = inlined_call_operand.vmem [shape: f32[32,32], index: 11, kind: input, shape index: {}]   ;;  %s5375_s12 = inlined_call_operand.vmem [shape: f32[32,16], index: 12, kind: input, shape index: {}]   ;;  %s5376_s13 = inlined_call_operand.vmem [shape: f32[16,1], index: 13, kind: input, shape index: {}]   ;;  %s5377_s14 = inlined_call_operand.vmem [shape: f32[1,273], index: 14, kind: input, shape index: {}]   ;;  %s5378_s15 = inlined_call_operand.vmem [shape: f32[4,1], index: 15, kind: output, shape index: {0}]   ;;  %s5379_s16 = inlined_call_operand.hbm [shape: f32[4,32], index: 16, kind: output, shape index: {1}]   ;;  %s5380_s17 = inlined_call_operand.hbm [shape: f32[1,1], index: 17, kind: output, shape index: {2}]  }
   0x1   :  { %5392 = sst [smem:[#allocation20_spill]] %s5363_s0 }
   0x2   :  { %5393 = sst [smem:[#allocation21_spill]] %s5364_s1 }
   0x3   :  { %23 = vsyncpa [#allocation3], 0  ;;  %v3690_v0 = vld [vmem:[%s5365_s2 + $0x8] sm:$0xff]  ;;  %v3695_v1 = vld [vmem:[%s5365_s2] sm:$0xff]  ;;  %s5394_s0 = sld [smem:[#allocation20_spill]]  ;;  %vm63_vm0 = vcmask 130048  }
   0x4   :  { %81 = vmatpush.msra.mxu0 %v3690_v0  ;;  %v3704_v3 = vld [vmem:[%s5366_s3 + $0x18] sm:$0xff] }
   0x5   :  { %111 = vmatpush.msra.mxu1 %v3704_v3 }
   0x6   :  { %82 = vmatpush.msra.mxu0 %v3695_v1 }
   0x9   :  { %v55_v2 = vld [vmem:[%s5394_s0] sm:$0xf] }
   0xa   :  { %24 = vsyncpa [#allocation5], 0  ;;  %3218 = vmatmul.msk.f32.vlgmr.msra.gmra.mxu0 %vm63_vm0, %v55_v2  ;;  %v3712_v4 = vld [vmem:[%s5377_s14] ss:$0 sm:$0xff]  ;;  %s3586_s20 = smov 96   ;;  %v3719_v5 = vld [vmem:[%s5366_s3 + $0x10] sm:$0xff] }
   0xb   :  { %92 = vrot.lane.b32.xlu0 %v3712_v4, %s3586_s20  ;;  %112 = vmatpush.msra.mxu1 %v3719_v5  ;;  %v3725_v6 = vld [vmem:[%s5366_s3 + $0x8] sm:$0xff]  ;;  %v3731_v7 = vld [vmem:[%s5366_s3] sm:$0xff]  ;;  %v3737_v8 = vld [vmem:[%s5367_s4 + $0x18] sm:$0xff]  ;;  %vm95_vm1 = vcmask 261120   ;;  %s3587_s22 = smov 64   ;;  %v3588_v19 = vmov 0.0  }
   0xc   :  { %v3742_v9 = vld [vmem:[%s5368_s5 + $0x30] sm:$0xff]  ;;  %139 = vmatpush.msra.mxu2 %v3737_v8  ;;  %v3754_v11 = vld [vmem:[%s5368_s5 + $0x20] sm:$0xff]  ;;  %v3765_v15 = vld [vmem:[%s5367_s4 + $0x8] sm:$0xff]  ;;  %s3589_s1 = smov 16   ;;  %s3590_s21 = smov 32   ;;  %vm349_vm4 = vcmask 64512  }
   0xd   :  { %113 = vmatpush.msra.mxu1 %v3725_v6  ;;  %v3747_v10 = vld [vmem:[%s5367_s4 + $0x10] sm:$0xff]  ;;  %170 = vmatpush.msra.mxu3 %v3742_v9  ;;  %v3777_v17 = vld [vmem:[%s5367_s4] sm:$0xff]  ;;  %v3804_v25 = vld [vmem:[%s5369_s6 + $0x18] sm:$0xff]  ;;  %s3591_s26 = smov 120   ;;  %s3202_s29 = sshll.u32 %s5380_s17, 4  ;;  %s3203_s29 = int_to_ptr.hbm [resolvable:$true] %s3202_s29 }
   0xe   :  { %140 = vmatpush.msra.mxu2 %v3747_v10  ;;  %v3770_v16 = vld [vmem:[%s5368_s5 + $0x10] sm:$0xff]  ;;  %v3782_v18 = vld [vmem:[%s5368_s5] sm:$0xff]  ;;  %208 = vrot.lane.b32.xlu1 %v3712_v4, %s3590_s21  ;;  %v3823_v31 = vld [vmem:[%s5369_s6 + $0x8] sm:$0xff] }
   0xf   :  { %114 = vmatpush.msra.mxu1 %v3731_v7  ;;  %171 = vmatpush.msra.mxu3 %v3754_v11  ;;  %v3790_v20 = vld [vmem:[%s5377_s14 + $0x1] ss:$0 sm:$0xff]  ;;  %v3818_v30 = vld [vmem:[%s5369_s6 + $0x10] sm:$0xff]  ;;  %v3837_v34 = vld [vmem:[%s5371_s8 + $0x18] sm:$0xff] }
  0x10   :  { %141 = vmatpush.msra.mxu2 %v3765_v15  ;;  %346 = vrot.lane.b32.xlu2 %v3790_v20, %s3587_s22  ;;  %v3829_v33 = vld [vmem:[%s5369_s6] sm:$0xff]  ;;  %v3842_v35 = vld [vmem:[%s5371_s8 + $0x10] sm:$0xff]  ;;  %v3848_v36 = vld [vmem:[%s5371_s8 + $0x8] sm:$0xff] }
  0x11   :  { %172 = vmatpush.msra.mxu3 %v3770_v16  ;;  %226 = vmatpush.msrb.mxu1 %v3804_v25  ;;  %v3854_v37 = vld [vmem:[%s5371_s8] sm:$0xff]  ;;  %v3873_v43 = vld [vmem:[%s5370_s7 + $0x18] sm:$0xff]  ;;  %v3878_v44 = vld [vmem:[%s5370_s7 + $0x10] sm:$0xff] }
  0x12   :  { %142 = vmatpush.msra.mxu2 %v3777_v17  ;;  %v3890_v46 = vld [vmem:[%s5370_s7 + $0x8] sm:$0xff]  ;;  %v3896_v47 = vld [vmem:[%s5370_s7] sm:$0xff]  ;;  %v3916_v58 = vld [vmem:[%s5368_s5 + $0x38] sm:$0xff] }
  0x13   :  { %199 = vrot.lane.b32.xlu0 %v3712_v4, %s3587_s22  ;;  %173 = vmatpush.msra.mxu3 %v3782_v18  ;;  %v3228_v52 = vld [vmem:[%s5394_s0 + $0x4] sm:$0xf]  ;;  %v3921_v59 = vld [vmem:[%s5368_s5 + $0x28] sm:$0xff]  ;;  %v3929_v62 = vld [vmem:[%s5368_s5 + $0x18] sm:$0xff] }
  0x14   :  { %174 = vmatmul.f32.vlgmr.msra.gmra.mxu3 %v3588_v19  ;;  %227 = vmatpush.msrb.mxu1 %v3818_v30  ;;  %v3936_v2 = vld [vmem:[%s5368_s5 + $0x8] sm:$0xff] }
  0x15   :  { %313 = vmatpush.msrb.mxu3 %v3837_v34  ;;  %258 = vmatpush.msrb.mxu2 %v3873_v43 }
  0x16   :  { %228 = vmatpush.msrb.mxu1 %v3823_v31  ;;  %190 = vmatpush.msrb.mxu0 %v3916_v58 }
  0x17   :  { %314 = vmatpush.msrb.mxu3 %v3842_v35  ;;  %259 = vmatpush.msrb.mxu2 %v3878_v44 }
  0x18   :  { %284 = vrot.lane.b32.xlu2 %v3790_v20, %s3589_s1  ;;  %229 = vmatpush.msrb.mxu1 %v3829_v33  ;;  %s5397_s1 = sld [smem:[#allocation21_spill]] }
  0x19   :  { %315 = vmatpush.msrb.mxu3 %v3848_v36  ;;  %260 = vmatpush.msrb.mxu2 %v3890_v46 }
  0x1a   :  { %191 = vmatpush.msrb.mxu0 %v3921_v59 }
  0x1b   :  { %316 = vmatpush.msrb.mxu3 %v3854_v37  ;;  %261 = vmatpush.msrb.mxu2 %v3896_v47 }
  0x1c   :  { %192 = vmatpush.msrb.mxu0 %v3929_v62 }
  0x1d   :  { %538 = vmatpush.msra.mxu3 %v3704_v3 }
  0x1e   :  { %193 = vmatpush.msrb.mxu0 %v3936_v2 }
  0x1f   :  { %539 = vmatpush.msra.mxu3 %v3719_v5  ;;  %194 = vmatmul.f32.vlgmr.msrb.gmra.mxu0 %v3588_v19 }
  0x21   :  { %540 = vmatpush.msra.mxu3 %v3725_v6 }
  0x23   :  { %541 = vmatpush.msra.mxu3 %v3731_v7 }
  0x6a   :  { %v3807_v26 = vpop.permute.xlu2 %346 }
  0x72   :  { %v3809_v27 = vpop.permute.xlu2 %284 }
  0x7d   :  { %v3795_v21 = vpop.permute.xlu0 %92 }
  0x80   :  { %v3901_v48 = vpop.permute.xlu1 %208 }
  0x85   :  { %v3864_v39 = vpop.permute.xlu0 %199 }
  0x87   :  { %v84_v12 = vpop.f32.mrf.mxu0 }
  0x88   :  { %v85_v13 = vadd.f32 %v3712_v4, %v84_v12  ;;  %v3944_v12 = vld [vmem:[%s5372_s9] sm:$0xff] }
  0x89   :  { %368 = vmatpush.msra.mxu0 %v3944_v12 }
  0x8a   :  { %v87_v14 = vmax.f32 %v85_v13, 0.0 }
  0x8b   :  { %562 = vmatpush.msrb.mxu0 %v3737_v8 }
  0x8c   :  { %3219 = vmatmul.msk.f32.vlgmr.msra.gmra.mxu1 %vm95_vm1, %v87_v14 }
  0x8d   :  { %563 = vmatpush.msrb.mxu0 %v3747_v10 }
  0x8f   :  { %564 = vmatpush.msrb.mxu0 %v3765_v15 }
  0x91   :  { %565 = vmatpush.msrb.mxu0 %v3777_v17 }
  0x97   :  { %v3811_v28 = vpop.f32.mrf.mxu3 }
  0x98   :  { %v287_v29 = vadd.f32 %v3809_v27, %v3811_v28 }
  0x9a   :  { %v288_v32 = vmax.f32 %v287_v29, 0.0 }
  0x9c   :  { %294 = vrot.lane.b32.xlu2 %v288_v32, %s3586_s20 }
  0xf6   :  { %v295_v45 = vpop.permute.xlu2 %294 }
  0xf7   :  { %3223 = vmatmul.msk.f32.vlgmr.msrb.gmra.mxu3 %vm95_vm1, %v295_v45 }
  0xf8   :  { %633 = vmatpush.msrb.mxu3 %v3804_v25 }
  0xfa   :  { %634 = vmatpush.msrb.mxu3 %v3818_v30 }
  0xfc   :  { %635 = vmatpush.msrb.mxu3 %v3823_v31 }
  0xfe   :  { %636 = vmatpush.msrb.mxu3 %v3829_v33 }
 0x109   :  { %v116_v22 = vpop.f32.mrf.mxu1 }
 0x10a   :  { %v117_v23 = vadd.f32 %v116_v22, %v3795_v21 }
 0x10c   :  { %v119_v24 = vmax.f32 %v117_v23, 0.0 }
 0x10e   :  { %3220 = vmatmul.msk.f32.vlgmr.msra.gmra.mxu2 %vm95_vm1, %v119_v24 }
 0x10f   :  { %516 = vmatpush.msra.mxu2 %v3690_v0 }
 0x111   :  { %517 = vmatpush.msra.mxu2 %v3695_v1 }
 0x191   :  { %v3862_v38 = vpop.f32.mrf.mxu2 }
 0x192   :  { %v198_v40 = vadd.f32 %v3811_v28, %v3862_v38 }
 0x194   :  { %v202_v41 = vadd.f32 %v3864_v39, %v198_v40 }
 0x196   :  { %v203_v42 = vmax.f32 %v202_v41, 0.0 }
 0x198   :  { %3221 = vmatmul.msk.f32.vlgmr.msrb.gmra.mxu1 %vm95_vm1, %v203_v42 }
 0x215   :  { %v231_v49 = vpop.f32.mrf.mxu1 }
 0x216   :  { %v232_v50 = vadd.f32 %v231_v49, %v3901_v48  ;;  %v3968_v49 = vld [vmem:[%s5373_s10 + $0x18] sm:$0xff] }
 0x217   :  { %393 = vmatpush.msra.mxu1 %v3968_v49 }
 0x218   :  { %v234_v51 = vmax.f32 %v232_v50, 0.0  ;;  %v3973_v50 = vld [vmem:[%s5373_s10 + $0x10] sm:$0xff] }
 0x219   :  { %394 = vmatpush.msra.mxu1 %v3973_v50 }
 0x21a   :  { %3222 = vmatmul.msk.f32.vlgmr.msrb.gmra.mxu2 %vm95_vm1, %v234_v51  ;;  %v3979_v51 = vpop.f32.mrf.mxu3 }
 0x21b   :  { %607 = vmatpush.msrb.mxu2 %v3916_v58  ;;  %5396 = vst [vmem:[#allocation9_spill] sm:$0xff] %v3979_v51 }
 0x21d   :  { %608 = vmatpush.msrb.mxu2 %v3921_v59 }
 0x21f   :  { %609 = vmatpush.msrb.mxu2 %v3929_v62 }
 0x221   :  { %610 = vmatpush.msrb.mxu2 %v3936_v2 }
 0x222   :  { %3230 = vmatmul.msk.f32.vlgmr.msra.gmra.mxu2 %vm63_vm0, %v3228_v52 }
 0x223   :  { %752 = vmatpush.msra.mxu2 %v3944_v12 }
 0x29d   :  { %v263_v53 = vpop.f32.mrf.mxu2 }
 0x29e   :  { %v3910_v54 = vadd.f32 %v3790_v20, %v263_v53 }
 0x2a0   :  { %5395 = vst [vmem:[#allocation8_spill] sm:$0xff] %v3910_v54  ;;  %v269_v55 = vand.u32 2147483647, %v3910_v54  ;;  %v266_v40 = vmax.f32 %v3910_v54, 0.0  ;;  %vm267_vm3 = vcmp.ne.f32.partialorder %v3910_v54, %v3910_v54 }
 0x2a2   :  { %v270_v56 = vsub.f32 0.0, %v269_v55 }
 0x2a4   :  { %v271_v57 = vmul.f32 1.442695, %v270_v56 }
 0x2a5   :  { %v519_v60 = vpop.f32.mrf.mxu2 }
 0x2a6   :  { %3343 = vpow2.f32 %v271_v57  ;;  %v520_v61 = vadd.f32 %v3712_v4, %v519_v60 }
 0x2a8   :  { %v522_v63 = vmax.f32 %v520_v61, 0.0  ;;  %v3997_v61 = vld [vmem:[%s5373_s10 + $0x8] sm:$0xff] }
 0x2a9   :  { %395 = vmatpush.msra.mxu1 %v3997_v61 }
 0x2aa   :  { %3231 = vmatmul.msk.f32.vlgmr.msra.gmra.mxu3 %vm95_vm1, %v522_v63  ;;  %v4004_v63 = vld [vmem:[%s5373_s10] sm:$0xff] }
 0x2ab   :  { %773 = vmatpush.msra.mxu3 %v3968_v49  ;;  %396 = vmatpush.msra.mxu1 %v4004_v63 }
 0x2ac   :  { %v3344_v13 = vpop.eup %3343 }
 0x2ad   :  { %v273_v14 = vadd.f32 1.0, %v3344_v13  ;;  %v276_v22 = vmul.f32 -0.5, %v3344_v13  ;;  %v279_v24 = vand.u32 2147483647, %v3344_v13  ;;  %774 = vmatpush.msra.mxu3 %v3973_v50  ;;  %587 = vmatpush.msrb.mxu1 %v3742_v9 }
 0x2af   :  { %3345 = vlog2.f32 %v273_v14  ;;  %v277_v23 = vadd.f32 1.0, %v276_v22  ;;  %vm280_vm2 = vcmp.lt.f32.partialorder %v279_v24, 0.0004427343  ;;  %775 = vmatpush.msra.mxu3 %v3997_v61  ;;  %588 = vmatpush.msrb.mxu1 %v3754_v11 }
 0x2b1   :  { %v278_v19 = vmul.f32 %v3344_v13, %v277_v23  ;;  %776 = vmatpush.msra.mxu3 %v4004_v63  ;;  %589 = vmatpush.msrb.mxu1 %v3770_v16  ;;  %v195_v13 = vpop.f32.mrf.mxu0 }
 0x2b3   :  { %590 = vmatpush.msrb.mxu1 %v3782_v18 }
 0x2b5   :  { %v3346_v29 = vpop.eup %3345 }
 0x2b6   :  { %v275_v32 = vmul.f32 0.6931472, %v3346_v29 }
 0x2b8   :  { %v281_v41 = vsel %vm280_vm2, %v278_v19, %v275_v32 }
 0x2b9   :  { %v282_v42 = vadd.f32 %v281_v41, %v266_v40 }
 0x2bb   :  { %v3959_v45 = vsel %vm267_vm3, %v3910_v54, %v282_v42 }
 0x2bc   :  { %340 = vrot.lane.b32.xlu1 %v3959_v45, %s3591_s26 }
 0x2c4   :  { %407 = vrot.lane.b32.xlu1 %v3811_v28, %s3586_s20  ;;  %v56_v28 = vld [vmem:[%s5397_s1] sm:$0xf] }
 0x32d   :  { %v543_v56 = vpop.f32.mrf.mxu3 }
 0x32e   :  { %v341_v52 = vpop.permute.xlu1 %340  ;;  %v544_v57 = vadd.f32 %v543_v56, %v3795_v21 }
 0x32f   :  { %v343_v53 = vmul.f32 %v341_v52, %v56_v28 }
 0x330   :  { %v546_v60 = vmax.f32 %v544_v57, 0.0 }
 0x331   :  { %v344_v55 = vadd.f32 %v343_v53, %v3910_v54 }
 0x333   :  { %3224 = vmatmul.msk.f32.vlgmr.msra.gmra.mxu0 %vm349_vm4, %v344_v55 }
 0x334   :  { %657 = vmatpush.msra.mxu0 %v3873_v43 }
 0x336   :  { %658 = vmatpush.msra.mxu0 %v3878_v44  ;;  %v408_v19 = vpop.permute.xlu1 %407 }
 0x338   :  { %659 = vmatpush.msra.mxu0 %v3890_v46 }
 0x33a   :  { %660 = vmatpush.msra.mxu0 %v3896_v47 }
 0x33b   :  { %3232 = vmatmul.msk.f32.vlgmr.msrb.gmra.mxu0 %vm95_vm1, %v546_v60 }
 0x33c   :  { %896 = vmatpush.msrb.mxu0 %v3690_v0 }
 0x33e   :  { %897 = vmatpush.msrb.mxu0 %v3695_v1 }
 0x3b0   :  { %v370_v14 = vpop.f32.mrf.mxu0 }
 0x3b1   :  { %v371_v22 = vadd.f32 %v370_v14, %v3807_v26 }
 0x3b3   :  { %v373_v23 = vmax.f32 %v371_v22, 0.0 }
 0x3b5   :  { %3225 = vmatmul.msk.f32.vlgmr.msra.gmra.mxu1 %vm95_vm1, %v373_v23 }
 0x3b6   :  { %702 = vmatpush.msra.mxu1 %v3837_v34 }
 0x3b8   :  { %703 = vmatpush.msra.mxu1 %v3842_v35 }
 0x3ba   :  { %704 = vmatpush.msra.mxu1 %v3848_v36 }
 0x3bc   :  { %705 = vmatpush.msra.mxu1 %v3854_v37 }
 0x432   :  { %v398_v24 = vpop.f32.mrf.mxu1 }
 0x433   :  { %402 = vrot.lane.b32.xlu0 %v398_v24, %s3590_s21 }
 0x43b   :  { %431 = vrot.lane.b32.xlu0 %v195_v13, %s3590_s21 }
 0x4a5   :  { %v403_v29 = vpop.permute.xlu0 %402 }
 0x4a6   :  { %v405_v32 = vadd.f32 %v403_v29, %v3862_v38 }
 0x4a8   :  { %v410_v40 = vadd.f32 %v408_v19, %v405_v32 }
 0x4aa   :  { %v3226_v41 = vmul.f32 -1.442695, %v410_v40 }
 0x4ac   :  { %3347 = vpow2.f32 %v3226_v41 }
 0x4ad   :  { %v432_v38 = vpop.permute.xlu0 %431 }
 0x4b2   :  { %v3348_v42 = vpop.eup %3347 }
 0x4b3   :  { %v414_v28 = vadd.f32 1.0, %v3348_v42 }
 0x4b5   :  { %3349 = vrcp.f32 %v414_v28  ;;  %v426_v56 = vand.u32 2147483648, %v414_v28  ;;  %v424_v60 = vand.u32 2147483647, %v414_v28  ;;  %vm420_vm6 = vweird.f32 %v414_v28 }
 0x4b7   :  { %v427_v13 = vor.u32 1.1754944e-38, %v426_v56  ;;  %vm425_vm8 = vcmp.eq.f32.partialorder %v424_v60, 8.507059e+37 }
 0x4bb   :  { %v3350_v52 = vpop.eup %3349 }
 0x4bc   :  { %v416_v53 = vmul.f32 %v3350_v52, %v414_v28  ;;  %vm421_vm5 = vweird.f32 %v3350_v52 }
 0x4bd   :  { %vm422_vm7 = vmor %vm420_vm6, %vm421_vm5 }
 0x4be   :  { %v417_v55 = vsub.f32 1.0, %v416_v53 }
 0x4c0   :  { %v418_v57 = vmul.f32 %v3350_v52, %v417_v55 }
 0x4c2   :  { %v419_v14 = vadd.f32 %v3350_v52, %v418_v57 }
 0x4c4   :  { %v423_v22 = vsel %vm422_vm7, %v3350_v52, %v419_v14 }
 0x4c5   :  { %v428_v23 = vsel %vm425_vm8, %v427_v13, %v423_v22 }
 0x4c6   :  { %v434_v24 = vmul.f32 %v432_v38, %v428_v23  ;;  %v441_v41 = vsub.f32 1.0, %v428_v23  ;;  %v447_v53 = vmul.f32 0.0, %v428_v23  ;;  %v3242_v23 = vld [vmem:[%s5394_s0 + $0x8] sm:$0xf] }
 0x4c8   :  { %436 = vrot.lane.b32.xlu1 %v434_v24, %s3587_s22 }
 0x53a   :  { %v437_v29 = vpop.permute.xlu1 %436 }
 0x53b   :  { %v439_v19 = vadd.f32 %v437_v29, %v405_v32  ;;  %v4037_v32 = vpop.f32.mrf.mxu0 }
 0x53d   :  { %3351 = vtanh.f32 %v439_v19 }
 0x543   :  { %v3352_v40 = vpop.eup %3351 }
 0x544   :  { %443 = vrot.lane.b32.xlu2 %v3352_v40, %s3586_s20 }
 0x59e   :  { %v444_v42 = vpop.permute.xlu2 %443 }
 0x59f   :  { %v446_v55 = vmul.f32 %v444_v42, %v441_v41 }
 0x5a1   :  { %v4023_v28 = vadd.f32 %v447_v53, %v446_v55 }
 0x5a3   :  { %571 = vrot.lane.b32.xlu0 %v4023_v28, %s3587_s22 }
 0x615   :  { %v572_v52 = vpop.permute.xlu0 %571 }
 0x616   :  { %3233 = vmatmul.msk.f32.vlgmr.msrb.gmra.mxu1 %vm95_vm1, %v572_v52  ;;  %3234 = vmatmul.msk.f32.vlgmr.msrb.gmra.mxu2 %vm95_vm1, %v572_v52 }
 0x617   :  { %918 = vmatpush.msrb.mxu1 %v3704_v3  ;;  %942 = vmatpush.msrb.mxu2 %v3737_v8 }
 0x619   :  { %919 = vmatpush.msrb.mxu1 %v3719_v5  ;;  %943 = vmatpush.msrb.mxu2 %v3747_v10 }
 0x61b   :  { %920 = vmatpush.msrb.mxu1 %v3725_v6  ;;  %944 = vmatpush.msrb.mxu2 %v3765_v15 }
 0x61d   :  { %921 = vmatpush.msrb.mxu1 %v3731_v7  ;;  %945 = vmatpush.msrb.mxu2 %v3777_v17 }
 0x693   :  { %v592_v56 = vpop.f32.mrf.mxu1 }
 0x694   :  { %v615_v57 = vadd.f32 %v592_v56, %v4037_v32  ;;  %787 = vrot.lane.b32.xlu0 %v592_v56, %s3586_s20 }
 0x696   :  { %v616_v60 = vadd.f32 %v615_v57, %v3864_v39 }
 0x698   :  { %v617_v14 = vmax.f32 %v616_v60, 0.0 }
 0x69a   :  { %3235 = vmatmul.msk.f32.vlgmr.msrb.gmra.mxu3 %vm95_vm1, %v617_v14 }
 0x69b   :  { %967 = vmatpush.msrb.mxu3 %v3742_v9 }
 0x69d   :  { %968 = vmatpush.msrb.mxu3 %v3754_v11 }
 0x69f   :  { %969 = vmatpush.msrb.mxu3 %v3770_v16 }
 0x6a1   :  { %970 = vmatpush.msrb.mxu3 %v3782_v18 }
 0x71d   :  { %v638_v13 = vpop.f32.mrf.mxu3 }
 0x71e   :  { %v639_v22 = vadd.f32 %v638_v13, %v3901_v48 }
 0x720   :  { %v641_v38 = vmax.f32 %v639_v22, 0.0 }
 0x722   :  { %3236 = vmatmul.msk.f32.vlgmr.msra.gmra.mxu0 %vm95_vm1, %v641_v38 }
 0x723   :  { %987 = vmatpush.msra.mxu0 %v3916_v58 }
 0x725   :  { %988 = vmatpush.msra.mxu0 %v3921_v59 }
 0x727   :  { %989 = vmatpush.msra.mxu0 %v3929_v62 }
 0x729   :  { %990 = vmatpush.msra.mxu0 %v3936_v2 }
 0x72a   :  { %3244 = vmatmul.msk.f32.vlgmr.msrb.gmra.mxu0 %vm63_vm0, %v3242_v23 }
 0x72b   :  { %1132 = vmatpush.msrb.mxu0 %v3944_v12 }
 0x79f   :  { %v662_v24 = vpop.f32.mrf.mxu0 }
 0x7a0   :  { %v4058_v29 = vadd.f32 %v3790_v20, %v662_v24 }
 0x7a2   :  { %5398 = vst [vmem:[#allocation10_spill] sm:$0xff] %v4058_v29  ;;  %v668_v19 = vand.u32 2147483647, %v4058_v29  ;;  %v665_v22 = vmax.f32 %v4058_v29, 0.0  ;;  %vm666_vm10 = vcmp.ne.f32.partialorder %v4058_v29, %v4058_v29 }
 0x7a4   :  { %v669_v40 = vsub.f32 0.0, %v668_v19  ;;  %v683_v19 = vadd.f32 %v592_v56, %v3809_v27 }
 0x7a6   :  { %v670_v41 = vmul.f32 1.442695, %v669_v40  ;;  %v684_v40 = vmax.f32 %v683_v19, 0.0 }
 0x7a8   :  { %3353 = vpow2.f32 %v670_v41  ;;  %v3229_v41 = vld [vmem:[%s5397_s1 + $0x4] sm:$0xf] }
 0x7ae   :  { %v3354_v42 = vpop.eup %3353 }
 0x7af   :  { %v672_v53 = vadd.f32 1.0, %v3354_v42  ;;  %v675_v55 = vmul.f32 -0.5, %v3354_v42  ;;  %v678_v57 = vand.u32 2147483647, %v3354_v42 }
 0x7b1   :  { %3355 = vlog2.f32 %v672_v53  ;;  %v676_v52 = vadd.f32 1.0, %v675_v55  ;;  %vm679_vm9 = vcmp.lt.f32.partialorder %v678_v57, 0.0004427343 }
 0x7b3   :  { %v677_v13 = vmul.f32 %v3354_v42, %v676_v52  ;;  %v899_v52 = vpop.f32.mrf.mxu0 }
 0x7b4   :  { %v900_v56 = vadd.f32 %v3712_v4, %v899_v52  ;;  %v788_v52 = vpop.permute.xlu0 %787 }
 0x7b7   :  { %v3356_v60 = vpop.eup %3355 }
 0x7b8   :  { %v674_v14 = vmul.f32 0.6931472, %v3356_v60  ;;  %v902_v60 = vmax.f32 %v900_v56, 0.0 }
 0x7ba   :  { %v680_v38 = vsel %vm679_vm9, %v677_v13, %v674_v14  ;;  %v612_v14 = vpop.f32.mrf.mxu2 }
 0x7bb   :  { %v681_v23 = vadd.f32 %v680_v38, %v665_v22 }
 0x7bd   :  { %v4066_v24 = vsel %vm666_vm10, %v4058_v29, %v681_v23 }
 0x7be   :  { %729 = vrot.lane.b32.xlu1 %v4066_v24, %s3591_s26 }
 0x7c6   :  { %686 = vrot.lane.b32.xlu1 %v684_v40, %s3586_s20 }
 0x830   :  { %v730_v42 = vpop.permute.xlu1 %729 }
 0x831   :  { %v732_v53 = vmul.f32 %v3229_v41, %v730_v42 }
 0x833   :  { %v733_v55 = vadd.f32 %v732_v53, %v4058_v29 }
 0x835   :  { %3238 = vmatmul.msk.f32.vlgmr.msra.gmra.mxu2 %vm349_vm4, %v733_v55 }
 0x836   :  { %1037 = vmatpush.msra.mxu2 %v3873_v43 }
 0x838   :  { %v687_v57 = vpop.permute.xlu1 %686  ;;  %1038 = vmatpush.msra.mxu2 %v3878_v44 }
 0x839   :  { %3237 = vmatmul.msk.f32.vlgmr.msra.gmra.mxu1 %vm95_vm1, %v687_v57 }
 0x83a   :  { %1013 = vmatpush.msra.mxu1 %v3804_v25  ;;  %1039 = vmatpush.msra.mxu2 %v3890_v46 }
 0x83c   :  { %1014 = vmatpush.msra.mxu1 %v3818_v30  ;;  %1040 = vmatpush.msra.mxu2 %v3896_v47 }
 0x83e   :  { %1015 = vmatpush.msra.mxu1 %v3823_v31 }
 0x840   :  { %1016 = vmatpush.msra.mxu1 %v3829_v33 }
 0x841   :  { %3245 = vmatmul.msk.f32.vlgmr.msrb.gmra.mxu1 %vm95_vm1, %v902_v60 }
 0x842   :  { %1153 = vmatpush.msrb.mxu1 %v3968_v49 }
 0x844   :  { %1154 = vmatpush.msrb.mxu1 %v3973_v50 }
 0x846   :  { %1155 = vmatpush.msrb.mxu1 %v3997_v61 }
 0x848   :  { %1156 = vmatpush.msrb.mxu1 %v4004_v63 }
 0x8b6   :  { %v4092_v13 = vpop.f32.mrf.mxu1 }
 0x8b7   :  { %5399 = vst [vmem:[#allocation11_spill] sm:$0xff] %v4092_v13 }
 0x8b8   :  { %v754_v22 = vpop.f32.mrf.mxu2 }
 0x8b9   :  { %v755_v38 = vadd.f32 %v754_v22, %v3807_v26 }
 0x8bb   :  { %v757_v23 = vmax.f32 %v755_v38, 0.0 }
 0x8bd   :  { %3239 = vmatmul.msk.f32.vlgmr.msra.gmra.mxu3 %vm95_vm1, %v757_v23 }
 0x8be   :  { %v923_v19 = vpop.f32.mrf.mxu1  ;;  %1082 = vmatpush.msra.mxu3 %v3837_v34 }
 0x8bf   :  { %v924_v40 = vadd.f32 %v923_v19, %v3795_v21 }
 0x8c0   :  { %1083 = vmatpush.msra.mxu3 %v3842_v35 }
 0x8c1   :  { %v926_v41 = vmax.f32 %v924_v40, 0.0 }
 0x8c2   :  { %1084 = vmatpush.msra.mxu3 %v3848_v36 }
 0x8c3   :  { %3246 = vmatmul.msk.f32.vlgmr.msrb.gmra.mxu2 %vm95_vm1, %v926_v41 }
 0x8c4   :  { %1276 = vmatpush.msrb.mxu2 %v3690_v0  ;;  %1085 = vmatpush.msra.mxu3 %v3854_v37 }
 0x8c6   :  { %1277 = vmatpush.msrb.mxu2 %v3695_v1 }
 0x940   :  { %v778_v42 = vpop.f32.mrf.mxu3 }
 0x941   :  { %782 = vrot.lane.b32.xlu2 %v778_v42, %s3590_s21 }
 0x949   :  { %811 = vrot.lane.b32.xlu2 %v612_v14, %s3590_s21 }
 0x99b   :  { %v783_v53 = vpop.permute.xlu2 %782 }
 0x99c   :  { %v785_v55 = vadd.f32 %v783_v53, %v4037_v32 }
 0x99e   :  { %v790_v57 = vadd.f32 %v788_v52, %v785_v55 }
 0x9a0   :  { %v3240_v56 = vmul.f32 -1.442695, %v790_v57 }
 0x9a2   :  { %3357 = vpow2.f32 %v3240_v56 }
 0x9a3   :  { %v812_v53 = vpop.permute.xlu2 %811 }
 0x9a8   :  { %v3358_v60 = vpop.eup %3357 }
 0x9a9   :  { %v794_v22 = vadd.f32 1.0, %v3358_v60 }
 0x9ab   :  { %3359 = vrcp.f32 %v794_v22  ;;  %v806_v40 = vand.u32 2147483648, %v794_v22  ;;  %v804_v54 = vand.u32 2147483647, %v794_v22  ;;  %vm800_vm12 = vweird.f32 %v794_v22 }
 0x9ad   :  { %v807_v14 = vor.u32 1.1754944e-38, %v806_v40  ;;  %vm805_vm14 = vcmp.eq.f32.partialorder %v804_v54, 8.507059e+37 }
 0x9b1   :  { %v3360_v38 = vpop.eup %3359 }
 0x9b2   :  { %v796_v23 = vmul.f32 %v3360_v38, %v794_v22  ;;  %vm801_vm11 = vweird.f32 %v3360_v38 }
 0x9b3   :  { %vm802_vm13 = vmor %vm800_vm12, %vm801_vm11 }
 0x9b4   :  { %v797_v19 = vsub.f32 1.0, %v796_v23 }
 0x9b6   :  { %v798_v41 = vmul.f32 %v3360_v38, %v797_v19 }
 0x9b8   :  { %v799_v42 = vadd.f32 %v3360_v38, %v798_v41 }
 0x9ba   :  { %v803_v29 = vsel %vm802_vm13, %v3360_v38, %v799_v42 }
 0x9bb   :  { %v808_v32 = vsel %vm805_vm14, %v807_v14, %v803_v29 }
 0x9bc   :  { %v814_v52 = vmul.f32 %v812_v53, %v808_v32  ;;  %v821_v23 = vsub.f32 1.0, %v808_v32  ;;  %v827_v41 = vmul.f32 %v808_v32, %v4023_v28  ;;  %v4124_v28 = vpop.f32.mrf.mxu2 }
 0x9be   :  { %816 = vrot.lane.b32.xlu0 %v814_v52, %s3587_s22 }
 0xa30   :  { %v817_v57 = vpop.permute.xlu0 %816 }
 0xa31   :  { %v819_v56 = vadd.f32 %v817_v57, %v785_v55 }
 0xa33   :  { %3361 = vtanh.f32 %v819_v56 }
 0xa39   :  { %v3362_v60 = vpop.eup %3361 }
 0xa3a   :  { %823 = vrot.lane.b32.xlu1 %v3362_v60, %s3586_s20 }
 0xaac   :  { %v824_v19 = vpop.permute.xlu1 %823 }
 0xaad   :  { %v826_v22 = vmul.f32 %v824_v19, %v821_v23 }
 0xaaf   :  { %v4110_v51 = vadd.f32 %v827_v41, %v826_v22 }
 0xab1   :  { %951 = vrot.lane.b32.xlu2 %v4110_v51, %s3587_s22 }
 0xb0b   :  { %v952_v54 = vpop.permute.xlu2 %951 }
 0xb0c   :  { %3247 = vmatmul.msk.f32.vlgmr.msrb.gmra.mxu3 %vm95_vm1, %v952_v54  ;;  %3248 = vmatmul.msk.f32.vlgmr.msra.gmra.mxu0 %vm95_vm1, %v952_v54 }
 0xb0d   :  { %1298 = vmatpush.msrb.mxu3 %v3704_v3  ;;  %1322 = vmatpush.msra.mxu0 %v3737_v8 }
 0xb0f   :  { %1299 = vmatpush.msrb.mxu3 %v3719_v5  ;;  %1323 = vmatpush.msra.mxu0 %v3747_v10 }
 0xb11   :  { %1300 = vmatpush.msrb.mxu3 %v3725_v6  ;;  %1324 = vmatpush.msra.mxu0 %v3765_v15 }
 0xb13   :  { %1301 = vmatpush.msrb.mxu3 %v3731_v7  ;;  %1325 = vmatpush.msra.mxu0 %v3777_v17 }
 0xb8f   :  { %v972_v29 = vpop.f32.mrf.mxu3 }
 0xb90   :  { %v995_v55 = vadd.f32 %v972_v29, %v4124_v28  ;;  %1167 = vrot.lane.b32.xlu2 %v972_v29, %s3586_s20 }
 0xb92   :  { %v996_v3 = vadd.f32 %v995_v55, %v3864_v39 }
 0xb94   :  { %v997_v38 = vmax.f32 %v996_v3, 0.0 }
 0xb96   :  { %3249 = vmatmul.msk.f32.vlgmr.msra.gmra.mxu1 %vm95_vm1, %v997_v38 }
 0xb97   :  { %1347 = vmatpush.msra.mxu1 %v3742_v9  ;;  %v3256_v9 = vld [vmem:[%s5394_s0 + $0xc] sm:$0xf] }
 0xb99   :  { %1348 = vmatpush.msra.mxu1 %v3754_v11 }
 0xb9b   :  { %1349 = vmatpush.msra.mxu1 %v3770_v16 }
 0xb9d   :  { %1350 = vmatpush.msra.mxu1 %v3782_v18 }
 0xc13   :  { %v1018_v40 = vpop.f32.mrf.mxu1 }
 0xc14   :  { %v1019_v42 = vadd.f32 %v1018_v40, %v3901_v48 }
 0xc16   :  { %v1021_v14 = vmax.f32 %v1019_v42, 0.0 }
 0xc18   :  { %3250 = vmatmul.msk.f32.vlgmr.msra.gmra.mxu2 %vm95_vm1, %v1021_v14 }
 0xc19   :  { %1367 = vmatpush.msra.mxu2 %v3916_v58 }
 0xc1b   :  { %1368 = vmatpush.msra.mxu2 %v3921_v59 }
 0xc1d   :  { %1369 = vmatpush.msra.mxu2 %v3929_v62 }
 0xc1f   :  { %1370 = vmatpush.msra.mxu2 %v3936_v2 }
 0xc20   :  { %3258 = vmatmul.msk.f32.vlgmr.msrb.gmra.mxu2 %vm63_vm0, %v3256_v9  ;;  %v1063_v9 = vadd.f32 %v972_v29, %v3809_v27 }
 0xc21   :  { %1512 = vmatpush.msrb.mxu2 %v3944_v12 }
 0xc9b   :  { %v1042_v32 = vpop.f32.mrf.mxu2 }
 0xc9c   :  { %v4146_v53 = vadd.f32 %v3790_v20, %v1042_v32  ;;  %v1064_v32 = vmax.f32 %v1063_v9, 0.0 }
 0xc9e   :  { %5400 = vst [vmem:[#allocation12_spill] sm:$0xff] %v4146_v53  ;;  %v1048_v52 = vand.u32 2147483647, %v4146_v53  ;;  %v1045_v38 = vmax.f32 %v4146_v53, 0.0  ;;  %vm1046_vm2 = vcmp.ne.f32.partialorder %v4146_v53, %v4146_v53 }
 0xca0   :  { %v1049_v57 = vsub.f32 0.0, %v1048_v52  ;;  %v3243_v52 = vld [vmem:[%s5397_s1 + $0x8] sm:$0xf] }
 0xca2   :  { %v1050_v56 = vmul.f32 1.442695, %v1049_v57 }
 0xca4   :  { %3363 = vpow2.f32 %v1050_v56 }
 0xcaa   :  { %v3364_v60 = vpop.eup %3363 }
 0xcab   :  { %v1052_v23 = vadd.f32 1.0, %v3364_v60  ;;  %v1055_v19 = vmul.f32 -0.5, %v3364_v60  ;;  %v1058_v22 = vand.u32 2147483647, %v3364_v60 }
 0xcad   :  { %3365 = vlog2.f32 %v1052_v23  ;;  %v1056_v41 = vadd.f32 1.0, %v1055_v19  ;;  %vm1059_vm15 = vcmp.lt.f32.partialorder %v1058_v22, 0.0004427343  ;;  %v1279_v23 = vpop.f32.mrf.mxu2 }
 0xcae   :  { %v1280_v29 = vadd.f32 %v3712_v4, %v1279_v23  ;;  %v992_v4 = vpop.f32.mrf.mxu0 }
 0xcaf   :  { %v1057_v3 = vmul.f32 %v3364_v60, %v1056_v41 }
 0xcb0   :  { %v1282_v41 = vmax.f32 %v1280_v29, 0.0 }
 0xcb3   :  { %v3366_v54 = vpop.eup %3365 }
 0xcb4   :  { %v1054_v55 = vmul.f32 0.6931472, %v3366_v54 }
 0xcb6   :  { %v1060_v40 = vsel %vm1059_vm15, %v1057_v3, %v1054_v55 }
 0xcb7   :  { %v1061_v42 = vadd.f32 %v1060_v40, %v1045_v38 }
 0xcb9   :  { %v4153_v14 = vsel %vm1046_vm2, %v4146_v53, %v1061_v42 }
 0xcba   :  { %1109 = vrot.lane.b32.xlu0 %v4153_v14, %s3591_s26 }
 0xcc2   :  { %1066 = vrot.lane.b32.xlu0 %v1064_v32, %s3586_s20 }
 0xd2c   :  { %v1110_v57 = vpop.permute.xlu0 %1109 }
 0xd2d   :  { %v1112_v56 = vmul.f32 %v3243_v52, %v1110_v57 }
 0xd2f   :  { %v1113_v60 = vadd.f32 %v1112_v56, %v4146_v53 }
 0xd31   :  { %3252 = vmatmul.msk.f32.vlgmr.msrb.gmra.mxu0 %vm349_vm4, %v1113_v60 }
 0xd32   :  { %1417 = vmatpush.msrb.mxu0 %v3873_v43 }
 0xd34   :  { %v1067_v19 = vpop.permute.xlu0 %1066  ;;  %1418 = vmatpush.msrb.mxu0 %v3878_v44 }
 0xd35   :  { %3251 = vmatmul.msk.f32.vlgmr.msra.gmra.mxu3 %vm95_vm1, %v1067_v19 }
 0xd36   :  { %1393 = vmatpush.msra.mxu3 %v3804_v25  ;;  %1419 = vmatpush.msrb.mxu0 %v3890_v46 }
 0xd38   :  { %1394 = vmatpush.msra.mxu3 %v3818_v30  ;;  %1420 = vmatpush.msrb.mxu0 %v3896_v47 }
 0xd3a   :  { %1395 = vmatpush.msra.mxu3 %v3823_v31 }
 0xd3c   :  { %1396 = vmatpush.msra.mxu3 %v3829_v33 }
 0xd3d   :  { %3259 = vmatmul.msk.f32.vlgmr.msrb.gmra.mxu3 %vm95_vm1, %v1282_v41 }
 0xd3e   :  { %1533 = vmatpush.msrb.mxu3 %v3968_v49 }
 0xd40   :  { %1534 = vmatpush.msrb.mxu3 %v3973_v50 }
 0xd42   :  { %1535 = vmatpush.msrb.mxu3 %v3997_v61 }
 0xd44   :  { %1536 = vmatpush.msrb.mxu3 %v4004_v63 }
 0xdae   :  { %v1134_v25 = vpop.f32.mrf.mxu0 }
 0xdaf   :  { %v1135_v30 = vadd.f32 %v1134_v25, %v3807_v26 }
 0xdb1   :  { %v1137_v22 = vmax.f32 %v1135_v30, 0.0 }
 0xdb3   :  { %3253 = vmatmul.msk.f32.vlgmr.msrb.gmra.mxu1 %vm95_vm1, %v1137_v22 }
 0xdb4   :  { %1462 = vmatpush.msrb.mxu1 %v3837_v34 }
 0xdb6   :  { %1463 = vmatpush.msrb.mxu1 %v3842_v35 }
 0xdb8   :  { %v4183_v31 = vpop.f32.mrf.mxu3  ;;  %1464 = vmatpush.msrb.mxu1 %v3848_v36  ;;  %v1168_v36 = vpop.permute.xlu2 %1167 }
 0xdb9   :  { %5401 = vst [vmem:[#allocation13_spill] sm:$0xff] %v4183_v31 }
 0xdba   :  { %1465 = vmatpush.msrb.mxu1 %v3854_v37 }
 0xdc0   :  { %v1303_v33 = vpop.f32.mrf.mxu3 }
 0xdc1   :  { %v1304_v54 = vadd.f32 %v1303_v33, %v3795_v21 }
 0xdc3   :  { %v1306_v55 = vmax.f32 %v1304_v54, 0.0 }
 0xdc5   :  { %3260 = vmatmul.msk.f32.vlgmr.msra.gmra.mxu0 %vm95_vm1, %v1306_v55 }
 0xdc6   :  { %1656 = vmatpush.msra.mxu0 %v3690_v0 }
 0xdc8   :  { %1657 = vmatpush.msra.mxu0 %v3695_v1 }
 0xe30   :  { %v1158_v3 = vpop.f32.mrf.mxu1 }
 0xe31   :  { %1162 = vrot.lane.b32.xlu1 %v1158_v3, %s3590_s21 }
 0xe39   :  { %1191 = vrot.lane.b32.xlu1 %v992_v4, %s3590_s21 }
 0xea3   :  { %v1163_v34 = vpop.permute.xlu1 %1162 }
 0xea4   :  { %v1165_v35 = vadd.f32 %v1163_v34, %v4124_v28  ;;  %v4206_v34 = vld [vmem:[%s5366_s3 + $0x18] sm:$0xff] }
 0xea6   :  { %v1170_v37 = vadd.f32 %v1168_v36, %v1165_v35 }
 0xea8   :  { %v3254_v38 = vmul.f32 -1.442695, %v1170_v37 }
 0xeaa   :  { %3367 = vpow2.f32 %v3254_v38 }
 0xeab   :  { %v1192_v19 = vpop.permute.xlu1 %1191 }
 0xeb0   :  { %v3368_v40 = vpop.eup %3367 }
 0xeb1   :  { %v1174_v42 = vadd.f32 1.0, %v3368_v40 }
 0xeb3   :  { %3369 = vrcp.f32 %v1174_v42  ;;  %v1186_v52 = vand.u32 2147483648, %v1174_v42  ;;  %v1184_v57 = vand.u32 2147483647, %v1174_v42  ;;  %vm1180_vm5 = vweird.f32 %v1174_v42 }
 0xeb5   :  { %v1187_v60 = vor.u32 1.1754944e-38, %v1186_v52  ;;  %vm1185_vm7 = vcmp.eq.f32.partialorder %v1184_v57, 8.507059e+37 }
 0xeb9   :  { %v3370_v9 = vpop.eup %3369 }
 0xeba   :  { %v1176_v32 = vmul.f32 %v3370_v9, %v1174_v42  ;;  %vm1181_vm3 = vweird.f32 %v3370_v9 }
 0xebb   :  { %vm1182_vm6 = vmor %vm1180_vm5, %vm1181_vm3 }
 0xebc   :  { %v1177_v0 = vsub.f32 1.0, %v1176_v32 }
 0xebe   :  { %v1178_v1 = vmul.f32 %v3370_v9, %v1177_v0 }
 0xec0   :  { %v1179_v56 = vadd.f32 %v3370_v9, %v1178_v1 }
 0xec2   :  { %v1183_v23 = vsel %vm1182_vm6, %v3370_v9, %v1179_v56  ;;  %v3257_v56 = vld [vmem:[%s5397_s1 + $0xc] sm:$0xf] }
 0xec3   :  { %v1188_v28 = vsel %vm1185_vm7, %v1187_v60, %v1183_v23 }
 0xec4   :  { %v1194_v29 = vmul.f32 %v1192_v19, %v1188_v28  ;;  %v1201_v30 = vsub.f32 1.0, %v1188_v28  ;;  %v1207_v33 = vmul.f32 %v1188_v28, %v4110_v51  ;;  %v4216_v51 = vpop.f32.mrf.mxu0 }
 0xec6   :  { %1196 = vrot.lane.b32.xlu2 %v1194_v29, %s3587_s22 }
 0xf20   :  { %v1197_v41 = vpop.permute.xlu2 %1196 }
 0xf21   :  { %v1199_v4 = vadd.f32 %v1197_v41, %v1165_v35  ;;  %v4267_v41 = vld [vmem:[%s5377_s14] ss:$0 sm:$0xff] }
 0xf23   :  { %3371 = vtanh.f32 %v1199_v4 }
 0xf29   :  { %v3372_v25 = vpop.eup %3371 }
 0xf2a   :  { %1203 = vrot.lane.b32.xlu0 %v3372_v25, %s3586_s20  ;;  %v4273_v25 = vld [vmem:[%s5369_s6 + $0x18] sm:$0xff] }
 0xf9c   :  { %v1204_v22 = vpop.permute.xlu0 %1203 }
 0xf9d   :  { %v1206_v54 = vmul.f32 %v1204_v22, %v1201_v30  ;;  %v4287_v30 = vld [vmem:[%s5369_s6 + $0x8] sm:$0xff] }
 0xf9f   :  { %v4197_v55 = vadd.f32 %v1207_v33, %v1206_v54 }
 0xfa1   :  { %1331 = vrot.lane.b32.xlu1 %v4197_v55, %s3587_s22 }
0x1013   :  { %v1332_v3 = vpop.permute.xlu1 %1331 }
0x1014   :  { %3261 = vmatmul.msk.f32.vlgmr.msra.gmra.mxu1 %vm95_vm1, %v1332_v3  ;;  %3262 = vmatmul.msk.f32.vlgmr.msra.gmra.mxu2 %vm95_vm1, %v1332_v3 }
0x1015   :  { %1678 = vmatpush.msra.mxu1 %v4206_v34  ;;  %1702 = vmatpush.msra.mxu2 %v3737_v8 }
0x1017   :  { %1679 = vmatpush.msra.mxu1 %v3719_v5  ;;  %1703 = vmatpush.msra.mxu2 %v3747_v10 }
0x1019   :  { %1680 = vmatpush.msra.mxu1 %v3725_v6  ;;  %1704 = vmatpush.msra.mxu2 %v3765_v15  ;;  %v4225_v6 = vld [vmem:[%s5368_s5 + $0x30] sm:$0xff] }
0x101b   :  { %1681 = vmatpush.msra.mxu1 %v3731_v7  ;;  %1705 = vmatpush.msra.mxu2 %v3777_v17 }
0x1091   :  { %v1352_v35 = vpop.f32.mrf.mxu1 }
0x1092   :  { %v1375_v36 = vadd.f32 %v1352_v35, %v4216_v51  ;;  %1547 = vrot.lane.b32.xlu1 %v1352_v35, %s3586_s20  ;;  %v1443_v1 = vadd.f32 %v1352_v35, %v3809_v27 }
0x1094   :  { %v1376_v8 = vadd.f32 %v1375_v36, %v3864_v39  ;;  %v1444_v57 = vmax.f32 %v1443_v1, 0.0  ;;  %v4321_v36 = vld [vmem:[%s5371_s8 + $0x8] sm:$0xff] }
0x1096   :  { %v1377_v5 = vmax.f32 %v1376_v8, 0.0  ;;  %v4328_v8 = vld [vmem:[%s5365_s2 + $0x8] sm:$0xff] }
0x1098   :  { %3263 = vmatmul.msk.f32.vlgmr.msra.gmra.mxu3 %vm95_vm1, %v1377_v5  ;;  %v4334_v5 = vld [vmem:[%s5371_s8] sm:$0xff] }
0x1099   :  { %1727 = vmatpush.msra.mxu3 %v4225_v6 }
0x109b   :  { %1728 = vmatpush.msra.mxu3 %v3754_v11  ;;  %v3270_v11 = vld [vmem:[%s5394_s0 + $0x10] sm:$0xf] }
0x109d   :  { %1729 = vmatpush.msra.mxu3 %v3770_v16 }
0x109f   :  { %1730 = vmatpush.msra.mxu3 %v3782_v18 }
0x111b   :  { %v1398_v7 = vpop.f32.mrf.mxu3 }
0x111c   :  { %v1399_v10 = vadd.f32 %v1398_v7, %v3901_v48  ;;  %v4340_v7 = vld [vmem:[%s5365_s2] sm:$0xff]  ;;  %s3191_s2 = sshll.u32 %s5379_s16, 4  ;;  %s3192_s2 = int_to_ptr.hbm [resolvable:$true] %s3191_s2 }
0x111e   :  { %v1401_v15 = vmax.f32 %v1399_v10, 0.0 }
0x1120   :  { %3264 = vmatmul.msk.f32.vlgmr.msrb.gmra.mxu0 %vm95_vm1, %v1401_v15 }
0x1121   :  { %1747 = vmatpush.msrb.mxu0 %v3916_v58 }
0x1123   :  { %1748 = vmatpush.msrb.mxu0 %v3921_v59 }
0x1125   :  { %1749 = vmatpush.msrb.mxu0 %v3929_v62 }
0x1127   :  { %1750 = vmatpush.msrb.mxu0 %v3936_v2 }
0x1128   :  { %3272 = vmatmul.msk.f32.vlgmr.msra.gmra.mxu0 %vm63_vm0, %v3270_v11 }
0x1129   :  { %1892 = vmatpush.msra.mxu0 %v3944_v12 }
0x119d   :  { %v1422_v16 = vpop.f32.mrf.mxu0 }
0x119e   :  { %v4243_v17 = vadd.f32 %v3790_v20, %v1422_v16  ;;  %v1548_v16 = vpop.permute.xlu1 %1547 }
0x11a0   :  { %5402 = vst [vmem:[#allocation14_spill] sm:$0xff] %v4243_v17  ;;  %v1428_v18 = vand.u32 2147483647, %v4243_v17  ;;  %v1425_v12 = vmax.f32 %v4243_v17, 0.0  ;;  %vm1426_vm9 = vcmp.ne.f32.partialorder %v4243_v17, %v4243_v17 }
0x11a2   :  { %v1429_v58 = vsub.f32 0.0, %v1428_v18 }
0x11a4   :  { %v1430_v59 = vmul.f32 1.442695, %v1429_v58 }
0x11a5   :  { %v1659_v19 = vpop.f32.mrf.mxu0 }
0x11a6   :  { %3373 = vpow2.f32 %v1430_v59  ;;  %v1660_v4 = vadd.f32 %v4267_v41, %v1659_v19 }
0x11ac   :  { %v3374_v62 = vpop.eup %3373 }
0x11ad   :  { %v1432_v37 = vadd.f32 1.0, %v3374_v62  ;;  %v1435_v2 = vmul.f32 -0.5, %v3374_v62  ;;  %v1438_v40 = vand.u32 2147483647, %v3374_v62 }
0x11af   :  { %3375 = vlog2.f32 %v1432_v37  ;;  %v1436_v38 = vadd.f32 1.0, %v1435_v2  ;;  %vm1439_vm8 = vcmp.lt.f32.partialorder %v1438_v40, 0.0004427343 }
0x11b1   :  { %v1437_v32 = vmul.f32 %v3374_v62, %v1436_v38 }
0x11b5   :  { %v3376_v42 = vpop.eup %3375 }
0x11b6   :  { %v1434_v9 = vmul.f32 0.6931472, %v3376_v42 }
0x11b8   :  { %v1440_v0 = vsel %vm1439_vm8, %v1437_v32, %v1434_v9 }
0x11b9   :  { %v1441_v20 = vadd.f32 %v1440_v0, %v1425_v12 }
0x11bb   :  { %v4250_v52 = vsel %vm1426_vm9, %v4243_v17, %v1441_v20 }
0x11bc   :  { %5403 = vst [vmem:[#allocation15_spill] sm:$0xff] %v4250_v52  ;;  %1489 = vrot.lane.b32.xlu2 %v4250_v52, %s3591_s26 }
0x11c4   :  { %1446 = vrot.lane.b32.xlu2 %v1444_v57, %s3586_s20 }
0x1216   :  { %v1490_v60 = vpop.permute.xlu2 %1489 }
0x1217   :  { %v1492_v23 = vmul.f32 %v3257_v56, %v1490_v60 }
0x1219   :  { %v1493_v28 = vadd.f32 %v1492_v23, %v4243_v17 }
0x121b   :  { %3266 = vmatmul.msk.f32.vlgmr.msrb.gmra.mxu2 %vm349_vm4, %v1493_v28 }
0x121c   :  { %1797 = vmatpush.msrb.mxu2 %v3873_v43  ;;  %v4280_v43 = vld [vmem:[%s5369_s6 + $0x10] sm:$0xff] }
0x121e   :  { %v1447_v29 = vpop.permute.xlu2 %1446  ;;  %1798 = vmatpush.msrb.mxu2 %v3878_v44  ;;  %v1662_v44 = vmax.f32 %v1660_v4, 0.0 }
0x121f   :  { %3265 = vmatmul.msk.f32.vlgmr.msrb.gmra.mxu1 %vm95_vm1, %v1447_v29 }
0x1220   :  { %1773 = vmatpush.msrb.mxu1 %v4273_v25  ;;  %1799 = vmatpush.msrb.mxu2 %v3890_v46  ;;  %v4293_v46 = vld [vmem:[%s5369_s6] sm:$0xff] }
0x1222   :  { %1774 = vmatpush.msrb.mxu1 %v4280_v43  ;;  %1800 = vmatpush.msrb.mxu2 %v3896_v47  ;;  %v1372_v47 = vpop.f32.mrf.mxu2 }
0x1224   :  { %1775 = vmatpush.msrb.mxu1 %v4287_v30 }
0x1226   :  { %1776 = vmatpush.msrb.mxu1 %v4293_v46 }
0x1227   :  { %3273 = vmatmul.msk.f32.vlgmr.msra.gmra.mxu1 %vm95_vm1, %v1662_v44 }
0x1228   :  { %1913 = vmatpush.msra.mxu1 %v3968_v49  ;;  %v4308_v49 = vld [vmem:[%s5371_s8 + $0x18] sm:$0xff] }
0x122a   :  { %1914 = vmatpush.msra.mxu1 %v3973_v50 }
0x122c   :  { %1915 = vmatpush.msra.mxu1 %v3997_v61  ;;  %v4315_v61 = vld [vmem:[%s5371_s8 + $0x10] sm:$0xff]  ;;  %s3596_s8 = smov [#allocation4]  }
0x122e   :  { %1916 = vmatpush.msra.mxu1 %v4004_v63 }
0x129c   :  { %v4301_v22 = vpop.f32.mrf.mxu1 }
0x129d   :  { %5404 = vst [vmem:[#allocation16_spill] sm:$0xff] %v4301_v22 }
0x129e   :  { %v1514_v33 = vpop.f32.mrf.mxu2 }
0x129f   :  { %v1515_v54 = vadd.f32 %v1514_v33, %v3807_v26  ;;  %v4371_v33 = vld [vmem:[%s5367_s4 + $0x10] sm:$0xff] }
0x12a1   :  { %v1517_v3 = vmax.f32 %v1515_v54, 0.0  ;;  %v4377_v54 = vld [vmem:[%s5366_s3 + $0x8] sm:$0xff] }
0x12a3   :  { %3267 = vmatmul.msk.f32.vlgmr.msrb.gmra.mxu3 %vm95_vm1, %v1517_v3  ;;  %v4383_v3 = vld [vmem:[%s5367_s4 + $0x8] sm:$0xff] }
0x12a4   :  { %v1683_v35 = vpop.f32.mrf.mxu1  ;;  %1842 = vmatpush.msrb.mxu3 %v4308_v49 }
0x12a5   :  { %v1684_v50 = vadd.f32 %v1683_v35, %v3795_v21  ;;  %v4389_v35 = vld [vmem:[%s5366_s3] sm:$0xff] }
0x12a6   :  { %1843 = vmatpush.msrb.mxu3 %v4315_v61 }
0x12a7   :  { %v1686_v63 = vmax.f32 %v1684_v50, 0.0  ;;  %v4395_v50 = vld [vmem:[%s5367_s4] sm:$0xff] }
0x12a8   :  { %1844 = vmatpush.msrb.mxu3 %v4321_v36 }
0x12a9   :  { %3274 = vmatmul.msk.f32.vlgmr.msra.gmra.mxu2 %vm95_vm1, %v1686_v63 }
0x12aa   :  { %2036 = vmatpush.msra.mxu2 %v4328_v8  ;;  %1845 = vmatpush.msrb.mxu3 %v4334_v5 }
0x12ac   :  { %2037 = vmatpush.msra.mxu2 %v4340_v7 }
0x1326   :  { %v1538_v10 = vpop.f32.mrf.mxu3 }
0x1327   :  { %1542 = vrot.lane.b32.xlu0 %v1538_v10, %s3590_s21 }
0x132c   :  { %v4398_v63 = vpop.f32.mrf.mxu2 }
0x132f   :  { %1571 = vrot.lane.b32.xlu0 %v1372_v47, %s3590_s21  ;;  %v4359_v47 = vld [vmem:[%s5367_s4 + $0x18] sm:$0xff] }
0x1399   :  { %v1543_v15 = vpop.permute.xlu0 %1542 }
0x139a   :  { %v1545_v11 = vadd.f32 %v1543_v15, %v4216_v51 }
0x139c   :  { %v1550_v18 = vadd.f32 %v1548_v16, %v1545_v11 }
0x139e   :  { %v3268_v58 = vmul.f32 -1.442695, %v1550_v18  ;;  %v4408_v18 = vld [vmem:[%s5368_s5 + $0x20] sm:$0xff] }
0x13a0   :  { %3377 = vpow2.f32 %v3268_v58  ;;  %v4414_v58 = vld [vmem:[%s5368_s5 + $0x10] sm:$0xff] }
0x13a1   :  { %v1572_v20 = vpop.permute.xlu0 %1571 }
0x13a6   :  { %v3378_v59 = vpop.eup %3377 }
0x13a7   :  { %v1554_v62 = vadd.f32 1.0, %v3378_v59  ;;  %v4420_v59 = vld [vmem:[%s5368_s5] sm:$0xff] }
0x13a9   :  { %3379 = vrcp.f32 %v1554_v62  ;;  %v1566_v40 = vand.u32 2147483648, %v1554_v62  ;;  %v1564_v9 = vand.u32 2147483647, %v1554_v62  ;;  %vm1560_vm11 = vweird.f32 %v1554_v62 }
0x13ab   :  { %v1567_v12 = vor.u32 1.1754944e-38, %v1566_v40  ;;  %vm1565_vm13 = vcmp.eq.f32.partialorder %v1564_v9, 8.507059e+37  ;;  %v4434_v40 = vld [vmem:[%s5368_s5 + $0x28] sm:$0xff] }
0x13ac   :  { %v4446_v9 = vld [vmem:[%s5368_s5 + $0x8] sm:$0xff] }
0x13af   :  { %v3380_v37 = vpop.eup %3379 }
0x13b0   :  { %v1556_v2 = vmul.f32 %v3380_v37, %v1554_v62  ;;  %vm1561_vm10 = vweird.f32 %v3380_v37 }
0x13b1   :  { %vm1562_vm12 = vmor %vm1560_vm11, %vm1561_vm10 }
0x13b2   :  { %v1557_v38 = vsub.f32 1.0, %v1556_v2 }
0x13b4   :  { %v1558_v42 = vmul.f32 %v3380_v37, %v1557_v38  ;;  %v4428_v38 = vld [vmem:[%s5368_s5 + $0x38] sm:$0xff] }
0x13b6   :  { %v1559_v32 = vadd.f32 %v3380_v37, %v1558_v42  ;;  %v4440_v42 = vld [vmem:[%s5368_s5 + $0x18] sm:$0xff] }
0x13b8   :  { %v1563_v0 = vsel %vm1562_vm12, %v3380_v37, %v1559_v32  ;;  %v3284_v32 = vld [vmem:[%s5394_s0 + $0x14] sm:$0xf] }
0x13b9   :  { %v1568_v51 = vsel %vm1565_vm13, %v1567_v12, %v1563_v0  ;;  %v4456_v12 = vld [vmem:[%s5372_s9] sm:$0xff] }
0x13ba   :  { %v1574_v1 = vmul.f32 %v1572_v20, %v1568_v51  ;;  %v1581_v23 = vsub.f32 1.0, %v1568_v51  ;;  %v1587_v19 = vmul.f32 %v1568_v51, %v4197_v55  ;;  %v4365_v55 = vld [vmem:[%s5366_s3 + $0x10] sm:$0xff]  ;;  %v4462_v51 = vld [vmem:[%s5377_s14 + $0x1] ss:$0 sm:$0xff]  ;;  %s3200_s3 = sshll.u32 %s3596_s8, 4  ;;  %s3201_s3 = int_to_ptr.vmem [resolvable:$true] %s3200_s3 }
0x13bc   :  { %1576 = vrot.lane.b32.xlu1 %v1574_v1, %s3587_s22 }
0x142e   :  { %v1577_v57 = vpop.permute.xlu1 %1576 }
0x142f   :  { %v1579_v56 = vadd.f32 %v1577_v57, %v1545_v11 }
0x1431   :  { %3381 = vtanh.f32 %v1579_v56 }
0x1437   :  { %v3382_v60 = vpop.eup %3381 }
0x1438   :  { %1583 = vrot.lane.b32.xlu2 %v3382_v60, %s3586_s20 }
0x1492   :  { %v1584_v28 = vpop.permute.xlu2 %1583 }
0x1493   :  { %v1586_v29 = vmul.f32 %v1584_v28, %v1581_v23 }
0x1495   :  { %v4349_v4 = vadd.f32 %v1587_v19, %v1586_v29 }
0x1497   :  { %1711 = vrot.lane.b32.xlu0 %v4349_v4, %s3587_s22 }
0x1509   :  { %v1712_v44 = vpop.permute.xlu0 %1711 }
0x150a   :  { %3275 = vmatmul.msk.f32.vlgmr.msra.gmra.mxu3 %vm95_vm1, %v1712_v44  ;;  %3276 = vmatmul.msk.f32.vlgmr.msrb.gmra.mxu0 %vm95_vm1, %v1712_v44 }
0x150b   :  { %2058 = vmatpush.msra.mxu3 %v4206_v34  ;;  %2082 = vmatpush.msrb.mxu0 %v4359_v47 }
0x150d   :  { %2059 = vmatpush.msra.mxu3 %v4365_v55  ;;  %2083 = vmatpush.msrb.mxu0 %v4371_v33 }
0x150f   :  { %2060 = vmatpush.msra.mxu3 %v4377_v54  ;;  %2084 = vmatpush.msrb.mxu0 %v4383_v3 }
0x1511   :  { %2061 = vmatpush.msra.mxu3 %v4389_v35  ;;  %2085 = vmatpush.msrb.mxu0 %v4395_v50 }
0x158d   :  { %v1732_v10 = vpop.f32.mrf.mxu3 }
0x158e   :  { %v1755_v15 = vadd.f32 %v1732_v10, %v4398_v63  ;;  %1927 = vrot.lane.b32.xlu0 %v1732_v10, %s3586_s20 }
0x1590   :  { %v1756_v11 = vadd.f32 %v1755_v15, %v3864_v39 }
0x1592   :  { %v1757_v16 = vmax.f32 %v1756_v11, 0.0 }
0x1594   :  { %3277 = vmatmul.msk.f32.vlgmr.msrb.gmra.mxu1 %vm95_vm1, %v1757_v16 }
0x1595   :  { %2107 = vmatpush.msrb.mxu1 %v4225_v6 }
0x1597   :  { %2108 = vmatpush.msrb.mxu1 %v4408_v18 }
0x1599   :  { %2109 = vmatpush.msrb.mxu1 %v4414_v58 }
0x159b   :  { %2110 = vmatpush.msrb.mxu1 %v4420_v59 }
0x1611   :  { %v1778_v62 = vpop.f32.mrf.mxu1 }
0x1612   :  { %v1779_v37 = vadd.f32 %v1778_v62, %v3901_v48 }
0x1614   :  { %v1781_v2 = vmax.f32 %v1779_v37, 0.0 }
0x1616   :  { %3278 = vmatmul.msk.f32.vlgmr.msrb.gmra.mxu2 %vm95_vm1, %v1781_v2 }
0x1617   :  { %2127 = vmatpush.msrb.mxu2 %v4428_v38 }
0x1619   :  { %2128 = vmatpush.msrb.mxu2 %v4434_v40 }
0x161b   :  { %2129 = vmatpush.msrb.mxu2 %v4440_v42 }
0x161d   :  { %2130 = vmatpush.msrb.mxu2 %v4446_v9 }
0x161e   :  { %3286 = vmatmul.msk.f32.vlgmr.msra.gmra.mxu2 %vm63_vm0, %v3284_v32  ;;  %v1823_v32 = vadd.f32 %v1732_v10, %v3809_v27 }
0x161f   :  { %2272 = vmatpush.msra.mxu2 %v4456_v12 }
0x1699   :  { %v1802_v0 = vpop.f32.mrf.mxu2 }
0x169a   :  { %v4465_v20 = vadd.f32 %v4462_v51, %v1802_v0  ;;  %v1824_v0 = vmax.f32 %v1823_v32, 0.0  ;;  %v4535_v32 = vld [vmem:[%s5373_s10] sm:$0xff] }
0x169c   :  { %5405 = vst [vmem:[#allocation17_spill] sm:$0xff] %v4465_v20  ;;  %v1808_v1 = vand.u32 2147483647, %v4465_v20  ;;  %v1805_v16 = vmax.f32 %v4465_v20, 0.0  ;;  %vm1806_vm15 = vcmp.ne.f32.partialorder %v4465_v20, %v4465_v20 }
0x169e   :  { %v1809_v57 = vsub.f32 0.0, %v1808_v1  ;;  %v3271_v1 = vld [vmem:[%s5397_s1 + $0x10] sm:$0xf] }
0x16a0   :  { %v1810_v56 = vmul.f32 1.442695, %v1809_v57 }
0x16a2   :  { %3383 = vpow2.f32 %v1810_v56 }
0x16a8   :  { %v3384_v60 = vpop.eup %3383 }
0x16a9   :  { %v1812_v23 = vadd.f32 1.0, %v3384_v60  ;;  %v1815_v28 = vmul.f32 -0.5, %v3384_v60  ;;  %v1818_v29 = vand.u32 2147483647, %v3384_v60 }
0x16ab   :  { %3385 = vlog2.f32 %v1812_v23  ;;  %v1816_v19 = vadd.f32 1.0, %v1815_v28  ;;  %vm1819_vm14 = vcmp.lt.f32.partialorder %v1818_v29, 0.0004427343  ;;  %v2039_v23 = vpop.f32.mrf.mxu2  ;;  %v4486_v28 = vld [vmem:[%s5370_s7 + $0x18] sm:$0xff] }
0x16ac   :  { %v2040_v29 = vadd.f32 %v4267_v41, %v2039_v23 }
0x16ad   :  { %v1817_v11 = vmul.f32 %v3384_v60, %v1816_v19  ;;  %v4492_v19 = vld [vmem:[%s5370_s7 + $0x10] sm:$0xff] }
0x16b1   :  { %v3386_v44 = vpop.eup %3385 }
0x16b2   :  { %v1814_v15 = vmul.f32 0.6931472, %v3386_v44  ;;  %v4501_v44 = vld [vmem:[%s5370_s7 + $0x8] sm:$0xff] }
0x16b4   :  { %v1820_v62 = vsel %vm1819_vm14, %v1817_v11, %v1814_v15  ;;  %v4508_v15 = vld [vmem:[%s5370_s7] sm:$0xff]  ;;  %v2042_v11 = vmax.f32 %v2040_v29, 0.0 }
0x16b5   :  { %v1821_v37 = vadd.f32 %v1820_v62, %v1805_v16  ;;  %v4517_v16 = vld [vmem:[%s5373_s10 + $0x18] sm:$0xff]  ;;  %v4523_v62 = vld [vmem:[%s5373_s10 + $0x10] sm:$0xff] }
0x16b7   :  { %v4472_v2 = vsel %vm1806_vm15, %v4465_v20, %v1821_v37  ;;  %v4529_v37 = vld [vmem:[%s5373_s10 + $0x8] sm:$0xff] }
0x16b8   :  { %5406 = vst [vmem:[#allocation18_spill] sm:$0xff] %v4472_v2  ;;  %1869 = vrot.lane.b32.xlu1 %v4472_v2, %s3591_s26 }
0x16c0   :  { %1826 = vrot.lane.b32.xlu1 %v1824_v0, %s3586_s20  ;;  %v1752_v0 = vpop.f32.mrf.mxu0 }
0x172a   :  { %v1870_v57 = vpop.permute.xlu1 %1869 }
0x172b   :  { %v1872_v56 = vmul.f32 %v3271_v1, %v1870_v57 }
0x172d   :  { %v1873_v60 = vadd.f32 %v1872_v56, %v4465_v20 }
0x172f   :  { %3280 = vmatmul.msk.f32.vlgmr.msra.gmra.mxu0 %vm349_vm4, %v1873_v60 }
0x1730   :  { %2177 = vmatpush.msra.mxu0 %v4486_v28 }
0x1732   :  { %v1827_v10 = vpop.permute.xlu1 %1826  ;;  %2178 = vmatpush.msra.mxu0 %v4492_v19 }
0x1733   :  { %3279 = vmatmul.msk.f32.vlgmr.msrb.gmra.mxu3 %vm95_vm1, %v1827_v10 }
0x1734   :  { %2153 = vmatpush.msrb.mxu3 %v4273_v25  ;;  %2179 = vmatpush.msra.mxu0 %v4501_v44 }
0x1736   :  { %2154 = vmatpush.msrb.mxu3 %v4280_v43  ;;  %2180 = vmatpush.msra.mxu0 %v4508_v15 }
0x1738   :  { %2155 = vmatpush.msrb.mxu3 %v4287_v30 }
0x173a   :  { %2156 = vmatpush.msrb.mxu3 %v4293_v46 }
0x173b   :  { %3287 = vmatmul.msk.f32.vlgmr.msra.gmra.mxu3 %vm95_vm1, %v2042_v11 }
0x173c   :  { %2293 = vmatpush.msra.mxu3 %v4517_v16 }
0x173e   :  { %2294 = vmatpush.msra.mxu3 %v4523_v62 }
0x1740   :  { %2295 = vmatpush.msra.mxu3 %v4529_v37 }
0x1742   :  { %2296 = vmatpush.msra.mxu3 %v4535_v32 }
0x17ac   :  { %v1894_v1 = vpop.f32.mrf.mxu0 }
0x17ad   :  { %v1895_v57 = vadd.f32 %v1894_v1, %v3807_v26 }
0x17af   :  { %v1897_v56 = vmax.f32 %v1895_v57, 0.0 }
0x17b1   :  { %3281 = vmatmul.msk.f32.vlgmr.msra.gmra.mxu1 %vm95_vm1, %v1897_v56  ;;  %v1928_v56 = vpop.permute.xlu0 %1927 }
0x17b2   :  { %2222 = vmatpush.msra.mxu1 %v4308_v49 }
0x17b4   :  { %2223 = vmatpush.msra.mxu1 %v4315_v61 }
0x17b6   :  { %v4542_v60 = vpop.f32.mrf.mxu3  ;;  %2224 = vmatpush.msra.mxu1 %v4321_v36 }
0x17b7   :  { %5407 = vst [vmem:[#allocation19_spill] sm:$0xff] %v4542_v60 }
0x17b8   :  { %2225 = vmatpush.msra.mxu1 %v4334_v5 }
0x17be   :  { %v2063_v23 = vpop.f32.mrf.mxu3 }
0x17bf   :  { %v2064_v10 = vadd.f32 %v2063_v23, %v3795_v21 }
0x17c1   :  { %v2066_v29 = vmax.f32 %v2064_v10, 0.0 }
0x17c3   :  { %3288 = vmatmul.msk.f32.vlgmr.msrb.gmra.mxu0 %vm95_vm1, %v2066_v29 }
0x17c4   :  { %2416 = vmatpush.msrb.mxu0 %v4328_v8 }
0x17c6   :  { %2417 = vmatpush.msrb.mxu0 %v4340_v7 }
0x182e   :  { %v1918_v11 = vpop.f32.mrf.mxu1 }
0x182f   :  { %1922 = vrot.lane.b32.xlu2 %v1918_v11, %s3590_s21 }
0x1837   :  { %1951 = vrot.lane.b32.xlu2 %v1752_v0, %s3590_s21 }
0x1889   :  { %v1923_v1 = vpop.permute.xlu2 %1922 }
0x188a   :  { %v1925_v57 = vadd.f32 %v1923_v1, %v4398_v63 }
0x188c   :  { %v1930_v2 = vadd.f32 %v1928_v56, %v1925_v57 }
0x188e   :  { %v3282_v17 = vmul.f32 -1.442695, %v1930_v2 }
0x1890   :  { %3387 = vpow2.f32 %v3282_v17 }
0x1891   :  { %v1952_v1 = vpop.permute.xlu2 %1951 }
0x1896   :  { %v3388_v23 = vpop.eup %3387 }
0x1897   :  { %v1934_v10 = vadd.f32 1.0, %v3388_v23 }
0x1899   :  { %3389 = vrcp.f32 %v1934_v10  ;;  %v1946_v60 = vand.u32 2147483648, %v1934_v10  ;;  %v1944_v13 = vand.u32 2147483647, %v1934_v10  ;;  %vm1940_vm3 = vweird.f32 %v1934_v10 }
0x189b   :  { %v1947_v0 = vor.u32 1.1754944e-38, %v1946_v60  ;;  %vm1945_vm6 = vcmp.eq.f32.partialorder %v1944_v13, 8.507059e+37 }
0x189f   :  { %v3390_v29 = vpop.eup %3389 }
0x18a0   :  { %v1936_v20 = vmul.f32 %v3390_v29, %v1934_v10  ;;  %vm1941_vm2 = vweird.f32 %v3390_v29 }
0x18a1   :  { %vm1942_vm5 = vmor %vm1940_vm3, %vm1941_vm2 }
0x18a2   :  { %v1937_v22 = vsub.f32 1.0, %v1936_v20 }
0x18a4   :  { %v1938_v53 = vmul.f32 %v3390_v29, %v1937_v22 }
0x18a6   :  { %v1939_v11 = vadd.f32 %v3390_v29, %v1938_v53 }
0x18a8   :  { %v1943_v31 = vsel %vm1942_vm5, %v3390_v29, %v1939_v11 }
0x18a9   :  { %v1948_v63 = vsel %vm1945_vm6, %v1947_v0, %v1943_v31  ;;  %v4570_v31 = vpop.f32.mrf.mxu0 }
0x18aa   :  { %v1954_v2 = vmul.f32 %v1952_v1, %v1948_v63  ;;  %v1961_v22 = vsub.f32 1.0, %v1948_v63  ;;  %v1967_v53 = vmul.f32 %v1948_v63, %v4349_v4  ;;  %v3298_v1 = vld [vmem:[%s5394_s0 + $0x18] sm:$0xf] }
0x18ac   :  { %1956 = vrot.lane.b32.xlu0 %v1954_v2, %s3587_s22 }
0x191e   :  { %v1957_v17 = vpop.permute.xlu0 %1956 }
0x191f   :  { %v1959_v56 = vadd.f32 %v1957_v17, %v1925_v57 }
0x1921   :  { %3391 = vtanh.f32 %v1959_v56 }
0x1927   :  { %v3392_v23 = vpop.eup %3391 }
0x1928   :  { %1963 = vrot.lane.b32.xlu1 %v3392_v23, %s3586_s20 }
0x199a   :  { %v1964_v20 = vpop.permute.xlu1 %1963 }
0x199b   :  { %v1966_v10 = vmul.f32 %v1964_v20, %v1961_v22 }
0x199d   :  { %v4556_v52 = vadd.f32 %v1967_v53, %v1966_v10 }
0x199f   :  { %2091 = vrot.lane.b32.xlu2 %v4556_v52, %s3587_s22 }
0x19f9   :  { %v2092_v13 = vpop.permute.xlu2 %2091 }
0x19fa   :  { %3289 = vmatmul.msk.f32.vlgmr.msrb.gmra.mxu1 %vm95_vm1, %v2092_v13  ;;  %3290 = vmatmul.msk.f32.vlgmr.msrb.gmra.mxu2 %vm95_vm1, %v2092_v13 }
0x19fb   :  { %2438 = vmatpush.msrb.mxu1 %v4206_v34  ;;  %2462 = vmatpush.msrb.mxu2 %v4359_v47 }
0x19fd   :  { %2439 = vmatpush.msrb.mxu1 %v4365_v55  ;;  %2463 = vmatpush.msrb.mxu2 %v4371_v33 }
0x19ff   :  { %2440 = vmatpush.msrb.mxu1 %v4377_v54  ;;  %2464 = vmatpush.msrb.mxu2 %v4383_v3 }
0x1a01   :  { %2441 = vmatpush.msrb.mxu1 %v4389_v35  ;;  %2465 = vmatpush.msrb.mxu2 %v4395_v50 }
0x1a77   :  { %v2112_v4 = vpop.f32.mrf.mxu1 }
0x1a78   :  { %v2135_v60 = vadd.f32 %v2112_v4, %v4570_v31  ;;  %2307 = vrot.lane.b32.xlu2 %v2112_v4, %s3586_s20 }
0x1a7a   :  { %v2136_v57 = vadd.f32 %v2135_v60, %v3864_v39 }
0x1a7c   :  { %v2137_v29 = vmax.f32 %v2136_v57, 0.0 }
0x1a7e   :  { %3291 = vmatmul.msk.f32.vlgmr.msrb.gmra.mxu3 %vm95_vm1, %v2137_v29 }
0x1a7f   :  { %2487 = vmatpush.msrb.mxu3 %v4225_v6 }
0x1a81   :  { %2488 = vmatpush.msrb.mxu3 %v4408_v18 }
0x1a83   :  { %2489 = vmatpush.msrb.mxu3 %v4414_v58 }
0x1a85   :  { %2490 = vmatpush.msrb.mxu3 %v4420_v59 }
0x1b01   :  { %v2158_v11 = vpop.f32.mrf.mxu3 }
0x1b02   :  { %v2159_v0 = vadd.f32 %v2158_v11, %v3901_v48 }
0x1b04   :  { %v2161_v63 = vmax.f32 %v2159_v0, 0.0  ;;  %v2203_v0 = vadd.f32 %v2112_v4, %v3809_v27 }
0x1b06   :  { %3292 = vmatmul.msk.f32.vlgmr.msra.gmra.mxu0 %vm95_vm1, %v2161_v63  ;;  %v2204_v63 = vmax.f32 %v2203_v0, 0.0 }
0x1b07   :  { %2507 = vmatpush.msra.mxu0 %v4428_v38 }
0x1b09   :  { %2508 = vmatpush.msra.mxu0 %v4434_v40 }
0x1b0b   :  { %2509 = vmatpush.msra.mxu0 %v4440_v42 }
0x1b0d   :  { %2510 = vmatpush.msra.mxu0 %v4446_v9 }
0x1b0e   :  { %3300 = vmatmul.msk.f32.vlgmr.msrb.gmra.mxu0 %vm63_vm0, %v3298_v1  ;;  %v3285_v1 = vld [vmem:[%s5397_s1 + $0x14] sm:$0xf] }
0x1b0f   :  { %2652 = vmatpush.msrb.mxu0 %v4456_v12 }
0x1b83   :  { %v2182_v2 = vpop.f32.mrf.mxu0 }
0x1b84   :  { %v4591_v17 = vadd.f32 %v4462_v51, %v2182_v2 }
0x1b86   :  { %v2188_v38 = vand.u32 2147483647, %v4591_v17  ;;  %v2185_v60 = vmax.f32 %v4591_v17, 0.0  ;;  %vm2186_vm8 = vcmp.ne.f32.partialorder %v4591_v17, %v4591_v17 }
0x1b88   :  { %v2189_v56 = vsub.f32 0.0, %v2188_v38 }
0x1b8a   :  { %v2190_v40 = vmul.f32 1.442695, %v2189_v56 }
0x1b8c   :  { %3393 = vpow2.f32 %v2190_v40  ;;  %v2419_v40 = vpop.f32.mrf.mxu0 }
0x1b8d   :  { %v2420_v4 = vadd.f32 %v4267_v41, %v2419_v40 }
0x1b92   :  { %v3394_v42 = vpop.eup %3393 }
0x1b93   :  { %v2192_v23 = vadd.f32 1.0, %v3394_v42  ;;  %v2195_v9 = vmul.f32 -0.5, %v3394_v42  ;;  %v2198_v20 = vand.u32 2147483647, %v3394_v42 }
0x1b95   :  { %3395 = vlog2.f32 %v2192_v23  ;;  %v2196_v22 = vadd.f32 1.0, %v2195_v9  ;;  %vm2199_vm7 = vcmp.lt.f32.partialorder %v2198_v20, 0.0004427343  ;;  %v2422_v23 = vmax.f32 %v2420_v4, 0.0  ;;  %v2132_v9 = vpop.f32.mrf.mxu2 }
0x1b97   :  { %v2197_v13 = vmul.f32 %v3394_v42, %v2196_v22 }
0x1b9b   :  { %v3396_v53 = vpop.eup %3395 }
0x1b9c   :  { %v2194_v10 = vmul.f32 0.6931472, %v3396_v53 }
0x1b9e   :  { %v2200_v57 = vsel %vm2199_vm7, %v2197_v13, %v2194_v10 }
0x1b9f   :  { %v2201_v29 = vadd.f32 %v2200_v57, %v2185_v60  ;;  %v2308_v57 = vpop.permute.xlu2 %2307 }
0x1ba1   :  { %v4599_v11 = vsel %vm2186_vm8, %v4591_v17, %v2201_v29 }
0x1ba2   :  { %2249 = vrot.lane.b32.xlu0 %v4599_v11, %s3591_s26 }
0x1baa   :  { %2206 = vrot.lane.b32.xlu0 %v2204_v63, %s3586_s20 }
0x1c14   :  { %v2250_v2 = vpop.permute.xlu0 %2249 }
0x1c15   :  { %v2252_v38 = vmul.f32 %v3285_v1, %v2250_v2 }
0x1c17   :  { %v2253_v56 = vadd.f32 %v2252_v38, %v4591_v17 }
0x1c19   :  { %3294 = vmatmul.msk.f32.vlgmr.msra.gmra.mxu2 %vm349_vm4, %v2253_v56 }
0x1c1a   :  { %2557 = vmatpush.msra.mxu2 %v4486_v28 }
0x1c1c   :  { %v2207_v42 = vpop.permute.xlu0 %2206  ;;  %2558 = vmatpush.msra.mxu2 %v4492_v19 }
0x1c1d   :  { %3293 = vmatmul.msk.f32.vlgmr.msra.gmra.mxu1 %vm95_vm1, %v2207_v42 }
0x1c1e   :  { %2533 = vmatpush.msra.mxu1 %v4273_v25  ;;  %2559 = vmatpush.msra.mxu2 %v4501_v44 }
0x1c20   :  { %2534 = vmatpush.msra.mxu1 %v4280_v43  ;;  %2560 = vmatpush.msra.mxu2 %v4508_v15 }
0x1c22   :  { %2535 = vmatpush.msra.mxu1 %v4287_v30 }
0x1c24   :  { %2536 = vmatpush.msra.mxu1 %v4293_v46 }
0x1c25   :  { %3301 = vmatmul.msk.f32.vlgmr.msrb.gmra.mxu1 %vm95_vm1, %v2422_v23 }
0x1c26   :  { %2673 = vmatpush.msrb.mxu1 %v4517_v16 }
0x1c28   :  { %2674 = vmatpush.msrb.mxu1 %v4523_v62 }
0x1c2a   :  { %2675 = vmatpush.msrb.mxu1 %v4529_v37 }
0x1c2c   :  { %2676 = vmatpush.msrb.mxu1 %v4535_v32 }
0x1c9a   :  { %v4625_v22 = vpop.f32.mrf.mxu1 }
0x1c9c   :  { %v2274_v20 = vpop.f32.mrf.mxu2 }
0x1c9d   :  { %v2275_v53 = vadd.f32 %v2274_v20, %v3807_v26 }
0x1c9f   :  { %v2277_v10 = vmax.f32 %v2275_v53, 0.0 }
0x1ca1   :  { %3295 = vmatmul.msk.f32.vlgmr.msra.gmra.mxu3 %vm95_vm1, %v2277_v10 }
0x1ca2   :  { %v2443_v13 = vpop.f32.mrf.mxu1  ;;  %2602 = vmatpush.msra.mxu3 %v4308_v49 }
0x1ca3   :  { %v2444_v16 = vadd.f32 %v2443_v13, %v3795_v21 }
0x1ca4   :  { %2603 = vmatpush.msra.mxu3 %v4315_v61 }
0x1ca5   :  { %v2446_v62 = vmax.f32 %v2444_v16, 0.0 }
0x1ca6   :  { %2604 = vmatpush.msra.mxu3 %v4321_v36 }
0x1ca7   :  { %3302 = vmatmul.msk.f32.vlgmr.msrb.gmra.mxu2 %vm95_vm1, %v2446_v62 }
0x1ca8   :  { %2796 = vmatpush.msrb.mxu2 %v4328_v8  ;;  %2605 = vmatpush.msra.mxu3 %v4334_v5 }
0x1caa   :  { %2797 = vmatpush.msrb.mxu2 %v4340_v7 }
0x1d24   :  { %v2298_v37 = vpop.f32.mrf.mxu3 }
0x1d25   :  { %2302 = vrot.lane.b32.xlu1 %v2298_v37, %s3590_s21 }
0x1d2d   :  { %2331 = vrot.lane.b32.xlu1 %v2132_v9, %s3590_s21 }
0x1d97   :  { %v2303_v32 = vpop.permute.xlu1 %2302 }
0x1d98   :  { %v2305_v60 = vadd.f32 %v2303_v32, %v4570_v31 }
0x1d9a   :  { %v2310_v29 = vadd.f32 %v2308_v57, %v2305_v60 }
0x1d9c   :  { %v3296_v0 = vmul.f32 -1.442695, %v2310_v29 }
0x1d9e   :  { %3397 = vpow2.f32 %v3296_v0 }
0x1d9f   :  { %v2332_v9 = vpop.permute.xlu1 %2331 }
0x1da4   :  { %v3398_v63 = vpop.eup %3397 }
0x1da5   :  { %v2314_v1 = vadd.f32 1.0, %v3398_v63 }
0x1da7   :  { %3399 = vrcp.f32 %v2314_v1  ;;  %v2326_v56 = vand.u32 2147483648, %v2314_v1  ;;  %v2324_v40 = vand.u32 2147483647, %v2314_v1  ;;  %vm2320_vm10 = vweird.f32 %v2314_v1 }
0x1da9   :  { %v2327_v4 = vor.u32 1.1754944e-38, %v2326_v56  ;;  %vm2325_vm12 = vcmp.eq.f32.partialorder %v2324_v40, 8.507059e+37 }
0x1dad   :  { %v3400_v8 = vpop.eup %3399 }
0x1dae   :  { %v2316_v2 = vmul.f32 %v3400_v8, %v2314_v1  ;;  %vm2321_vm9 = vweird.f32 %v3400_v8 }
0x1daf   :  { %vm2322_vm11 = vmor %vm2320_vm10, %vm2321_vm9  ;;  %vm471_vm9 = vweird.f32 %v3959_v45 }
0x1db0   :  { %v2317_v38 = vsub.f32 1.0, %v2316_v2 }
0x1db2   :  { %v2318_v7 = vmul.f32 %v3400_v8, %v2317_v38 }
0x1db4   :  { %v2319_v42 = vadd.f32 %v3400_v8, %v2318_v7 }
0x1db6   :  { %v2323_v23 = vsel %vm2322_vm11, %v3400_v8, %v2319_v42 }
0x1db7   :  { %v2328_v31 = vsel %vm2325_vm12, %v2327_v4, %v2323_v23  ;;  %v3299_v4 = vld [vmem:[%s5397_s1 + $0x18] sm:$0xf]  ;;  %vm851_vm12 = vweird.f32 %v4066_v24 }
0x1db8   :  { %v2334_v20 = vmul.f32 %v2332_v9, %v2328_v31  ;;  %v2341_v16 = vsub.f32 1.0, %v2328_v31  ;;  %v2347_v37 = vmul.f32 %v2328_v31, %v4556_v52  ;;  %v4657_v52 = vpop.f32.mrf.mxu2 }
0x1dba   :  { %2336 = vrot.lane.b32.xlu2 %v2334_v20, %s3587_s22 }
0x1e14   :  { %v2337_v53 = vpop.permute.xlu2 %2336 }
0x1e15   :  { %v2339_v10 = vadd.f32 %v2337_v53, %v2305_v60 }
0x1e17   :  { %3401 = vtanh.f32 %v2339_v10 }
0x1e1d   :  { %v3402_v13 = vpop.eup %3401 }
0x1e1e   :  { %2343 = vrot.lane.b32.xlu0 %v3402_v13, %s3586_s20 }
0x1e90   :  { %v2344_v62 = vpop.permute.xlu0 %2343 }
0x1e91   :  { %v2346_v32 = vmul.f32 %v2344_v62, %v2341_v16 }
0x1e93   :  { %v4643_v57 = vadd.f32 %v2347_v37, %v2346_v32 }
0x1e95   :  { %2471 = vrot.lane.b32.xlu1 %v4643_v57, %s3587_s22 }
0x1f07   :  { %v2472_v29 = vpop.permute.xlu1 %2471 }
0x1f08   :  { %3303 = vmatmul.msk.f32.vlgmr.msrb.gmra.mxu3 %vm95_vm1, %v2472_v29  ;;  %3304 = vmatmul.msk.f32.vlgmr.msra.gmra.mxu0 %vm95_vm1, %v2472_v29 }
0x1f09   :  { %2818 = vmatpush.msrb.mxu3 %v4206_v34  ;;  %2842 = vmatpush.msra.mxu0 %v4359_v47 }
0x1f0b   :  { %2819 = vmatpush.msrb.mxu3 %v4365_v55  ;;  %2843 = vmatpush.msra.mxu0 %v4371_v33 }
0x1f0d   :  { %2820 = vmatpush.msrb.mxu3 %v4377_v54  ;;  %2844 = vmatpush.msra.mxu0 %v4383_v3 }
0x1f0f   :  { %2821 = vmatpush.msrb.mxu3 %v4389_v35  ;;  %2845 = vmatpush.msra.mxu0 %v4395_v50 }
0x1f8b   :  { %v2492_v60 = vpop.f32.mrf.mxu3 }
0x1f8c   :  { %v2515_v0 = vadd.f32 %v2492_v60, %v4657_v52  ;;  %2687 = vrot.lane.b32.xlu1 %v2492_v60, %s3586_s20  ;;  %v2583_v40 = vadd.f32 %v2492_v60, %v3809_v27 }
0x1f8e   :  { %v2516_v34 = vadd.f32 %v2515_v0, %v3864_v39  ;;  %v2584_v42 = vmax.f32 %v2583_v40, 0.0 }
0x1f90   :  { %v2517_v47 = vmax.f32 %v2516_v34, 0.0 }
0x1f92   :  { %3305 = vmatmul.msk.f32.vlgmr.msra.gmra.mxu1 %vm95_vm1, %v2517_v47 }
0x1f93   :  { %2867 = vmatpush.msra.mxu1 %v4225_v6  ;;  %v3312_v6 = vld [vmem:[%s5394_s0 + $0x1c] sm:$0xf] }
0x1f95   :  { %2868 = vmatpush.msra.mxu1 %v4408_v18 }
0x1f97   :  { %2869 = vmatpush.msra.mxu1 %v4414_v58 }
0x1f99   :  { %2870 = vmatpush.msra.mxu1 %v4420_v59 }
0x1ffe   :  { %v2688_v37 = vpop.permute.xlu1 %2687 }
0x200f   :  { %v2538_v55 = vpop.f32.mrf.mxu1 }
0x2010   :  { %v2539_v33 = vadd.f32 %v2538_v55, %v3901_v48 }
0x2012   :  { %v2541_v54 = vmax.f32 %v2539_v33, 0.0 }
0x2014   :  { %3306 = vmatmul.msk.f32.vlgmr.msra.gmra.mxu2 %vm95_vm1, %v2541_v54 }
0x2015   :  { %2893 = vmatpush.msra.mxu2 %v4273_v25 }
0x2017   :  { %2894 = vmatpush.msra.mxu2 %v4280_v43 }
0x2019   :  { %2895 = vmatpush.msra.mxu2 %v4287_v30 }
0x201b   :  { %2896 = vmatpush.msra.mxu2 %v4293_v46 }
0x201c   :  { %3314 = vmatmul.msk.f32.vlgmr.msrb.gmra.mxu2 %vm63_vm0, %v3312_v6 }
0x2097   :  { %v2562_v3 = vpop.f32.mrf.mxu2 }
0x2098   :  { %v4678_v35 = vadd.f32 %v4462_v51, %v2562_v3 }
0x209a   :  { %v2568_v50 = vand.u32 2147483647, %v4678_v35  ;;  %v2565_v2 = vmax.f32 %v4678_v35, 0.0  ;;  %vm2566_vm14 = vcmp.ne.f32.partialorder %v4678_v35, %v4678_v35 }
0x209c   :  { %v2569_v18 = vsub.f32 0.0, %v2568_v50 }
0x209e   :  { %v2570_v25 = vmul.f32 1.442695, %v2569_v18 }
0x209f   :  { %v2799_v20 = vpop.f32.mrf.mxu2 }
0x20a0   :  { %3403 = vpow2.f32 %v2570_v25  ;;  %v2800_v10 = vadd.f32 %v4267_v41, %v2799_v20 }
0x20a2   :  { %v2802_v13 = vmax.f32 %v2800_v10, 0.0 }
0x20a6   :  { %v3404_v43 = vpop.eup %3403 }
0x20a7   :  { %v2572_v58 = vadd.f32 1.0, %v3404_v43  ;;  %v2575_v30 = vmul.f32 -0.5, %v3404_v43  ;;  %v2578_v59 = vand.u32 2147483647, %v3404_v43 }
0x20a9   :  { %3405 = vlog2.f32 %v2572_v58  ;;  %v2576_v46 = vadd.f32 1.0, %v2575_v30  ;;  %vm2579_vm13 = vcmp.lt.f32.partialorder %v2578_v59, 0.0004427343 }
0x20ab   :  { %v2577_v8 = vmul.f32 %v3404_v43, %v2576_v46 }
0x20af   :  { %v3406_v63 = vpop.eup %3405 }
0x20b0   :  { %v2574_v1 = vmul.f32 0.6931472, %v3406_v63 }
0x20b2   :  { %v2580_v38 = vsel %vm2579_vm13, %v2577_v8, %v2574_v1 }
0x20b3   :  { %v2581_v56 = vadd.f32 %v2580_v38, %v2565_v2 }
0x20b5   :  { %v4685_v7 = vsel %vm2566_vm14, %v4678_v35, %v2581_v56 }
0x20b6   :  { %2629 = vrot.lane.b32.xlu2 %v4685_v7, %s3591_s26 }
0x20be   :  { %2586 = vrot.lane.b32.xlu2 %v2584_v42, %s3586_s20 }
0x2110   :  { %v2630_v23 = vpop.permute.xlu2 %2629 }
0x2111   :  { %v2632_v31 = vmul.f32 %v3299_v4, %v2630_v23 }
0x2113   :  { %v2633_v9 = vadd.f32 %v2632_v31, %v4678_v35 }
0x2115   :  { %3308 = vmatmul.msk.f32.vlgmr.msrb.gmra.mxu0 %vm349_vm4, %v2633_v9 }
0x2116   :  { %2962 = vmatpush.msrb.mxu0 %v4308_v49  ;;  %v2512_v49 = vpop.f32.mrf.mxu0 }
0x2118   :  { %v2587_v53 = vpop.permute.xlu2 %2586  ;;  %2963 = vmatpush.msrb.mxu0 %v4315_v61 }
0x2119   :  { %3307 = vmatmul.msk.f32.vlgmr.msra.gmra.mxu3 %vm95_vm1, %v2587_v53 }
0x211a   :  { %2964 = vmatpush.msrb.mxu0 %v4321_v36  ;;  %2917 = vmatpush.msra.mxu3 %v4486_v28 }
0x211c   :  { %2965 = vmatpush.msrb.mxu0 %v4334_v5  ;;  %2918 = vmatpush.msra.mxu3 %v4492_v19 }
0x211e   :  { %2919 = vmatpush.msra.mxu3 %v4501_v44 }
0x2120   :  { %2920 = vmatpush.msra.mxu3 %v4508_v15 }
0x2121   :  { %3315 = vmatmul.msk.f32.vlgmr.msrb.gmra.mxu3 %vm95_vm1, %v2802_v13 }
0x2192   :  { %v2654_v61 = vpop.f32.mrf.mxu0 }
0x2193   :  { %v2655_v16 = vadd.f32 %v2654_v61, %v3807_v26 }
0x2195   :  { %v2657_v41 = vmax.f32 %v2655_v16, 0.0 }
0x2197   :  { %3309 = vmatmul.msk.f32.vlgmr.msrb.gmra.mxu1 %vm95_vm1, %v2657_v41 }
0x2198   :  { %3012 = vmatpush.msrb.mxu1 %v4456_v12 }
0x219c   :  { %v4710_v36 = vpop.f32.mrf.mxu3 }
0x21a4   :  { %v2823_v5 = vpop.f32.mrf.mxu3 }
0x21a5   :  { %v2824_v28 = vadd.f32 %v2823_v5, %v3795_v21 }
0x21a7   :  { %v2826_v19 = vmax.f32 %v2824_v28, 0.0 }
0x21a9   :  { %3316 = vmatmul.msk.f32.vlgmr.msra.gmra.mxu0 %vm95_vm1, %v2826_v19 }
0x2214   :  { %v2678_v44 = vpop.f32.mrf.mxu1 }
0x2215   :  { %2682 = vrot.lane.b32.xlu0 %v2678_v44, %s3590_s21 }
0x221d   :  { %2711 = vrot.lane.b32.xlu0 %v2512_v49, %s3590_s21 }
0x2226   :  { %v2847_v2 = vpop.f32.mrf.mxu0 }
0x2287   :  { %v2683_v15 = vpop.permute.xlu0 %2682 }
0x2288   :  { %v2685_v62 = vadd.f32 %v2683_v15, %v4657_v52 }
0x228a   :  { %v2690_v32 = vadd.f32 %v2688_v37, %v2685_v62 }
0x228c   :  { %v3310_v29 = vmul.f32 -1.442695, %v2690_v32  ;;  %v3341_v32 = vld [vmem:[%s5377_s14 + $0x1] ss:$0 sm:$0xff] }
0x228e   :  { %3407 = vpow2.f32 %v3310_v29 }
0x228f   :  { %v2712_v50 = vpop.permute.xlu0 %2711 }
0x2294   :  { %v3408_v12 = vpop.eup %3407 }
0x2295   :  { %v2694_v60 = vadd.f32 1.0, %v3408_v12 }
0x2297   :  { %3409 = vrcp.f32 %v2694_v60  ;;  %v2706_v47 = vand.u32 2147483648, %v2694_v60  ;;  %v2704_v33 = vand.u32 2147483647, %v2694_v60  ;;  %vm2700_vm2 = vweird.f32 %v2694_v60 }
0x2299   :  { %v2707_v6 = vor.u32 1.1754944e-38, %v2706_v47  ;;  %vm2705_vm5 = vcmp.eq.f32.partialorder %v2704_v33, 8.507059e+37 }
0x229d   :  { %v3410_v0 = vpop.eup %3409 }
0x229e   :  { %v2696_v21 = vmul.f32 %v3410_v0, %v2694_v60  ;;  %vm2701_vm15 = vweird.f32 %v3410_v0 }
0x229f   :  { %vm2702_vm3 = vmor %vm2700_vm2, %vm2701_vm15  ;;  %vm1231_vm15 = vweird.f32 %v4153_v14 }
0x22a0   :  { %v2697_v34 = vsub.f32 1.0, %v2696_v21 }
0x22a2   :  { %v2698_v55 = vmul.f32 %v3410_v0, %v2697_v34  ;;  %v5408_v34 = vld [vmem:[#allocation15_spill] sm:$0xff] }
0x22a4   :  { %v2699_v54 = vadd.f32 %v3410_v0, %v2698_v55  ;;  %v3313_v55 = vld [vmem:[%s5397_s1 + $0x1c] sm:$0xf]  ;;  %s3593_s1 = smov 8  }
0x22a6   :  { %v2703_v3 = vsel %vm2702_vm3, %v3410_v0, %v2699_v54 }
0x22a7   :  { %v2708_v52 = vsel %vm2705_vm5, %v2707_v6, %v2703_v3 }
0x22a8   :  { %v2714_v18 = vmul.f32 %v2712_v50, %v2708_v52  ;;  %v2721_v30 = vsub.f32 1.0, %v2708_v52  ;;  %v2727_v59 = vmul.f32 %v2708_v52, %v4643_v57  ;;  %v477_v50 = vand.u32 2147483648, %v3959_v45 }
0x22aa   :  { %2716 = vrot.lane.b32.xlu1 %v2714_v18, %s3587_s22 }
0x231c   :  { %v2717_v25 = vpop.permute.xlu1 %2716 }
0x231d   :  { %v2719_v43 = vadd.f32 %v2717_v25, %v2685_v62 }
0x231f   :  { %3411 = vtanh.f32 %v2719_v43 }
0x2325   :  { %v3412_v58 = vpop.eup %3411 }
0x2326   :  { %2723 = vrot.lane.b32.xlu2 %v3412_v58, %s3586_s20  ;;  %v475_v58 = vand.u32 2147483647, %v3959_v45 }
0x2328   :  { %vm476_vm13 = vcmp.eq.f32.partialorder %v475_v58, 8.507059e+37 }
0x2380   :  { %v2724_v46 = vpop.permute.xlu2 %2723 }
0x2381   :  { %v2726_v63 = vmul.f32 %v2724_v46, %v2721_v30  ;;  %v857_v46 = vand.u32 2147483648, %v4066_v24 }
0x2383   :  { %v2728_v1 = vadd.f32 %v2727_v59, %v2726_v63  ;;  %v478_v63 = vor.u32 1.1754944e-38, %v477_v50 }
0x2385   :  { %2851 = vrot.lane.b32.xlu0 %v2728_v1, %s3587_s22 }
0x238d   :  { %3073 = vrot.lane.b32.xlu0 %v3341_v32, %s3590_s21  ;;  %v5418_v32 = vld [vmem:[#allocation16_spill] sm:$0xff] }
0x23f7   :  { %v2852_v8 = vpop.permute.xlu0 %2851 }
0x23f8   :  { %3317 = vmatmul.msk.f32.vlgmr.msra.gmra.mxu1 %vm95_vm1, %v2852_v8 }
0x2475   :  { %v2872_v38 = vpop.f32.mrf.mxu1 }
0x2476   :  { %v2875_v56 = vadd.f32 %v2872_v38, %v2847_v2  ;;  %v2943_v40 = vadd.f32 %v2872_v38, %v3809_v27 }
0x2478   :  { %v2876_v42 = vadd.f32 %v2875_v56, %v3864_v39  ;;  %v2944_v4 = vmax.f32 %v2943_v40, 0.0 }
0x247a   :  { %v2877_v23 = vmax.f32 %v2876_v42, 0.0  ;;  %2946 = vrot.lane.b32.xlu2 %v2944_v4, %s3586_s20  ;;  %s3592_s20 = smov 80   ;;  %v855_v42 = vand.u32 2147483647, %v4066_v24  ;;  %v4789_v4 = vor.u32 1.1754944e-38, %v857_v46 }
0x247c   :  { %3318 = vmatmul.msk.f32.vlgmr.msra.gmra.mxu2 %vm95_vm1, %v2877_v23  ;;  %v5411_v23 = vld [vmem:[#allocation13_spill] sm:$0xff] }
0x24d4   :  { %v2947_v57 = vpop.permute.xlu2 %2946 }
0x24d5   :  { %3320 = vmatmul.msk.f32.vlgmr.msrb.gmra.mxu0 %vm95_vm1, %v2947_v57 }
0x24ff   :  { %v2898_v31 = vpop.f32.mrf.mxu2 }
0x2500   :  { %v2899_v9 = vadd.f32 %v2898_v31, %v3901_v48  ;;  %v5412_v31 = vld [vmem:[#allocation11_spill] sm:$0xff] }
0x2502   :  { %v2901_v20 = vmax.f32 %v2899_v9, 0.0 }
0x2504   :  { %3319 = vmatmul.msk.f32.vlgmr.msra.gmra.mxu3 %vm95_vm1, %v2901_v20  ;;  %v5413_v20 = vld [vmem:[#allocation9_spill] sm:$0xff] }
0x2587   :  { %v2922_v53 = vpop.f32.mrf.mxu3 }
0x2588   :  { %v4730_v27 = vadd.f32 %v4462_v51, %v2922_v53 }
0x258a   :  { %v2928_v39 = vand.u32 2147483647, %v4730_v27  ;;  %v2925_v44 = vmax.f32 %v4730_v27, 0.0  ;;  %vm2926_vm7 = vcmp.ne.f32.partialorder %v4730_v27, %v4730_v27 }
0x258c   :  { %v2929_v10 = vsub.f32 0.0, %v2928_v39  ;;  %v1235_v39 = vand.u32 2147483647, %v4153_v14 }
0x258e   :  { %v2930_v13 = vmul.f32 1.442695, %v2929_v10  ;;  %vm4848_vm3 = vcmp.eq.f32.partialorder %v1235_v39, 8.507059e+37 }
0x2590   :  { %3413 = vpow2.f32 %v2930_v13 }
0x2596   :  { %v3414_v49 = vpop.eup %3413 }
0x2597   :  { %v2932_v61 = vadd.f32 1.0, %v3414_v49  ;;  %v2935_v16 = vmul.f32 -0.5, %v3414_v49  ;;  %v2938_v5 = vand.u32 2147483647, %v3414_v49 }
0x2599   :  { %3415 = vlog2.f32 %v2932_v61  ;;  %v2936_v41 = vadd.f32 1.0, %v2935_v16  ;;  %vm2939_vm6 = vcmp.lt.f32.partialorder %v2938_v5, 0.0004427343  ;;  %v5414_v61 = vld [vmem:[#allocation12_spill] sm:$0xff]  ;;  %v5415_v5 = vld [vmem:[#allocation10_spill] sm:$0xff] }
0x259a   :  { %3417 = vrcp.f32 %v3959_v45 }
0x259b   :  { %v2937_v19 = vmul.f32 %v3414_v49, %v2936_v41  ;;  %3419 = vrcp.f32 %v4066_v24 }
0x259c   :  { %3421 = vrcp.f32 %v4153_v14 }
0x259d   :  { %3423 = vrcp.f32 %v5408_v34 }
0x259e   :  { %3425 = vrcp.f32 %v4685_v7 }
0x259f   :  { %v3416_v28 = vpop.eup %3415 }
0x25a0   :  { %v2934_v48 = vmul.f32 0.6931472, %v3416_v28  ;;  %v3418_v29 = vpop.eup %3417 }
0x25a1   :  { %v4748_v12 = vpop.eup %3419  ;;  %v467_v60 = vmul.f32 %v3418_v29, %v3959_v45  ;;  %vm472_vm8 = vweird.f32 %v3418_v29 }
0x25a2   :  { %v2940_v15 = vsel %vm2939_vm6, %v2937_v19, %v2934_v48  ;;  %v847_v0 = vmul.f32 %v4748_v12, %v4066_v24  ;;  %v4758_v33 = vpop.eup %3421  ;;  %vm473_vm10 = vmor %vm471_vm9, %vm472_vm8  ;;  %vm852_vm11 = vweird.f32 %v4748_v12  ;;  %v5416_v19 = vld [vmem:[#allocation8_spill] sm:$0xff]  ;;  %vm1611_vm6 = vweird.f32 %v5408_v34 }
0x25a3   :  { %v2941_v62 = vadd.f32 %v2940_v15, %v2925_v44  ;;  %v1227_v18 = vmul.f32 %v4758_v33, %v4153_v14  ;;  %v4764_v25 = vpop.eup %3423  ;;  %vm4778_vm14 = vmor %vm851_vm12, %vm852_vm11 }
0x25a4   :  { %v848_v21 = vsub.f32 1.0, %v847_v0  ;;  %v1607_v1 = vmul.f32 %v4764_v25, %v5408_v34  ;;  %vm1612_vm5 = vweird.f32 %v4764_v25 }
0x25a5   :  { %v4737_v37 = vsel %vm2926_vm7, %v4730_v27, %v2941_v62  ;;  %v1228_v8 = vsub.f32 1.0, %v1227_v18  ;;  %v4829_v18 = vpop.eup %3425  ;;  %vm4873_vm7 = vmor %vm1611_vm6, %vm1612_vm5  ;;  %vm2751_vm6 = vweird.f32 %v4685_v7 }
0x25a6   :  { %2989 = vrot.lane.b32.xlu1 %v4737_v37, %s3591_s26  ;;  %v849_v6 = vmul.f32 %v4748_v12, %v848_v21  ;;  %v1608_v13 = vsub.f32 1.0, %v1607_v1  ;;  %v2747_v39 = vmul.f32 %v4829_v18, %v4685_v7 }
0x25a7   :  { %v1229_v49 = vmul.f32 %v4758_v33, %v1228_v8 }
0x25a8   :  { %v4770_v30 = vadd.f32 %v4748_v12, %v849_v6  ;;  %v1609_v46 = vmul.f32 %v4764_v25, %v1608_v13 }
0x25aa   :  { %v854_v40 = vsel %vm4778_vm14, %v4748_v12, %v4770_v30 }
0x25ae   :  { %296 = vrot.lane.b32.xlu1 %v4462_v51, %s3592_s20  ;;  %v468_v51 = vsub.f32 1.0, %v467_v60 }
0x25b0   :  { %v469_v47 = vmul.f32 %v3418_v29, %v468_v51 }
0x25b2   :  { %v470_v52 = vadd.f32 %v3418_v29, %v469_v47 }
0x25b4   :  { %v474_v59 = vsel %vm473_vm10, %v3418_v29, %v470_v52 }
0x25b5   :  { %v4782_v56 = vsel %vm476_vm13, %v478_v63, %v474_v59  ;;  %v5419_v63 = vld [vmem:[#allocation17_spill] sm:$0xff] }
0x2618   :  { %v2990_v54 = vpop.permute.xlu1 %2989 }
0x2619   :  { %v2992_v3 = vmul.f32 %v3313_v55, %v2990_v54  ;;  %v1230_v54 = vadd.f32 %v4758_v33, %v1229_v49 }
0x261b   :  { %v2993_v43 = vadd.f32 %v2992_v3, %v4730_v27 }
0x261d   :  { %3321 = vmatmul.msk.f32.vlgmr.msrb.gmra.mxu1 %vm349_vm4, %v2993_v43  ;;  %vm1232_vm4 = vweird.f32 %v4758_v33 }
0x261e   :  { %vm4844_vm2 = vmor %vm1231_vm15, %vm1232_vm4  ;;  %vm4920_vm4 = vcmp.eq.f32.partialorder %v855_v42, 8.507059e+37 }
0x2620   :  { %v297_v38 = vpop.permute.xlu1 %296 }
0x2621   :  { %v4792_v57 = vadd.f32 %v5411_v23, %v297_v38  ;;  %v4795_v9 = vadd.f32 %v5412_v31, %v297_v38  ;;  %v4798_v53 = vadd.f32 %v5413_v20, %v297_v38  ;;  %v4803_v10 = vadd.f32 %v4625_v22, %v297_v38  ;;  %v5417_v22 = vld [vmem:[#allocation19_spill] sm:$0xff]  ;;  %v5420_v23 = vld [vmem:[#allocation14_spill] sm:$0xff] }
0x2622   :  { %v4816_v62 = vadd.f32 %v5417_v22, %v297_v38  ;;  %v4819_v29 = vadd.f32 %v5418_v32, %v297_v38  ;;  %v4827_v50 = vadd.f32 %v4710_v36, %v297_v38  ;;  %v1237_v36 = vand.u32 2147483648, %v4153_v14 }
0x2623   :  { %v1209_v16 = vsub.f32 %v5414_v61, %v4792_v57  ;;  %v1093_v41 = vand.u32 2147483647, %v4792_v57  ;;  %v829_v28 = vsub.f32 %v5415_v5, %v4795_v9  ;;  %v713_v48 = vand.u32 2147483647, %v4795_v9 }
0x2624   :  { %v449_v44 = vsub.f32 %v5416_v19, %v4798_v53  ;;  %v324_v15 = vand.u32 2147483647, %v4798_v53  ;;  %v2233_v52 = vand.u32 2147483647, %v4803_v10  ;;  %v1473_v58 = vand.u32 2147483647, %v4819_v29 }
0x2625   :  { %v1245_v60 = vmul.f32 %v1209_v16, %v1209_v16  ;;  %v1094_v0 = vsub.f32 0.0, %v1093_v41  ;;  %v865_v51 = vmul.f32 %v829_v28, %v829_v28  ;;  %v714_v21 = vsub.f32 0.0, %v713_v48  ;;  %v2967_v16 = vpop.f32.mrf.mxu0 }
0x2626   :  { %v485_v47 = vmul.f32 %v449_v44, %v449_v44  ;;  %v325_v55 = vsub.f32 0.0, %v324_v15  ;;  %v2349_v59 = vsub.f32 %v4591_v17, %v4803_v10  ;;  %v1969_v1 = vsub.f32 %v5419_v63, %v4816_v62 }
0x2627   :  { %1247 = vrot.lane.b32.xlu1 %v1245_v60, %s3593_s1  ;;  %v1095_v6 = vmul.f32 1.442695, %v1094_v0  ;;  %867 = vrot.lane.b32.xlu0 %v865_v51, %s3593_s1  ;;  %v715_v3 = vmul.f32 1.442695, %v714_v21  ;;  %v1474_v8 = vsub.f32 0.0, %v1473_v58  ;;  %v1589_v31 = vsub.f32 %v5420_v23, %v4819_v29 }
0x2628   :  { %487 = vrot.lane.b32.xlu2 %v485_v47, %s3593_s1  ;;  %v326_v43 = vmul.f32 1.442695, %v325_v55  ;;  %v2234_v17 = vsub.f32 0.0, %v2233_v52  ;;  %v2613_v49 = vand.u32 2147483647, %v4827_v50  ;;  %v1234_v61 = vsel %vm4844_vm2, %v4758_v33, %v1230_v54 }
0x2629   :  { %3427 = vpow2.f32 %v1095_v6  ;;  %v1475_v41 = vmul.f32 1.442695, %v1474_v8  ;;  %v1610_v5 = vadd.f32 %v4764_v25, %v1609_v46  ;;  %v2385_v28 = vmul.f32 %v2349_v59, %v2349_v59 }
0x262a   :  { %3429 = vpow2.f32 %v715_v3  ;;  %v2005_v48 = vmul.f32 %v1969_v1, %v1969_v1  ;;  %v4860_v19 = vadd.f32 %v2967_v16, %v297_v38  ;;  %v2614_v44 = vsub.f32 0.0, %v2613_v49 }
0x262b   :  { %3431 = vpow2.f32 %v326_v43  ;;  %v1625_v15 = vmul.f32 %v1589_v31, %v1589_v31  ;;  %v1617_v22 = vand.u32 2147483648, %v5408_v34  ;;  %v1238_v32 = vor.u32 1.1754944e-38, %v1237_v36 }
0x262c   :  { %3433 = vpow2.f32 %v1475_v41  ;;  %v2235_v60 = vmul.f32 1.442695, %v2234_v17  ;;  %v2615_v0 = vmul.f32 1.442695, %v2614_v44  ;;  %v1615_v51 = vand.u32 2147483647, %v5408_v34 }
0x262d   :  { %3435 = vrcp.f32 %v4599_v11  ;;  %v2748_v47 = vsub.f32 1.0, %v2747_v39  ;;  %v4879_v54 = vsel %vm4848_vm3, %v1238_v32, %v1234_v61  ;;  %v3018_v3 = vsub.f32 %v4730_v27, %v4860_v19 }
0x262e   :  { %3437 = vpow2.f32 %v2615_v0  ;;  %v1614_v52 = vsel %vm4873_vm7, %v4764_v25, %v1610_v5  ;;  %v2729_v58 = vsub.f32 %v4678_v35, %v4827_v50  ;;  %v1618_v59 = vor.u32 1.1754944e-38, %v1617_v22 }
0x262f   :  { %v3428_v33 = vpop.eup %3427  ;;  %2387 = vrot.lane.b32.xlu1 %v2385_v28, %s3593_s1  ;;  %2007 = vrot.lane.b32.xlu0 %v2005_v48, %s3593_s1  ;;  %vm1616_vm8 = vcmp.eq.f32.partialorder %v1615_v51, 8.507059e+37  ;;  %v4892_v8 = vmul.f32 %v4829_v18, %v2748_v47  ;;  %v3054_v23 = vmul.f32 %v3018_v3, %v3018_v3  ;;  %v1853_v17 = vand.u32 2147483647, %v4816_v62 }
0x2630   :  { %v4867_v21 = vpop.eup %3429  ;;  %1627 = vrot.lane.b32.xlu2 %v1625_v15, %s3593_s1  ;;  %v1097_v55 = vadd.f32 1.0, %v3428_v33  ;;  %v1100_v43 = vmul.f32 -0.5, %v3428_v33  ;;  %v4889_v27 = vsel %vm1616_vm8, %v1618_v59, %v1614_v52  ;;  %v2765_v49 = vmul.f32 %v2729_v58, %v2729_v58 }
0x2631   :  { %v3432_v6 = vpop.eup %3431  ;;  %v717_v1 = vadd.f32 1.0, %v4867_v21  ;;  %v720_v25 = vmul.f32 -0.5, %v4867_v21  ;;  %v1103_v61 = vand.u32 2147483647, %v3428_v33  ;;  %v321_v41 = vmax.f32 %v4798_v53, 0.0 }
0x2632   :  { %v328_v46 = vadd.f32 1.0, %v3432_v6  ;;  %3439 = vlog2.f32 %v1097_v55  ;;  %v331_v63 = vmul.f32 -0.5, %v3432_v6  ;;  %v3434_v36 = vpop.eup %3433  ;;  %v1101_v20 = vadd.f32 1.0, %v1100_v43 }
0x2633   :  { %3441 = vpow2.f32 %v2235_v60  ;;  %v1477_v31 = vadd.f32 1.0, %v3434_v36  ;;  %v1480_v35 = vmul.f32 -0.5, %v3434_v36  ;;  %v4895_v13 = vpop.eup %3435  ;;  %vm322_vm9 = vcmp.ne.f32.partialorder %v4798_v53, %v4798_v53 }
0x2634   :  { %3443 = vlog2.f32 %v328_v46  ;;  %v3438_v16 = vpop.eup %3437  ;;  %v332_v5 = vadd.f32 1.0, %v331_v63  ;;  %v334_v28 = vand.u32 2147483647, %v3432_v6  ;;  %v1470_v48 = vmax.f32 %v4819_v29, 0.0 }
0x2635   :  { %3445 = vlog2.f32 %v717_v1  ;;  %v2617_v44 = vadd.f32 1.0, %v3438_v16  ;;  %v721_v15 = vadd.f32 1.0, %v720_v25  ;;  %v1481_v32 = vadd.f32 1.0, %v1480_v35 }
0x2636   :  { %3447 = vlog2.f32 %v1477_v31  ;;  %v1102_v0 = vmul.f32 %v3428_v33, %v1101_v20  ;;  %v723_v51 = vand.u32 2147483647, %v4867_v21  ;;  %v2620_v47 = vmul.f32 -0.5, %v3438_v16 }
0x2637   :  { %3056 = vrot.lane.b32.xlu0 %v3054_v23, %s3593_s1  ;;  %3449 = vlog2.f32 %v2617_v44  ;;  %v1090_v55 = vmax.f32 %v4792_v57, 0.0  ;;  %vm1104_vm10 = vcmp.lt.f32.partialorder %v1103_v61, 0.0004427343  ;;  %v333_v52 = vmul.f32 %v3432_v6, %v332_v5 }
0x2638   :  { %v3440_v39 = vpop.eup %3439  ;;  %2767 = vrot.lane.b32.xlu2 %v2765_v49, %s3593_s1  ;;  %v1483_v43 = vand.u32 2147483647, %v3434_v36  ;;  %vm335_vm11 = vcmp.lt.f32.partialorder %v334_v28, 0.0004427343  ;;  %vm1091_vm12 = vcmp.ne.f32.partialorder %v4792_v57, %v4792_v57  ;;  %v722_v33 = vmul.f32 %v4867_v21, %v721_v15  ;;  %s3595_s1 = smov [#allocation2]  }
0x2639   :  { %v4904_v22 = vpop.eup %3441  ;;  %v1099_v60 = vmul.f32 0.6931472, %v3440_v39  ;;  %v1482_v25 = vmul.f32 %v3434_v36, %v1481_v32  ;;  %vm4911_vm13 = vcmp.lt.f32.partialorder %v723_v51, 0.0004427343  ;;  %v2621_v20 = vadd.f32 1.0, %v2620_v47 }
0x263a   :  { %v3444_v38 = vpop.eup %3443  ;;  %vm1484_vm15 = vcmp.lt.f32.partialorder %v1483_v43, 0.0004427343  ;;  %v2623_v21 = vand.u32 2147483647, %v3438_v16  ;;  %vm2752_vm2 = vweird.f32 %v4829_v18  ;;  %v710_v39 = vmax.f32 %v4795_v9, 0.0 }
0x263b   :  { %v330_v3 = vmul.f32 0.6931472, %v3444_v38  ;;  %v1105_v58 = vsel %vm1104_vm10, %v1102_v0, %v1099_v60  ;;  %v3446_v46 = vpop.eup %3445  ;;  %v2750_v15 = vadd.f32 %v4829_v18, %v4892_v8  ;;  %v1854_v32 = vsub.f32 0.0, %v1853_v17  ;;  %vm4955_vm7 = vmor %vm2751_vm6, %vm2752_vm2 }
0x263c   :  { %v1106_v59 = vadd.f32 %v1105_v58, %v1090_v55  ;;  %v3448_v63 = vpop.eup %3447  ;;  %v719_v23 = vmul.f32 0.6931472, %v3446_v46  ;;  %v2622_v60 = vmul.f32 %v3438_v16, %v2621_v20  ;;  %v2757_v0 = vand.u32 2147483648, %v4685_v7  ;;  %v5433_v58 = vld [vmem:[#allocation18_spill] sm:$0xff] }
0x263d   :  { %v336_v1 = vsel %vm335_vm11, %v333_v52, %v330_v3  ;;  %v1479_v6 = vmul.f32 0.6931472, %v3448_v63  ;;  %v3450_v5 = vpop.eup %3449  ;;  %vm1471_vm3 = vcmp.ne.f32.partialorder %v4819_v29, %v4819_v29  ;;  %vm2624_vm5 = vcmp.lt.f32.partialorder %v2623_v21, 0.0004427343 }
0x263e   :  { %v337_v35 = vadd.f32 %v336_v1, %v321_v41  ;;  %v4916_v49 = vsel %vm1091_vm12, %v4792_v57, %v1106_v59  ;;  %v725_v41 = vsel %vm4911_vm13, %v722_v33, %v719_v23  ;;  %v2619_v44 = vmul.f32 0.6931472, %v3450_v5 }
0x263f   :  { %v4926_v36 = vmul.f32 %v4879_v54, %v4916_v49  ;;  %v1485_v42 = vsel %vm1484_vm15, %v1482_v25, %v1479_v6  ;;  %v2755_v51 = vand.u32 2147483647, %v4685_v7  ;;  %v2237_v17 = vadd.f32 1.0, %v4904_v22 }
0x2640   :  { %v4934_v57 = vsel %vm322_vm9, %v4798_v53, %v337_v35  ;;  %v1486_v54 = vadd.f32 %v1485_v42, %v1470_v48  ;;  %v726_v53 = vadd.f32 %v725_v41, %v710_v39  ;;  %v2610_v48 = vmax.f32 %v4827_v50, 0.0 }
0x2641   :  { %v4940_v28 = vmul.f32 %v4782_v56, %v4934_v57  ;;  %v2625_v38 = vsel %vm2624_vm5, %v2622_v60, %v2619_v44  ;;  %vm711_vm8 = vcmp.ne.f32.partialorder %v4795_v9, %v4795_v9  ;;  %v2367_v47 = vmul.f32 %v4895_v13, %v4599_v11 }
0x2642   :  { %v4950_v56 = vsel %vm1471_vm3, %v4819_v29, %v1486_v54  ;;  %v2754_v29 = vsel %vm4955_vm7, %v4829_v18, %v2750_v15  ;;  %v1855_v55 = vmul.f32 1.442695, %v1854_v32  ;;  %v2626_v3 = vadd.f32 %v2625_v38, %v2610_v48 }
0x2643   :  { %v4962_v16 = vmul.f32 %v4889_v27, %v4950_v56  ;;  %v2758_v52 = vor.u32 1.1754944e-38, %v2757_v0  ;;  %v4972_v43 = vsel %vm711_vm8, %v4795_v9, %v726_v53  ;;  %3451 = vrcp.f32 %v5433_v58 }
0x2644   :  { %vm2611_vm9 = vcmp.ne.f32.partialorder %v4827_v50, %v4827_v50  ;;  %vm2756_vm10 = vcmp.eq.f32.partialorder %v2755_v51, 8.507059e+37  ;;  %v859_v18 = vsel %vm4920_vm4, %v4789_v4, %v854_v40  ;;  %3453 = vlog2.f32 %v2237_v17 }
0x2645   :  { %v4986_v27 = vsel %vm2611_vm9, %v4827_v50, %v2626_v3  ;;  %v2759_v9 = vsel %vm2756_vm10, %v2758_v52, %v2754_v29  ;;  %v4989_v46 = vmul.f32 %v859_v18, %v4972_v43  ;;  %v2368_v33 = vsub.f32 1.0, %v2367_v47 }
0x2646   :  { %v4992_v59 = vmul.f32 %v2759_v9, %v4986_v27  ;;  %3455 = vpow2.f32 %v1855_v55  ;;  %v2240_v2 = vmul.f32 -0.5, %v4904_v22  ;;  %v2243_v50 = vand.u32 2147483647, %v4904_v22 }
0x2647   :  { %v2369_v30 = vmul.f32 %v4895_v13, %v2368_v33  ;;  %vm2372_vm14 = vweird.f32 %v4895_v13  ;;  %v2377_v31 = vand.u32 2147483648, %v4599_v11  ;;  %vm2371_vm11 = vweird.f32 %v4599_v11 }
0x2648   :  { %v2241_v40 = vadd.f32 1.0, %v2240_v2  ;;  %v2375_v6 = vand.u32 2147483647, %v4599_v11  ;;  %v2230_v61 = vmax.f32 %v4803_v10, 0.0  ;;  %vm2244_vm12 = vcmp.lt.f32.partialorder %v2243_v50, 0.0004427343  ;;  %vm2373_vm13 = vmor %vm2371_vm11, %vm2372_vm14 }
0x2649   :  { %v3452_v12 = vpop.eup %3451  ;;  %v2370_v23 = vadd.f32 %v4895_v13, %v2369_v30  ;;  %v2378_v39 = vor.u32 1.1754944e-38, %v2377_v31  ;;  %vm2231_vm4 = vcmp.ne.f32.partialorder %v4803_v10, %v4803_v10  ;;  %v2973_v60 = vand.u32 2147483647, %v4860_v19 }
0x264a   :  { %v3454_v63 = vpop.eup %3453  ;;  %v1987_v1 = vmul.f32 %v3452_v12, %v5433_v58  ;;  %v2242_v35 = vmul.f32 %v4904_v22, %v2241_v40  ;;  %vm2376_vm15 = vcmp.eq.f32.partialorder %v2375_v6, 8.507059e+37  ;;  %vm1992_vm2 = vweird.f32 %v3452_v12  ;;  %v3069_v6 = vld [vmem:[%s5374_s11 + $0x18] sm:$0xff] }
0x264b   :  { %v2239_v25 = vmul.f32 0.6931472, %v3454_v63  ;;  %v2374_v5 = vsel %vm2373_vm13, %v4895_v13, %v2370_v23  ;;  %vm1991_vm3 = vweird.f32 %v5433_v58  ;;  %v1997_v48 = vand.u32 2147483648, %v5433_v58  ;;  %3091 = vmatpush.msrb.mxu2 %v3069_v6 }
0x264c   :  { %v3456_v4 = vpop.eup %3455  ;;  %v1988_v21 = vsub.f32 1.0, %v1987_v1  ;;  %v2379_v44 = vsel %vm2376_vm15, %v2378_v39, %v2374_v5  ;;  %v2974_v38 = vsub.f32 0.0, %v2973_v60  ;;  %v1995_v17 = vand.u32 2147483647, %v5433_v58  ;;  %vm1993_vm6 = vmor %vm1991_vm3, %vm1992_vm2 }
0x264d   :  { %v1857_v20 = vadd.f32 1.0, %v3456_v4  ;;  %v2245_v41 = vsel %vm2244_vm12, %v2242_v35, %v2239_v25  ;;  %v1860_v22 = vmul.f32 -0.5, %v3456_v4  ;;  %v1863_v13 = vand.u32 2147483647, %v3456_v4 }
0x264e   :  { %v2246_v42 = vadd.f32 %v2245_v41, %v2230_v61  ;;  %v1989_v15 = vmul.f32 %v3452_v12, %v1988_v21  ;;  %v1850_v29 = vmax.f32 %v4816_v62, 0.0  ;;  %v1998_v52 = vor.u32 1.1754944e-38, %v1997_v48 }
0x264f   :  { %3457 = vlog2.f32 %v1857_v20  ;;  %v1861_v0 = vadd.f32 1.0, %v1860_v22  ;;  %vm1864_vm5 = vcmp.lt.f32.partialorder %v1863_v13, 0.0004427343  ;;  %v2975_v18 = vmul.f32 1.442695, %v2974_v38 }
0x2650   :  { %v5009_v54 = vsel %vm2231_vm4, %v4803_v10, %v2246_v42  ;;  %v1990_v53 = vadd.f32 %v3452_v12, %v1989_v15  ;;  %vm1851_vm7 = vcmp.ne.f32.partialorder %v4816_v62, %v4816_v62  ;;  %vm1996_vm8 = vcmp.eq.f32.partialorder %v1995_v17, 8.507059e+37 }
0x2651   :  { %v5012_v32 = vmul.f32 %v2379_v44, %v5009_v54  ;;  %v1862_v10 = vmul.f32 %v3456_v4, %v1861_v0  ;;  %v5023_v9 = vmul.f32 %v4934_v57, %v4934_v57  ;;  %3459 = vpow2.f32 %v2975_v18 }
0x2652   :  { %v1994_v55 = vsel %vm1993_vm6, %v3452_v12, %v1990_v53  ;;  %v5034_v63 = vmul.f32 %v4950_v56, %v4950_v56  ;;  %v5044_v50 = vmul.f32 %v4986_v27, %v4986_v27  ;;  %v5053_v23 = vmul.f32 %v4916_v49, %v4916_v49 }
0x2653   :  { %v1999_v2 = vsel %vm1996_vm8, %v1998_v52, %v1994_v55  ;;  %3461 = vrcp.f32 %v5023_v9  ;;  %v484_v49 = vmul.f32 %v3959_v45, %v3959_v45  ;;  %v5069_v20 = vmul.f32 %v4066_v24, %v4066_v24 }
0x2654   :  { %3463 = vrcp.f32 %v5034_v63  ;;  %v5076_v41 = vmul.f32 %v4153_v14, %v4153_v14  ;;  %v5080_v5 = vmul.f32 %v4972_v43, %v4972_v43  ;;  %v5086_v24 = vmul.f32 %v5408_v34, %v5408_v34 }
0x2655   :  { %v3458_v51 = vpop.eup %3457  ;;  %3465 = vrcp.f32 %v4737_v37  ;;  %v5090_v14 = vmul.f32 %v4685_v7, %v4685_v7  ;;  %v5094_v43 = vmul.f32 %v4599_v11, %v4599_v11  ;;  %v5098_v15 = vmul.f32 %v5433_v58, %v5433_v58 }
0x2656   :  { %v1859_v8 = vmul.f32 0.6931472, %v3458_v51  ;;  %vm456_vm10 = vweird.f32 %v5023_v9  ;;  %v462_v34 = vand.u32 2147483648, %v5023_v9  ;;  %v460_v7 = vand.u32 2147483647, %v5023_v9 }
0x2657   :  { %v3460_v12 = vpop.eup %3459  ;;  %v3044_v58 = vand.u32 2147483647, %v4737_v37  ;;  %v3046_v52 = vand.u32 2147483648, %v4737_v37  ;;  %vm1596_vm15 = vweird.f32 %v5034_v63  ;;  %vm2971_vm2 = vcmp.ne.f32.partialorder %v4860_v19, %v4860_v19 }
0x2658   :  { %v1865_v47 = vsel %vm1864_vm5, %v1862_v10, %v1859_v8  ;;  %v2977_v4 = vadd.f32 1.0, %v3460_v12  ;;  %v2980_v56 = vmul.f32 -0.5, %v3460_v12  ;;  %v2983_v45 = vand.u32 2147483647, %v3460_v12 }
0x2659   :  { %v1866_v3 = vadd.f32 %v1865_v47, %v1850_v29  ;;  %v5036_v40 = vpop.eup %3461  ;;  %v5128_v29 = vmul.f32 %v5009_v54, %v5009_v54  ;;  %v2970_v47 = vmax.f32 %v4860_v19, 0.0  ;;  %vm461_vm13 = vcmp.eq.f32.partialorder %v460_v7, 8.507059e+37 }
0x265a   :  { %v452_v57 = vmul.f32 %v5036_v40, %v5023_v9  ;;  %3467 = vlog2.f32 %v2977_v4  ;;  %v5046_v1 = vpop.eup %3463  ;;  %v2981_v61 = vadd.f32 1.0, %v2980_v56  ;;  %vm457_vm9 = vweird.f32 %v5036_v40  ;;  %v3067_v4 = vld [vmem:[%s5374_s11 + $0x8] sm:$0xff] }
0x265b   :  { %v5026_v33 = vsel %vm1851_vm7, %v4816_v62, %v1866_v3  ;;  %v5048_v25 = vpop.eup %3465  ;;  %3469 = vlog2.f32 %v4940_v28  ;;  %v1592_v27 = vmul.f32 %v5046_v1, %v5034_v63  ;;  %v3068_v28 = vld [vmem:[%s5374_s11 + $0x10] sm:$0xff]  ;;  %vm5104_vm14 = vmor %vm456_vm10, %vm457_vm9  ;;  %vm5110_vm11 = vcmp.lt.f32.partialorder %v2983_v45, 0.0004427343 }
0x265c   :  { %v5029_v30 = vmul.f32 %v1999_v2, %v5026_v33  ;;  %v453_v62 = vsub.f32 1.0, %v452_v57  ;;  %3471 = vrcp.f32 %v5044_v50  ;;  %v3036_v21 = vmul.f32 %v5048_v25, %v4737_v37  ;;  %3092 = vmatpush.msrb.mxu2 %v3068_v28  ;;  %v3066_v57 = vld [vmem:[%s5374_s11] sm:$0xff] }
0x265d   :  { %3473 = vrcp.f32 %v5053_v23  ;;  %v1593_v44 = vsub.f32 1.0, %v1592_v27  ;;  %v2982_v0 = vmul.f32 %v3460_v12, %v2981_v61  ;;  %v463_v3 = vor.u32 1.1754944e-38, %v462_v34 }
0x265e   :  { %v454_v31 = vmul.f32 %v5036_v40, %v453_v62  ;;  %v3037_v13 = vsub.f32 1.0, %v3036_v21  ;;  %3475 = vrcp.f32 %v5080_v5  ;;  %vm3041_vm12 = vweird.f32 %v5048_v25  ;;  %3093 = vmatpush.msrb.mxu2 %v3067_v4 }
0x265f   :  { %3477 = vlog2.f32 %v4962_v16  ;;  %v1594_v10 = vmul.f32 %v5046_v1, %v1593_v44  ;;  %v5136_v9 = vmul.f32 %v5026_v33, %v5026_v33  ;;  %vm1597_vm4 = vweird.f32 %v5046_v1 }
0x2660   :  { %v3468_v35 = vpop.eup %3467  ;;  %v455_v42 = vadd.f32 %v5036_v40, %v454_v31  ;;  %v3038_v16 = vmul.f32 %v5048_v25, %v3037_v13  ;;  %3479 = vrcp.f32 %v5128_v29  ;;  %v1602_v27 = vand.u32 2147483648, %v5034_v63  ;;  %3094 = vmatpush.msrb.mxu2 %v3066_v57  ;;  %vm5165_vm3 = vmor %vm1596_vm15, %vm1597_vm4 }
0x2661   :  { %v2979_v39 = vmul.f32 0.6931472, %v3468_v35  ;;  %v3470_v22 = vpop.eup %3469  ;;  %v1595_v56 = vadd.f32 %v5046_v1, %v1594_v10  ;;  %3481 = vrcp.f32 %v5136_v9  ;;  %vm3040_vm5 = vweird.f32 %v4737_v37 }
0x2662   :  { %v5100_v60 = vpop.eup %3471  ;;  %v459_v51 = vsel %vm5104_vm14, %v5036_v40, %v455_v42  ;;  %v482_v48 = vmul.f32 0.6931472, %v3470_v22  ;;  %v3039_v6 = vadd.f32 %v5048_v25, %v3038_v16  ;;  %3483 = vlog2.f32 %v4992_v59  ;;  %vm5184_vm6 = vmor %vm3040_vm5, %vm3041_vm12  ;;  %v5213_v16 = vpop.permute.xlu0 %3073 }
0x2663   :  { %v2985_v38 = vsel %vm5110_vm11, %v2982_v0, %v2979_v39  ;;  %v5121_v8 = vpop.eup %3473  ;;  %v2732_v17 = vmul.f32 %v5100_v60, %v5044_v50  ;;  %v464_v12 = vsel %vm461_vm13, %v463_v3, %v459_v51  ;;  %3485 = vlog2.f32 %v4926_v36 }
0x2664   :  { %v2986_v2 = vadd.f32 %v2985_v38, %v2970_v47  ;;  %v483_v54 = vmul.f32 2.0, %v482_v48  ;;  %v1212_v40 = vmul.f32 %v5121_v8, %v5053_v23  ;;  %v5147_v62 = vpop.eup %3475  ;;  %v1603_v22 = vor.u32 1.1754944e-38, %v1602_v27 }
0x2665   :  { %v2733_v31 = vsub.f32 1.0, %v2732_v17  ;;  %v3478_v35 = vpop.eup %3477  ;;  %v832_v42 = vmul.f32 %v5147_v62, %v5080_v5  ;;  %vm5188_vm7 = vcmp.eq.f32.partialorder %v3044_v58, 8.507059e+37  ;;  %v1220_v53 = vand.u32 2147483647, %v5053_v23 }
0x2666   :  { %v5161_v61 = vsel %vm2971_vm2, %v4860_v19, %v2986_v2  ;;  %v1213_v45 = vsub.f32 1.0, %v1212_v40  ;;  %v1622_v19 = vmul.f32 0.6931472, %v3478_v35  ;;  %v5192_v13 = vpop.eup %3479  ;;  %v3043_v7 = vsel %vm5184_vm6, %v5048_v25, %v3039_v6 }
0x2667   :  { %v2734_v39 = vmul.f32 %v5100_v60, %v2733_v31  ;;  %v5180_v59 = vmul.f32 %v5161_v61, %v5161_v61  ;;  %v833_v48 = vsub.f32 1.0, %v832_v42  ;;  %3487 = vlog2.f32 %v4989_v46  ;;  %v5201_v58 = vpop.eup %3481 }
0x2668   :  { %v1214_v51 = vmul.f32 %v5121_v8, %v1213_v45  ;;  %v1623_v38 = vmul.f32 2.0, %v1622_v19  ;;  %vm2737_vm9 = vweird.f32 %v5100_v60  ;;  %v2740_v47 = vand.u32 2147483647, %v5044_v50  ;;  %v3103_v19 = vld [vmem:[%s5375_s12 + $0x18] sm:$0xff] }
0x2669   :  { %v2735_v17 = vadd.f32 %v5100_v60, %v2734_v39  ;;  %v2352_v25 = vmul.f32 %v5192_v13, %v5128_v29  ;;  %3489 = vrcp.f32 %v5180_v59  ;;  %vm2736_vm10 = vweird.f32 %v5044_v50  ;;  %v3102_v39 = vld [vmem:[%s5375_s12 + $0x10] sm:$0xff]  ;;  %3123 = vmatpush.msrb.mxu3 %v3103_v19 }
0x266a   :  { %vm1216_vm14 = vweird.f32 %v5053_v23  ;;  %vm5218_vm11 = vmor %vm2736_vm10, %vm2737_vm9  ;;  %vm5222_vm12 = vcmp.eq.f32.partialorder %v1220_v53, 8.507059e+37  ;;  %v1215_v57 = vadd.f32 %v5121_v8, %v1214_v51  ;;  %vm1217_vm13 = vweird.f32 %v5121_v8 }
0x266b   :  { %v2739_v40 = vsel %vm5218_vm11, %v5100_v60, %v2735_v17  ;;  %vm2741_vm4 = vcmp.eq.f32.partialorder %v2740_v47, 8.507059e+37  ;;  %v2353_v27 = vsub.f32 1.0, %v2352_v25  ;;  %vm837_vm15 = vweird.f32 %v5147_v62  ;;  %vm5243_vm2 = vmor %vm1216_vm14, %vm1217_vm13  ;;  %3124 = vmatpush.msrb.mxu3 %v3102_v39 }
0x266c   :  { %v842_v21 = vand.u32 2147483648, %v5080_v5  ;;  %3491 = vlog2.f32 %v5012_v32  ;;  %v2360_v17 = vand.u32 2147483647, %v5128_v29  ;;  %vm1977_vm9 = vweird.f32 %v5201_v58 }
0x266d   :  { %v2354_v32 = vmul.f32 %v5192_v13, %v2353_v27  ;;  %3493 = vlog2.f32 %v5029_v30  ;;  %vm1976_vm14 = vweird.f32 %v5136_v9 }
0x266e   :  { %vm5312_vm11 = vmor %vm1976_vm14, %vm1977_vm9 }
0x2682   :  { %v488_v55 = vpop.permute.xlu2 %487 }
0x2683   :  { %v490_v18 = vadd.f32 %v488_v55, %v484_v49  ;;  %v1600_v49 = vand.u32 2147483647, %v5034_v63  ;;  %v1599_v63 = vsel %vm5165_vm3, %v5046_v1, %v1595_v56  ;;  %v3047_v1 = vor.u32 1.1754944e-38, %v3046_v52 }
0x2684   :  { %v2742_v55 = vand.u32 2147483648, %v5044_v50  ;;  %v1972_v50 = vmul.f32 %v5201_v58, %v5136_v9  ;;  %vm836_vm3 = vweird.f32 %v5080_v5 }
0x2685   :  { %v491_v33 = vmul.f32 %v490_v18, %v464_v12  ;;  %vm1601_vm8 = vcmp.eq.f32.partialorder %v1600_v49, 8.507059e+37  ;;  %v3048_v52 = vsel %vm5188_vm7, %v3047_v1, %v3043_v7  ;;  %v1222_v12 = vand.u32 2147483648, %v5053_v23  ;;  %vm5265_vm5 = vmor %vm836_vm3, %vm837_vm15 }
0x2686   :  { %v1604_v11 = vsel %vm1601_vm8, %v1603_v22, %v1599_v63  ;;  %v2743_v56 = vor.u32 1.1754944e-38, %v2742_v55  ;;  %v840_v49 = vand.u32 2147483647, %v5080_v5  ;;  %v1219_v23 = vsel %vm5243_vm2, %v5121_v8, %v1215_v57 }
0x2687   :  { %v5156_v28 = vadd.f32 %v491_v33, %v483_v54  ;;  %v834_v54 = vmul.f32 %v5147_v62, %v833_v48  ;;  %v1223_v0 = vor.u32 1.1754944e-38, %v1222_v12  ;;  %vm2356_vm7 = vweird.f32 %v5128_v29 }
0x2688   :  { %v2744_v45 = vsel %vm2741_vm4, %v2743_v56, %v2739_v40  ;;  %vm5269_vm6 = vcmp.eq.f32.partialorder %v840_v49, 8.507059e+37  ;;  %vm2357_vm8 = vweird.f32 %v5192_v13  ;;  %vm3025_vm15 = vweird.f32 %v5180_v59 }
0x2689   :  { %v835_v63 = vadd.f32 %v5147_v62, %v834_v54  ;;  %v1224_v30 = vsel %vm5222_vm12, %v1223_v0, %v1219_v23  ;;  %v3049_v54 = vmul.f32 %v3048_v52, %v5161_v61  ;;  %vm5299_vm10 = vmor %vm2356_vm7, %vm2357_vm8  ;;  %v1982_v61 = vand.u32 2147483648, %v5136_v9 }
0x268a   :  { %v1628_v44 = vpop.permute.xlu2 %1627  ;;  %v3227_v49 = vadd.f32 -1.0, %v5156_v28  ;;  %vm2361_vm12 = vcmp.eq.f32.partialorder %v2360_v17, 8.507059e+37  ;;  %v3031_v8 = vand.u32 2147483648, %v5180_v59 }
0x268b   :  { %v1630_v36 = vadd.f32 %v1628_v44, %v5086_v24  ;;  %v3484_v24 = vpop.eup %3483  ;;  %v839_v7 = vsel %vm5265_vm5, %v5147_v62, %v835_v63  ;;  %v2355_v62 = vadd.f32 %v5192_v13, %v2354_v32  ;;  %3495 = vlog2.f32 %v3049_v54 }
0x268c   :  { %v3486_v3 = vpop.eup %3485  ;;  %v2762_v4 = vmul.f32 0.6931472, %v3484_v24  ;;  %v2362_v24 = vand.u32 2147483648, %v5128_v29  ;;  %v1983_v63 = vor.u32 1.1754944e-38, %v1982_v61  ;;  %vm3064_vm5 = vcmask 257024  }
0x268d   :  { %v1631_v10 = vmul.f32 %v1630_v36, %v1604_v11  ;;  %v3488_v33 = vpop.eup %3487  ;;  %v1242_v35 = vmul.f32 0.6931472, %v3486_v3  ;;  %v843_v11 = vor.u32 1.1754944e-38, %v842_v21 }
0x268e   :  { %v5239_v60 = vpop.eup %3489  ;;  %v2763_v22 = vmul.f32 2.0, %v2762_v4  ;;  %v862_v34 = vmul.f32 0.6931472, %v3488_v33  ;;  %v1980_v33 = vand.u32 2147483647, %v5136_v9  ;;  %v2363_v29 = vor.u32 1.1754944e-38, %v2362_v24 }
0x268f   :  { %v5210_v46 = vadd.f32 %v1631_v10, %v1623_v38  ;;  %v1243_v36 = vmul.f32 2.0, %v1242_v35  ;;  %v3021_v5 = vmul.f32 %v5239_v60, %v5180_v59  ;;  %v3492_v47 = vpop.eup %3491  ;;  %v844_v18 = vsel %vm5269_vm6, %v843_v11, %v839_v7 }
0x2690   :  { %v863_v10 = vmul.f32 2.0, %v862_v34  ;;  %vm1981_vm13 = vcmp.eq.f32.partialorder %v1980_v33, 8.507059e+37  ;;  %vm3026_vm4 = vweird.f32 %v5239_v60  ;;  %vm3166_vm6 = vcmask 60416  }
0x2691   :  { %v3022_v12 = vsub.f32 1.0, %v3021_v5  ;;  %vm3027_vm2 = vmor %vm3025_vm15, %vm3026_vm4 }
0x2692   :  { %v2768_v31 = vpop.permute.xlu2 %2767 }
0x2693   :  { %v2770_v6 = vadd.f32 %v2768_v31, %v5090_v14  ;;  %v1973_v14 = vsub.f32 1.0, %v1972_v50  ;;  %v3494_v50 = vpop.eup %3493  ;;  %v2359_v31 = vsel %vm5299_vm10, %v5192_v13, %v2355_v62 }
0x2694   :  { %v2002_v27 = vmul.f32 0.6931472, %v3494_v50  ;;  %v2364_v13 = vsel %vm2361_vm12, %v2363_v29, %v2359_v31  ;;  %v3496_v53 = vpop.eup %3495 }
0x2695   :  { %v2771_v44 = vmul.f32 %v2770_v6, %v2744_v45  ;;  %v1974_v51 = vmul.f32 %v5201_v58, %v1973_v14  ;;  %v3023_v6 = vmul.f32 %v5239_v60, %v3022_v12 }
0x2696   :  { %v2003_v28 = vmul.f32 2.0, %v2002_v27 }
0x2697   :  { %v5261_v1 = vadd.f32 %v2771_v44, %v2763_v22  ;;  %v3024_v34 = vadd.f32 %v5239_v60, %v3023_v6 }
0x2699   :  { %v1248_v48 = vpop.permute.xlu1 %1247  ;;  %v868_v38 = vpop.permute.xlu0 %867  ;;  %v3028_v11 = vsel %vm3027_vm2, %v5239_v60, %v3024_v34 }
0x269a   :  { %v1250_v55 = vadd.f32 %v1248_v48, %v5076_v41  ;;  %v870_v25 = vadd.f32 %v868_v38, %v5069_v20  ;;  %v3014_v3 = vpop.f32.mrf.mxu1  ;;  %v1975_v41 = vadd.f32 %v5201_v58, %v1974_v51  ;;  %v3051_v51 = vmul.f32 0.6931472, %v3496_v53 }
0x269b   :  { %v5291_v2 = vadd.f32 %v3014_v3, %v3807_v26  ;;  %v2382_v26 = vmul.f32 0.6931472, %v3492_v47  ;;  %v3032_v48 = vor.u32 1.1754944e-38, %v3031_v8 }
0x269c   :  { %v1251_v40 = vmul.f32 %v1250_v55, %v1224_v30  ;;  %v871_v4 = vmul.f32 %v870_v25, %v844_v18  ;;  %v1979_v9 = vsel %vm5312_vm11, %v5201_v58, %v1975_v41  ;;  %v3269_v58 = vadd.f32 -1.0, %v5210_v46  ;;  %v3133_v41 = vld [vmem:[%s5376_s13 + $0x8] sm:$0xff] }
0x269d   :  { %v3017_v20 = vmax.f32 %v5291_v2, 0.0  ;;  %v2383_v42 = vmul.f32 2.0, %v2382_v26  ;;  %v1984_v23 = vsel %vm1981_vm13, %v1983_v63, %v1979_v9  ;;  %v3053_v46 = vmul.f32 %v4737_v37, %v4737_v37  ;;  %v3101_v37 = vld [vmem:[%s5375_s12 + $0x8] sm:$0xff]  ;;  %3154 = vmatpush.msra.mxu0 %v3133_v41 }
0x269e   :  { %v1252_v52 = vadd.f32 %v1251_v40, %v1243_v36  ;;  %v872_v56 = vadd.f32 %v871_v4, %v863_v10  ;;  %v3311_v55 = vadd.f32 -1.0, %v5261_v1  ;;  %v3052_v25 = vmul.f32 2.0, %v3051_v51  ;;  %v3100_v1 = vld [vmem:[%s5375_s12] sm:$0xff]  ;;  %3125 = vmatpush.msrb.mxu3 %v3101_v37  ;;  %s3594_s12 = smov 112  }
0x269f   :  { %3323 = vmatmul.msk.f32.vlgmr.msrb.gmra.mxu2 %vm95_vm1, %v3017_v20  ;;  %3065 = vst.msk [vmem:[#allocation2] sm:$0xf] %vm3064_vm5, %v3017_v20  ;;  %v3342_v20 = vld [vmem:[%s5377_s14 + $0x2] ss:$0 sm:$0xff] }
0x26a0   :  { %v3241_v21 = vadd.f32 -1.0, %v872_v56  ;;  %v3255_v19 = vadd.f32 -1.0, %v1252_v52  ;;  %3126 = vmatpush.msrb.mxu3 %v3100_v1  ;;  %3134 = vrot.lane.b32.xlu0 %v3342_v20, %s3594_s12 }
0x26a1   :  { %v2388_v45 = vpop.permute.xlu1 %2387  ;;  %v2008_v14 = vpop.permute.xlu0 %2007 }
0x26a2   :  { %v874_v39 = vadd.f32 %v3241_v21, %v3227_v49  ;;  %v2390_v22 = vadd.f32 %v2388_v45, %v5094_v43  ;;  %v2010_v44 = vadd.f32 %v2008_v14, %v5098_v15  ;;  %v3029_v15 = vand.u32 2147483647, %v5180_v59 }
0x26a4   :  { %v1254_v0 = vadd.f32 %v3255_v19, %v874_v39  ;;  %v2391_v32 = vmul.f32 %v2390_v22, %v2364_v13  ;;  %v2011_v36 = vmul.f32 %v2010_v44, %v1984_v23  ;;  %vm3030_vm3 = vcmp.eq.f32.partialorder %v3029_v15, 8.507059e+37 }
0x26a5   :  { %v3033_v47 = vsel %vm3030_vm3, %v3032_v48, %v3028_v11 }
0x26a6   :  { %v2392_v5 = vadd.f32 %v2391_v32, %v2383_v42  ;;  %v1634_v43 = vadd.f32 %v3269_v58, %v1254_v0  ;;  %v2012_v30 = vadd.f32 %v2011_v36, %v2003_v28 }
0x26a8   :  { %v3283_v7 = vadd.f32 -1.0, %v2012_v30  ;;  %v3297_v10 = vadd.f32 -1.0, %v2392_v5 }
0x26a9   :  { %v3057_v38 = vpop.permute.xlu0 %3056 }
0x26aa   :  { %v2014_v17 = vadd.f32 %v3283_v7, %v1634_v43  ;;  %v3059_v24 = vadd.f32 %v3057_v38, %v3053_v46 }
0x26ac   :  { %v3060_v3 = vmul.f32 %v3059_v24, %v3033_v47  ;;  %v2394_v59 = vadd.f32 %v3297_v10, %v2014_v17 }
0x26ae   :  { %v3061_v62 = vadd.f32 %v3060_v3, %v3052_v25  ;;  %v2774_v18 = vadd.f32 %v3311_v55, %v2394_v59 }
0x26b0   :  { %v3322_v12 = vadd.f32 -1.0, %v3061_v62 }
0x26b2   :  { %v3063_v60 = vadd.f32 %v3322_v12, %v2774_v18 }
0x26b4   :  { %3163 = vrot.lane.b32.xlu1 %v3063_v60, %s3591_s26 }
0x2712   :  { %v3135_v49 = vpop.permute.xlu0 %3134 }
0x2722   :  { %v3096_v54 = vpop.f32.mrf.mxu2 }
0x2723   :  { %v3097_v50 = vadd.f32 %v3096_v54, %v5213_v16  ;;  %v3132_v16 = vld [vmem:[%s5376_s13] sm:$0xff]  ;;  %s3189_s13 = sshll.u32 %s3595_s1, 4  ;;  %s3190_s13 = int_to_ptr.vmem [resolvable:$true] %s3189_s13 }
0x2724   :  { %3155 = vmatpush.msra.mxu0 %v3132_v16  ;;  %3194 = dma.vmem_to_hbm [thread:$0]  %s3190_s13, 64, %s3192_s2, [#allocation3]  }
0x2725   :  { %v3099_v40 = vmax.f32 %v3097_v50, 0.0 }
0x2726   :  { %v3164_v4 = vpop.permute.xlu1 %3163 }
0x2727   :  { %3324 = vmatmul.msk.f32.vlgmr.msrb.gmra.mxu3 %vm95_vm1, %v3099_v40  ;;  %v3167_v2 = vsel %vm3166_vm6, %v3164_v4, 0.0  ;;  %vm3180_vm1 = vcmask 0  }
0x2728   :  { %3168 = vadd.xlane.f32.xlu2 %v3167_v2 }
0x279b   :  { %v3169_v57 = vpop.xlane.xlu2 %3168 }
0x279c   :  { %v3170_v26 = vrot.slane %v3169_v57, 4 }
0x279e   :  { %v3171_v33 = vadd.f32 %v3170_v26, %v3169_v57 }
0x27a0   :  { %v3172_v61 = vrot.slane %v3171_v33, 2 }
0x27a2   :  { %v3173_v52 = vadd.f32 %v3172_v61, %v3171_v33 }
0x27a4   :  { %v3174_v56 = vrot.slane %v3173_v52, 1 }
0x27a6   :  { %v3175_v31 = vadd.f32 %v3174_v56, %v3173_v52 }
0x27a8   :  { %3326 = vpush %v3175_v31 }
0x27aa   :  { %v3128_v29 = vpop.f32.mrf.mxu3 }
0x27ab   :  { %v3129_v35 = vadd.f32 %v3342_v20, %v3128_v29 }
0x27ad   :  { %v3131_v27 = vmax.f32 %v3129_v35, 0.0 }
0x27af   :  { %3325 = vmatmul.msk.f32.vlgmr.msra.gmra.mxu0 %vm63_vm0, %v3131_v27  ;;  %vm3160_vm0 = vcmask 3072  }
0x27d9   :  { %s3327_s7 = spop %3326 }
0x27da   :  { %s3177_s30 = smul.f32 0.5, %s3327_s7 }
0x27dc   :  { %v3178_v6 = vstv %s3177_s30 }
0x27dd   :  { %3181 = vst.msk [vmem:[#allocation4] sm:$0x1] %vm3180_vm1, %v3178_v6 }
0x27de   :  { %3205 = dma.vmem_to_hbm [thread:$0]  %s3201_s3, 16, %s3203_s29, [#allocation5]  }
0x282c   :  { %v3157_v21 = vpop.f32.mrf.mxu0 }
0x282d   :  { %v3158_v9 = vadd.f32 %v3157_v21, %v3135_v49 }
0x282f   :  { %3161 = vst.msk [vmem:[%s5378_s15] sm:$0xf] %vm3160_vm0, %v3158_v9 }
0x2830   :  { %3582 = dma.done.wait [#allocation3], 64  }
0x2831   :  { %3583 = vsyncadd [#allocation3], 4294967232 }
0x2832   :  { %3584 = dma.done.wait [#allocation5], 16  }
0x2833   :  { %3585 = vsyncadd [#allocation5], 4294967280 }
0x2834   :  { %3216 = vsyncpa [#allocation3], 1 }
0x2835   :  { %3217 = vsyncpa [#allocation5], 1 }

</bundles_post_ra>
